<compile_context>
chip_gen: v6e
topology: v6e:2x2x1
jax: 0.10.0
libtpu: 0.0.40
codegen_flags: <defaults>
</compile_context>

<pallas_src>
from typing import NamedTuple

import jax
import jax.numpy as jnp
from jax import lax
from jax.experimental import pallas as pl
from jax.experimental.pallas import tpu as pltpu


# ----------------------------------------------------------------------------
# Static layer geometry (from ConvAE.__init__ / forward)
# ----------------------------------------------------------------------------
# (kind, param name, Cin, Cout, K, torch padding, fuse ReLU)
_LAYER_DEFS = (
    ("conv",  "conv1",   1, 16, 10, 1, True),
    ("conv",  "conv2",  16,  4,  5, 1, True),
    ("tconv", "tconv1",  4, 16,  3, 0, True),
    ("tconv", "tconv2", 16,  1,  8, 0, False),
)


class _Geom(NamedTuple):
    cin: int
    cout: int
    k: int      # square kernel size
    p: int      # equivalent symmetric zero padding
    relu: bool
    h: int      # input height
    w: int      # input width
    ho: int     # output height
    wo: int     # output width


def _geometry(h, w):
    geo = []
    for kind, _name, cin, cout, k, pad, relu in _LAYER_DEFS:
        p = (k - 1) if kind == "tconv" else pad   # stride-1 tconv == conv, pad K-1
        ho, wo = h + 2 * p - k + 1, w + 2 * p - k + 1
        geo.append(_Geom(cin, cout, k, p, relu, h, w, ho, wo))
        h, w = ho, wo
    return tuple(geo)


# ----------------------------------------------------------------------------
# Weight pre-processing (tiny, outside the kernel): conv -> dense Toeplitz GEMM
# ----------------------------------------------------------------------------
def _tap_weight(kind, w):
    """-> (KH, KW, Cin, Cout) cross-correlation taps of the equivalent conv."""
    if kind == "conv":                        # torch Conv2d weight: (Cout, Cin, KH, KW)
        return jnp.transpose(w, (2, 3, 1, 0))
    # torch ConvTranspose2d weight: (Cin, Cout, KH, KW).  For stride=1 / pad=0
    # it equals a conv with channels swapped, kernel spatially flipped, pad K-1.
    return jnp.transpose(w, (2, 3, 0, 1))[::-1, ::-1, :, :]


def _toeplitz_weight(tap, g):
    """(K, K, Cin, Cout) taps -> (H*W*Cin, Ho*Wo*Cout) dense GEMM operand.

    W[(h*W+w)*Cin+ci, (ho*Wo+wo)*Cout+co] = tap[h+p-ho, w+p-wo, ci, co] when
    both tap indices fall in [0, K), else 0.  Height AND width zero padding are
    folded into the zero structure, so each layer is one plain matmul on the
    flattened (h, w, c)-major activation.
    """
    k = g.k
    kh = jnp.arange(g.h)[:, None] + g.p - jnp.arange(g.ho)[None, :]    # (H, Ho)
    kw = jnp.arange(g.w)[:, None] + g.p - jnp.arange(g.wo)[None, :]    # (W, Wo)
    vh = (kh >= 0) & (kh < k)
    vw = (kw >= 0) & (kw < k)
    gathered = tap[jnp.clip(kh, 0, k - 1)[:, :, None, None],
                   jnp.clip(kw, 0, k - 1)[None, None, :, :]]           # (H,Ho,W,Wo,Cin,Cout)
    mask = (vh[:, :, None, None] & vw[None, None, :, :])[..., None, None]
    dense = jnp.where(mask, gathered, jnp.zeros((), tap.dtype))
    dense = jnp.transpose(dense, (0, 2, 4, 1, 3, 5))                   # (H,W,Cin,Ho,Wo,Cout)
    return dense.reshape(g.h * g.w * g.cin, g.ho * g.wo * g.cout)


def _prepare_gemm_params(params, geo, mxu_dtype=jnp.bfloat16):
    """-> [w1, b1, w2, b2, w3, b3, w4, b4]: bf16 Toeplitz weights, f32 biases."""
    wb = []
    for g, (kind, name, *_rest) in zip(geo, _LAYER_DEFS):
        tap = _tap_weight(kind, params[name + "_w"]).astype(jnp.float32)
        wb.append(_toeplitz_weight(tap, g).astype(mxu_dtype))
        wb.append(jnp.tile(params[name + "_b"].astype(jnp.float32), g.ho * g.wo)
                  .reshape(1, g.ho * g.wo * g.cout))
    return wb


# ----------------------------------------------------------------------------
# Fused Pallas kernel: 4 chained GEMMs, activations VMEM-resident
# ----------------------------------------------------------------------------
def _make_kernel(relu_flags, mxu_dtype):
    n_layers = len(relu_flags)

    def kernel(*refs):
        x_ref = refs[0]                          # (B, H*W) f32 block of samples
        wb_refs = refs[1:1 + 2 * n_layers]       # (W_toeplitz, bias_row) per layer
        o_ref = refs[1 + 2 * n_layers]           # (B, Ho*Wo) f32 output block

        act = x_ref[...]                         # f32 (B, features)
        for li, relu in enumerate(relu_flags):
            w_ref = wb_refs[2 * li]              # bf16 (F_in, F_out), grid-invariant
            b_ref = wb_refs[2 * li + 1]          # f32  (1, F_out)
            # bf16 MXU operands, f32 accumulation.
            acc = jnp.dot(act.astype(mxu_dtype), w_ref[...],
                          preferred_element_type=jnp.float32)
            acc = acc + b_ref[...]               # f32 epilogue (v5e-friendly)
            if relu:
                acc = jnp.maximum(acc, 0.0)
            act = acc                            # already the next layer's layout

        o_ref[...] = act.astype(o_ref.dtype)

    return kernel


def _fused_forward_2d(x2d, wb, geo, bb, mxu_dtype):
    n_pad, f_in = x2d.shape
    f_out = geo[-1].ho * geo[-1].wo * geo[-1].cout

    in_specs = [pl.BlockSpec((bb, f_in), lambda i: (i, 0))]
    # Weights/biases: whole array, same block every step -> fetched once.
    in_specs += [pl.BlockSpec(a.shape, lambda i: (0, 0)) for a in wb]

    return pl.pallas_call(
        _make_kernel(tuple(g.relu for g in geo), mxu_dtype),
        out_shape=jax.ShapeDtypeStruct((n_pad, f_out), jnp.float32),
        grid=(n_pad // bb,),                     # one program per sample block
        in_specs=in_specs,
        out_specs=pl.BlockSpec((bb, f_out), lambda i: (i, 0)),
        compiler_params=pltpu.CompilerParams(
            # On v7x, pltpu.CORE_PARALLEL here splits sample blocks across the
            # two TensorCores; "parallel" is kept for cross-generation safety.
            dimension_semantics=("parallel",),
            vmem_limit_bytes=32 * 1024 * 1024),  # explicit budget, fits v7x 64 MiB
    )(x2d, *wb)


# ----------------------------------------------------------------------------
# Full ConvAE forward
# ----------------------------------------------------------------------------
def conv_ae_forward(x_nchw, params, *, block_b=256, mxu_dtype=jnp.bfloat16):
    """Forward pass of ConvAE.  x_nchw: (N, 1, H, W) float32 -> (N, 1, H, W)."""
    n, c, h, w = x_nchw.shape
    assert c == 1, "ConvAE expects single-channel input"
    geo = _geometry(h, w)
    # Weight prep touches only the small conv weights; hoist out of the step
    # function if params are static.
    wb = _prepare_gemm_params(params, geo, mxu_dtype)

    x2d = x_nchw.reshape(n, h * w).astype(jnp.float32)   # (h, w, c)-major, Cin == 1
    if n <= block_b:
        bb, n_pad = n, n                         # single block == full array
    else:
        assert block_b % 8 == 0, "block_b must be sublane-aligned when tiling"
        bb = block_b
        n_pad = pl.cdiv(n, bb) * bb
        if n_pad != n:
            x2d = jnp.pad(x2d, ((0, n_pad - n), (0, 0)))

    y2d = _fused_forward_2d(x2d, wb, geo, bb, mxu_dtype)
    ho, wo = geo[-1].ho, geo[-1].wo              # final Cout == 1
    return y2d[:n].reshape(n, 1, ho, wo)


# ----------------------------------------------------------------------------
# Pure-JAX reference (lax convs) for correctness checks
# ----------------------------------------------------------------------------
def reference_forward(x, p, dtype=jnp.float32):
    """dtype=f32: exact reference.  dtype=bf16: operand-precision-matched ref."""
    dn = ("NCHW", "OIHW", "NCHW")

    def conv(x, w, b, pad):
        y = lax.conv_general_dilated(
            x.astype(dtype), w.astype(dtype), (1, 1), [(pad, pad), (pad, pad)],
            dimension_numbers=dn, preferred_element_type=jnp.float32)
        return y + b.astype(jnp.float32)[None, :, None, None]

    def tconv(x, w_io, b):
        k = w_io.shape[-1]
        w_eq = jnp.transpose(w_io, (1, 0, 2, 3))[:, :, ::-1, ::-1]
        return conv(x, w_eq, b, k - 1)

    x = jax.nn.relu(conv(x, p["conv1_w"], p["conv1_b"], 1))
    x = jax.nn.relu(conv(x, p["conv2_w"], p["conv2_b"], 1))
    x = jax.nn.relu(tconv(x, p["tconv1_w"], p["tconv1_b"]))
    x = tconv(x, p["tconv2_w"], p["tconv2_b"])
    return x


# ----------------------------------------------------------------------------
# Deterministic parameter init (shapes from ConvAE.__init__)
# ----------------------------------------------------------------------------
def init_params(key):
    ks = jax.random.split(key, 8)

    def w(k, shape, fan_in):
        return jax.random.normal(k, shape, jnp.float32) / jnp.sqrt(fan_in)

    def b(k, n):
        return 0.01 * jax.random.normal(k, (n,), jnp.float32)

    return {
        "conv1_w": w(ks[0], (16, 1, 10, 10), 1 * 10 * 10),    # Conv2d(1, 16, 10, pad=1)
        "conv1_b": b(ks[1], 16),
        "conv2_w": w(ks[2], (4, 16, 5, 5), 16 * 5 * 5),       # Conv2d(16, 4, 5, pad=1)
        "conv2_b": b(ks[3], 4),
        "tconv1_w": w(ks[4], (4, 16, 3, 3), 4 * 3 * 3),       # ConvTranspose2d(4, 16, 3)
        "tconv1_b": b(ks[5], 16),
        "tconv2_w": w(ks[6], (16, 1, 8, 8), 16 * 8 * 8),      # ConvTranspose2d(16, 1, 8)
        "tconv2_b": b(ks[7], 1),
    }


if __name__ == "__main__":
    key = jax.random.PRNGKey(0)
    kx, kp = jax.random.split(key)

    # Input: NCHW, single channel (Conv2d(1, ...)), 16x16 spatial, batch 16.
    n = 16
    x = jax.random.normal(kx, (n, 1, 16, 16), jnp.float32)
    params = init_params(kp)

    # Fused Pallas forward (single sample block -> grid of 1 step).
    y = jax.block_until_ready(jax.jit(conv_ae_forward)(x, params))
    assert y.shape == (n, 1, 16, 16), y.shape

    # Primary check: bf16-operand-matched lax reference (f32 accumulation).
    y_ref_bf16 = jax.block_until_ready(
        jax.jit(lambda xx, pp: reference_forward(xx, pp, jnp.bfloat16))(x, params))
    err = float(jnp.max(jnp.abs(y - y_ref_bf16)))
    assert err < 5e-3, f"max abs error vs bf16-matched reference: {err}"

    # Sanity check vs the full-f32 reference (bounds total bf16 rounding error).
    y_ref_f32 = jax.block_until_ready(jax.jit(reference_forward)(x, params))
    err32 = float(jnp.max(jnp.abs(y - y_ref_f32)))
    assert err32 < 1e-1, f"max abs error vs f32 reference: {err32}"

    # Exercise the multi-grid-step (batched/tiled) path: 2 blocks of 8 samples.
    y_tiled = jax.block_until_ready(
        jax.jit(lambda xx, pp: conv_ae_forward(xx, pp, block_b=8))(x, params))
    err_t = float(jnp.max(jnp.abs(y_tiled - y_ref_bf16)))
    assert err_t < 5e-3, f"tiled-path max abs error vs bf16-matched ref: {err_t}"

    print("KERNEL_OK")
</pallas_src>

<mosaic_0001>
module attributes {stable_mosaic.version = 11 : i64} {
  func.func @kernel(%arg0: i32, %arg1: memref<16x256xf32, #tpu.memory_space<vmem>>, %arg2: memref<256x1296xbf16, #tpu.memory_space<vmem>>, %arg3: memref<1x1296xf32, #tpu.memory_space<vmem>>, %arg4: memref<1296x196xbf16, #tpu.memory_space<vmem>>, %arg5: memref<1x196xf32, #tpu.memory_space<vmem>>, %arg6: memref<196x1296xbf16, #tpu.memory_space<vmem>>, %arg7: memref<1x1296xf32, #tpu.memory_space<vmem>>, %arg8: memref<1296x256xbf16, #tpu.memory_space<vmem>>, %arg9: memref<1x256xf32, #tpu.memory_space<vmem>>, %arg10: memref<16x256xf32, #tpu.memory_space<vmem>>) attributes {dimension_semantics = [#tpu.dimension_semantics<parallel>], iteration_bounds = array<i64: 1>, scalar_prefetch = 0 : i64, scratch_operands = 0 : i64, tpu.core_type = #tpu.core_type<tc>, window_params = [{transform_indices = @transform_0, window_bounds = array<i64: 16, 256>}, {pipeline_mode = #tpu.pipeline_mode<synchronous>, transform_indices = @transform_1, window_bounds = array<i64: 256, 1296>}, {pipeline_mode = #tpu.pipeline_mode<synchronous>, transform_indices = @transform_2, window_bounds = array<i64: 1, 1296>}, {pipeline_mode = #tpu.pipeline_mode<synchronous>, transform_indices = @transform_3, window_bounds = array<i64: 1296, 196>}, {pipeline_mode = #tpu.pipeline_mode<synchronous>, transform_indices = @transform_4, window_bounds = array<i64: 1, 196>}, {pipeline_mode = #tpu.pipeline_mode<synchronous>, transform_indices = @transform_5, window_bounds = array<i64: 196, 1296>}, {pipeline_mode = #tpu.pipeline_mode<synchronous>, transform_indices = @transform_6, window_bounds = array<i64: 1, 1296>}, {pipeline_mode = #tpu.pipeline_mode<synchronous>, transform_indices = @transform_7, window_bounds = array<i64: 1296, 256>}, {pipeline_mode = #tpu.pipeline_mode<synchronous>, transform_indices = @transform_8, window_bounds = array<i64: 1, 256>}, {transform_indices = @transform_9, window_bounds = array<i64: 16, 256>}]} {
    %c0 = arith.constant 0 : index
    %c0_0 = arith.constant 0 : index
    %0 = vector.load %arg1[%c0, %c0_0] : memref<16x256xf32, #tpu.memory_space<vmem>>, vector<16x256xf32>
    %1 = arith.truncf %0 : vector<16x256xf32> to vector<16x256xbf16>
    %c0_1 = arith.constant 0 : index
    %c0_2 = arith.constant 0 : index
    %2 = vector.load %arg2[%c0_1, %c0_2] : memref<256x1296xbf16, #tpu.memory_space<vmem>>, vector<256x1296xbf16>
    %cst = arith.constant dense<0.000000e+00> : vector<16x1296xf32>
    %3 = tpu.matmul %1, %2, %cst {dimension_numbers = #tpu.dot_dimension_numbers<[1], [0], [0], [1], [0, 0, 1, 1], [], []>} : vector<16x256xbf16>, vector<256x1296xbf16>, vector<16x1296xf32> -> vector<16x1296xf32>
    %c0_3 = arith.constant 0 : index
    %c0_4 = arith.constant 0 : index
    %4 = vector.load %arg3[%c0_3, %c0_4] : memref<1x1296xf32, #tpu.memory_space<vmem>>, vector<1x1296xf32>
    %5 = vector.broadcast %4 : vector<1x1296xf32> to vector<16x1296xf32>
    %6 = arith.addf %3, %5 : vector<16x1296xf32>
    %cst_5 = arith.constant 0.000000e+00 : f32
    %7 = vector.broadcast %cst_5 : f32 to vector<16x1296xf32>
    %8 = arith.maximumf %6, %7 : vector<16x1296xf32>
    %9 = arith.truncf %8 : vector<16x1296xf32> to vector<16x1296xbf16>
    %c0_6 = arith.constant 0 : index
    %c0_7 = arith.constant 0 : index
    %10 = vector.load %arg4[%c0_6, %c0_7] : memref<1296x196xbf16, #tpu.memory_space<vmem>>, vector<1296x196xbf16>
    %cst_8 = arith.constant dense<0.000000e+00> : vector<16x196xf32>
    %11 = tpu.matmul %9, %10, %cst_8 {dimension_numbers = #tpu.dot_dimension_numbers<[1], [0], [0], [1], [0, 0, 1, 1], [], []>} : vector<16x1296xbf16>, vector<1296x196xbf16>, vector<16x196xf32> -> vector<16x196xf32>
    %c0_9 = arith.constant 0 : index
    %c0_10 = arith.constant 0 : index
    %12 = vector.load %arg5[%c0_9, %c0_10] : memref<1x196xf32, #tpu.memory_space<vmem>>, vector<1x196xf32>
    %13 = vector.broadcast %12 : vector<1x196xf32> to vector<16x196xf32>
    %14 = arith.addf %11, %13 : vector<16x196xf32>
    %cst_11 = arith.constant 0.000000e+00 : f32
    %15 = vector.broadcast %cst_11 : f32 to vector<16x196xf32>
    %16 = arith.maximumf %14, %15 : vector<16x196xf32>
    %17 = arith.truncf %16 : vector<16x196xf32> to vector<16x196xbf16>
    %c0_12 = arith.constant 0 : index
    %c0_13 = arith.constant 0 : index
    %18 = vector.load %arg6[%c0_12, %c0_13] : memref<196x1296xbf16, #tpu.memory_space<vmem>>, vector<196x1296xbf16>
    %cst_14 = arith.constant dense<0.000000e+00> : vector<16x1296xf32>
    %19 = tpu.matmul %17, %18, %cst_14 {dimension_numbers = #tpu.dot_dimension_numbers<[1], [0], [0], [1], [0, 0, 1, 1], [], []>} : vector<16x196xbf16>, vector<196x1296xbf16>, vector<16x1296xf32> -> vector<16x1296xf32>
    %c0_15 = arith.constant 0 : index
    %c0_16 = arith.constant 0 : index
    %20 = vector.load %arg7[%c0_15, %c0_16] : memref<1x1296xf32, #tpu.memory_space<vmem>>, vector<1x1296xf32>
    %21 = vector.broadcast %20 : vector<1x1296xf32> to vector<16x1296xf32>
    %22 = arith.addf %19, %21 : vector<16x1296xf32>
    %cst_17 = arith.constant 0.000000e+00 : f32
    %23 = vector.broadcast %cst_17 : f32 to vector<16x1296xf32>
    %24 = arith.maximumf %22, %23 : vector<16x1296xf32>
    %25 = arith.truncf %24 : vector<16x1296xf32> to vector<16x1296xbf16>
    %c0_18 = arith.constant 0 : index
    %c0_19 = arith.constant 0 : index
    %26 = vector.load %arg8[%c0_18, %c0_19] : memref<1296x256xbf16, #tpu.memory_space<vmem>>, vector<1296x256xbf16>
    %cst_20 = arith.constant dense<0.000000e+00> : vector<16x256xf32>
    %27 = tpu.matmul %25, %26, %cst_20 {dimension_numbers = #tpu.dot_dimension_numbers<[1], [0], [0], [1], [0, 0, 1, 1], [], []>} : vector<16x1296xbf16>, vector<1296x256xbf16>, vector<16x256xf32> -> vector<16x256xf32>
    %c0_21 = arith.constant 0 : index
    %c0_22 = arith.constant 0 : index
    %28 = vector.load %arg9[%c0_21, %c0_22] : memref<1x256xf32, #tpu.memory_space<vmem>>, vector<1x256xf32>
    %29 = vector.broadcast %28 : vector<1x256xf32> to vector<16x256xf32>
    %30 = arith.addf %27, %29 : vector<16x256xf32>
    %c0_23 = arith.constant 0 : index
    %c0_24 = arith.constant 0 : index
    %31 = vector.load %arg10[%c0_23, %c0_24] : memref<16x256xf32, #tpu.memory_space<vmem>>, vector<16x256xf32>
    tpu.vector_store %arg10[%c0_23, %c0_24], %30 {strides = array<i32>} : memref<16x256xf32, #tpu.memory_space<vmem>>, vector<16x256xf32>,
    return
  }
  func.func @transform_0(%arg0: i32) -> (i32, i32) {
    %c0_i32 = arith.constant 0 : i32
    %c0_i32_0 = arith.constant 0 : i32
    return %arg0, %c0_i32 : i32, i32
  }
  func.func @transform_1(%arg0: i32) -> (i32, i32) {
    %c0_i32 = arith.constant 0 : i32
    %c0_i32_0 = arith.constant 0 : i32
    %c0_i32_1 = arith.constant 0 : i32
    return %c0_i32, %c0_i32_0 : i32, i32
  }
  func.func @transform_2(%arg0: i32) -> (i32, i32) {
    %c0_i32 = arith.constant 0 : i32
    %c0_i32_0 = arith.constant 0 : i32
    %c0_i32_1 = arith.constant 0 : i32
    return %c0_i32, %c0_i32_0 : i32, i32
  }
  func.func @transform_3(%arg0: i32) -> (i32, i32) {
    %c0_i32 = arith.constant 0 : i32
    %c0_i32_0 = arith.constant 0 : i32
    %c0_i32_1 = arith.constant 0 : i32
    return %c0_i32, %c0_i32_0 : i32, i32
  }
  func.func @transform_4(%arg0: i32) -> (i32, i32) {
    %c0_i32 = arith.constant 0 : i32
    %c0_i32_0 = arith.constant 0 : i32
    %c0_i32_1 = arith.constant 0 : i32
    return %c0_i32, %c0_i32_0 : i32, i32
  }
  func.func @transform_5(%arg0: i32) -> (i32, i32) {
    %c0_i32 = arith.constant 0 : i32
    %c0_i32_0 = arith.constant 0 : i32
    %c0_i32_1 = arith.constant 0 : i32
    return %c0_i32, %c0_i32_0 : i32, i32
  }
  func.func @transform_6(%arg0: i32) -> (i32, i32) {
    %c0_i32 = arith.constant 0 : i32
    %c0_i32_0 = arith.constant 0 : i32
    %c0_i32_1 = arith.constant 0 : i32
    return %c0_i32, %c0_i32_0 : i32, i32
  }
  func.func @transform_7(%arg0: i32) -> (i32, i32) {
    %c0_i32 = arith.constant 0 : i32
    %c0_i32_0 = arith.constant 0 : i32
    %c0_i32_1 = arith.constant 0 : i32
    return %c0_i32, %c0_i32_0 : i32, i32
  }
  func.func @transform_8(%arg0: i32) -> (i32, i32) {
    %c0_i32 = arith.constant 0 : i32
    %c0_i32_0 = arith.constant 0 : i32
    %c0_i32_1 = arith.constant 0 : i32
    return %c0_i32, %c0_i32_0 : i32, i32
  }
  func.func @transform_9(%arg0: i32) -> (i32, i32) {
    %c0_i32 = arith.constant 0 : i32
    %c0_i32_0 = arith.constant 0 : i32
    return %arg0, %c0_i32 : i32, i32
  }
}

</mosaic_0001>

<bundles_post_ra>
// kernel: tile.23
= control target key start
LH: loop header
LB: loop body
LE: loop exit
PB: predicated region body
PF: predicated region fallthrough
CT: control target
= control target key end

     0   :  { %s82_s0 = inlined_call_operand.vmem [shape: f32[16], index: 0, kind: input, shape index: {}]   ;;  %s83_s1 = inlined_call_operand.vmem [shape: f32[81,16], index: 1, kind: output, shape index: {}]  }
   0x1   :  { %v4_v0 = vld [vmem:[%s82_s0] ss:$0 sm:$0xff] }
   0x2   :  { %5 = vst [vmem:[%s83_s1] sm:$0xff] %v4_v0  ;;  %26 = vst [vmem:[%s83_s1 + $0x8] sm:$0xff] %v4_v0 }
   0x3   :  { %27 = vst [vmem:[%s83_s1 + $0x10] sm:$0xff] %v4_v0  ;;  %28 = vst [vmem:[%s83_s1 + $0x18] sm:$0xff] %v4_v0 }
   0x4   :  { %29 = vst [vmem:[%s83_s1 + $0x20] sm:$0xff] %v4_v0  ;;  %30 = vst [vmem:[%s83_s1 + $0x28] sm:$0xff] %v4_v0 }
   0x5   :  { %31 = vst [vmem:[%s83_s1 + $0x30] sm:$0xff] %v4_v0  ;;  %32 = vst [vmem:[%s83_s1 + $0x38] sm:$0xff] %v4_v0 }
   0x6   :  { %33 = vst [vmem:[%s83_s1 + $0x40] sm:$0xff] %v4_v0  ;;  %34 = vst [vmem:[%s83_s1 + $0x48] sm:$0xff] %v4_v0 }
   0x7   :  { %35 = vst [vmem:[%s83_s1 + $0x50] sm:$0xff] %v4_v0 }

// kernel: tile.24
= control target key start
LH: loop header
LB: loop body
LE: loop exit
PB: predicated region body
PF: predicated region fallthrough
CT: control target
= control target key end

     0   :  { %vm4_vm0 = vcmask 1047556   ;;  %s45_s14 = smov 3  ;;  %s26_s15 = smov 3  ;;  %vm6_vm1 = vcmask 130048   ;;  %vm22_vm2 = vcmask 1048448   ;;  %vm41_vm3 = vcmask 917248   ;;  %s402_s0 = inlined_call_operand.vmem [shape: f32[81,16], index: 0, kind: input, shape index: {}]   ;;  %s403_s1 = inlined_call_operand.vmem [shape: f32[1,1296], index: 1, kind: output, shape index: {}]  }
   0x1   :  { %v237_v0 = vld [vmem:[%s402_s0 + $0x6] ss:$8 sm:$0xf]   ;;  %v234_v2 = vld [vmem:[%s402_s0 + $0x7] ss:$8 sm:$0xf]  }
   0x2   :  { %v238_v1 = vld [vmem:[%s402_s0 + $0x6] ss:$8 sm:$0xf0]   ;;  %v235_v4 = vld [vmem:[%s402_s0 + $0x7] ss:$8 sm:$0xf0]  }
   0x3   :  { %v38_v3 = vsel %vm4_vm0, %v238_v1, %v237_v0  ;;  %s272_s16 = smov 96   ;;  %v19_v5 = vsel %vm4_vm0, %v235_v4, %v234_v2  ;;  %s273_s17 = smov 112   ;;  %v239_v6 = vld [vmem:[%s402_s0 + $0x46] ss:$8 sm:%s45_s14]   ;;  %v236_v7 = vld [vmem:[%s402_s0 + $0x47] ss:$8 sm:%s26_s15]  }
   0x4   :  { %39 = vrot.lane.b32.xlu1 %v38_v3, %s272_s16  ;;  %20 = vrot.lane.b32.xlu0 %v19_v5, %s273_s17  ;;  %s64_s22 = smov 3  ;;  %v240_v8 = vld [vmem:[%s402_s0 + $0x5] ss:$8 sm:$0xf]   ;;  %s83_s29 = smov 3  ;;  %vm60_vm4 = vcmask 786048  }
   0x5   :  { %v241_v9 = vld [vmem:[%s402_s0 + $0x5] ss:$8 sm:$0xf0]   ;;  %v243_v12 = vld [vmem:[%s402_s0 + $0x4] ss:$8 sm:$0xf]  }
   0x6   :  { %v242_v10 = vld [vmem:[%s402_s0 + $0x45] ss:$8 sm:%s64_s22]   ;;  %v57_v11 = vsel %vm4_vm0, %v241_v9, %v240_v8  ;;  %v244_v13 = vld [vmem:[%s402_s0 + $0x4] ss:$8 sm:$0xf0]   ;;  %s274_s5 = smov 80  }
   0x7   :  { %v245_v14 = vld [vmem:[%s402_s0 + $0x44] ss:$8 sm:%s83_s29]   ;;  %s102_s8 = smov 3  ;;  %v246_v15 = vld [vmem:[%s402_s0 + $0x3] ss:$8 sm:$0xf]   ;;  %v76_v16 = vsel %vm4_vm0, %v244_v13, %v243_v12 }
   0x8   :  { %47 = vrot.lane.b32.xlu1 %v239_v6, %s272_s16  ;;  %28 = vrot.lane.b32.xlu0 %v236_v7, %s273_s17  ;;  %v2_v17 = vld [vmem:[%s402_s0] ss:$8 sm:$0xf]   ;;  %v247_v19 = vld [vmem:[%s402_s0 + $0x3] ss:$8 sm:$0xf0]  }
   0x9   :  { %v3_v18 = vld [vmem:[%s402_s0] ss:$8 sm:$0xf0]   ;;  %s275_s19 = smov 64   ;;  %v248_v22 = vld [vmem:[%s402_s0 + $0x43] ss:$8 sm:%s102_s8]   ;;  %v95_v23 = vsel %vm4_vm0, %v247_v19, %v246_v15 }
   0xa   :  { %v5_v20 = vsel %vm4_vm0, %v3_v18, %v2_v17  ;;  %v233_v21 = vld [vmem:[%s402_s0 + $0x40] ss:$8 sm:$0x7]   ;;  %s121_s22 = smov 3  ;;  %s276_s27 = smov 48   ;;  %vm79_vm5 = vcmask 654848  }
   0xb   :  { %7 = vst.msk [vmem:[#allocation0] ss:$8 sm:$0xf] %vm6_vm1, %v5_v20   ;;  %8 = vst.msk [vmem:[#allocation0] ss:$8 sm:$0xf0] %vm6_vm1, %v5_v20  }
   0xc   :  { %66 = vrot.lane.b32.xlu1 %v242_v10, %s274_s5  ;;  %58 = vrot.lane.b32.xlu0 %v57_v11, %s274_s5  ;;  %13 = vst.msk [vmem:[#allocation0 + $0x40] ss:$8 sm:$0x7] %vm6_vm1, %v233_v21   ;;  %v249_v24 = vld [vmem:[%s402_s0 + $0x2] ss:$8 sm:$0xf]  }
   0xd   :  { %v250_v25 = vld [vmem:[%s402_s0 + $0x2] ss:$8 sm:$0xf0]   ;;  %s140_s30 = smov 3  ;;  %s277_s6 = smov 32   ;;  %vm98_vm6 = vcmask 523648  }
   0xe   :  { %v251_v26 = vld [vmem:[%s402_s0 + $0x42] ss:$8 sm:%s121_s22]   ;;  %v114_v27 = vsel %vm4_vm0, %v250_v25, %v249_v24  ;;  %v252_v28 = vld [vmem:[%s402_s0 + $0x1] ss:$8 sm:$0xf]   ;;  %vm117_vm7 = vcmask 392448  }
   0xf   :  { %v253_v29 = vld [vmem:[%s402_s0 + $0x1] ss:$8 sm:$0xf0]   ;;  %vm136_vm8 = vcmask 261248  }
  0x10   :  { %85 = vrot.lane.b32.xlu1 %v245_v14, %s275_s19  ;;  %77 = vrot.lane.b32.xlu0 %v76_v16, %s275_s19  ;;  %v254_v31 = vld [vmem:[%s402_s0 + $0x41] ss:$8 sm:%s140_s30]   ;;  %v133_v32 = vsel %vm4_vm0, %v253_v29, %v252_v28  ;;  %s278_s0 = smov 16  }
  0x13   :  { %v218_v30 = vld [vmem:[#allocation0 + $0x50] sm:$0x1] }
  0x14   :  { %104 = vrot.lane.b32.xlu1 %v248_v22, %s276_s27  ;;  %96 = vrot.lane.b32.xlu0 %v95_v23, %s276_s27  ;;  %264 = vst [vmem:[%s403_s1 + $0xa] sm:$0x1] %v218_v30 }
  0x18   :  { %123 = vrot.lane.b32.xlu1 %v251_v26, %s277_s6  ;;  %115 = vrot.lane.b32.xlu0 %v114_v27, %s277_s6 }
  0x1c   :  { %142 = vrot.lane.b32.xlu1 %v254_v31, %s278_s0  ;;  %134 = vrot.lane.b32.xlu0 %v133_v32, %s278_s0 }
  0x76   :  { %v40_v33 = vpop.permute.xlu1 %39   ;;  %v21_v34 = vpop.permute.xlu0 %20  }
  0x77   :  { %23 = vst.msk [vmem:[#allocation0] ss:$8 sm:$0xf] %vm22_vm2, %v21_v34   ;;  %24 = vst.msk [vmem:[#allocation0] ss:$8 sm:$0xf0] %vm22_vm2, %v21_v34  }
  0x78   :  { %42 = vst.msk [vmem:[#allocation0] ss:$8 sm:$0xf] %vm41_vm3, %v40_v33   ;;  %43 = vst.msk [vmem:[#allocation0] ss:$8 sm:$0xf0] %vm41_vm3, %v40_v33  }
  0x7a   :  { %v48_v35 = vpop.permute.xlu1 %47   ;;  %v29_v36 = vpop.permute.xlu0 %28  }
  0x7b   :  { %32 = vst.msk [vmem:[#allocation0 + $0x40] ss:$8 sm:$0x3] %vm22_vm2, %v29_v36  }
  0x7c   :  { %51 = vst.msk [vmem:[#allocation0 + $0x40] ss:$8 sm:$0x3] %vm41_vm3, %v48_v35  }
  0x7e   :  { %v67_v37 = vpop.permute.xlu1 %66   ;;  %v59_v38 = vpop.permute.xlu0 %58  }
  0x7f   :  { %70 = vst.msk [vmem:[#allocation0 + $0x40] ss:$8 sm:$0x3] %vm60_vm4, %v67_v37   ;;  %61 = vst.msk [vmem:[#allocation0] ss:$8 sm:$0xf] %vm60_vm4, %v59_v38  }
  0x80   :  { %62 = vst.msk [vmem:[#allocation0] ss:$8 sm:$0xf0] %vm60_vm4, %v59_v38  }
  0x82   :  { %v86_v39 = vpop.permute.xlu1 %85   ;;  %v78_v40 = vpop.permute.xlu0 %77  }
  0x83   :  { %89 = vst.msk [vmem:[#allocation0 + $0x40] ss:$8 sm:$0x3] %vm79_vm5, %v86_v39   ;;  %80 = vst.msk [vmem:[#allocation0] ss:$8 sm:$0xf] %vm79_vm5, %v78_v40  }
  0x84   :  { %81 = vst.msk [vmem:[#allocation0] ss:$8 sm:$0xf0] %vm79_vm5, %v78_v40  }
  0x86   :  { %v105_v41 = vpop.permute.xlu1 %104   ;;  %v97_v42 = vpop.permute.xlu0 %96  }
  0x87   :  { %108 = vst.msk [vmem:[#allocation0 + $0x40] ss:$8 sm:$0x3] %vm98_vm6, %v105_v41   ;;  %99 = vst.msk [vmem:[#allocation0] ss:$8 sm:$0xf] %vm98_vm6, %v97_v42  }
  0x88   :  { %100 = vst.msk [vmem:[#allocation0] ss:$8 sm:$0xf0] %vm98_vm6, %v97_v42  }
  0x8a   :  { %v124_v43 = vpop.permute.xlu1 %123   ;;  %v116_v44 = vpop.permute.xlu0 %115  }
  0x8b   :  { %127 = vst.msk [vmem:[#allocation0 + $0x40] ss:$8 sm:$0x3] %vm117_vm7, %v124_v43   ;;  %118 = vst.msk [vmem:[#allocation0] ss:$8 sm:$0xf] %vm117_vm7, %v116_v44  }
  0x8c   :  { %119 = vst.msk [vmem:[#allocation0] ss:$8 sm:$0xf0] %vm117_vm7, %v116_v44  }
  0x8e   :  { %v143_v45 = vpop.permute.xlu1 %142   ;;  %v135_v46 = vpop.permute.xlu0 %134  }
  0x8f   :  { %146 = vst.msk [vmem:[#allocation0 + $0x40] ss:$8 sm:$0x3] %vm136_vm8, %v143_v45   ;;  %137 = vst.msk [vmem:[#allocation0] ss:$8 sm:$0xf] %vm136_vm8, %v135_v46  }
  0x90   :  { %138 = vst.msk [vmem:[#allocation0] ss:$8 sm:$0xf0] %vm136_vm8, %v135_v46  }
  0x96   :  { %v204_v47 = vld [vmem:[#allocation0 + $0x40] sm:$0x1]  ;;  %v211_v48 = vld [vmem:[#allocation0 + $0x48] sm:$0x1]  ;;  %v162_v51 = vld [vmem:[#allocation0 + $0x10] sm:$0x1] }
  0x97   :  { %262 = vst [vmem:[%s403_s1 + $0x8] sm:$0x1] %v204_v47  ;;  %263 = vst [vmem:[%s403_s1 + $0x9] sm:$0x1] %v211_v48  ;;  %v151_v49 = vld [vmem:[#allocation0] sm:$0x1] }
  0x98   :  { %v156_v50 = vld [vmem:[#allocation0 + $0x8] sm:$0x1]  ;;  %154 = vst [vmem:[%s403_s1] sm:$0x1] %v151_v49  ;;  %256 = vst [vmem:[%s403_s1 + $0x2] sm:$0x1] %v162_v51 }
  0x99   :  { %255 = vst [vmem:[%s403_s1 + $0x1] sm:$0x1] %v156_v50  ;;  %v169_v52 = vld [vmem:[#allocation0 + $0x18] sm:$0x1]  ;;  %v176_v53 = vld [vmem:[#allocation0 + $0x20] sm:$0x1] }
  0x9a   :  { %v183_v54 = vld [vmem:[#allocation0 + $0x28] sm:$0x1]  ;;  %257 = vst [vmem:[%s403_s1 + $0x3] sm:$0x1] %v169_v52  ;;  %258 = vst [vmem:[%s403_s1 + $0x4] sm:$0x1] %v176_v53 }
  0x9b   :  { %259 = vst [vmem:[%s403_s1 + $0x5] sm:$0x1] %v183_v54  ;;  %v190_v55 = vld [vmem:[#allocation0 + $0x30] sm:$0x1]  ;;  %v197_v56 = vld [vmem:[#allocation0 + $0x38] sm:$0x1] }
  0x9c   :  { %260 = vst [vmem:[%s403_s1 + $0x6] sm:$0x1] %v190_v55  ;;  %261 = vst [vmem:[%s403_s1 + $0x7] sm:$0x1] %v197_v56 }

// kernel: tile.28
= control target key start
LH: loop header
LB: loop body
LE: loop exit
PB: predicated region body
PF: predicated region fallthrough
CT: control target
= control target key end

     0   :  { %s58_s0 = inlined_call_operand.vmem [shape: f32[4], index: 0, kind: input, shape index: {}]   ;;  %s59_s1 = inlined_call_operand.vmem [shape: f32[49,4], index: 1, kind: output, shape index: {}]  }
   0x1   :  { %v4_v0 = vld [vmem:[%s58_s0] ss:$0 sm:$0xff] }
   0x2   :  { %5 = vst [vmem:[%s59_s1] sm:$0xff] %v4_v0  ;;  %18 = vst [vmem:[%s59_s1 + $0x8] sm:$0xff] %v4_v0 }
   0x3   :  { %19 = vst [vmem:[%s59_s1 + $0x10] sm:$0xff] %v4_v0  ;;  %20 = vst [vmem:[%s59_s1 + $0x18] sm:$0xff] %v4_v0 }
   0x4   :  { %21 = vst [vmem:[%s59_s1 + $0x20] sm:$0xff] %v4_v0  ;;  %22 = vst [vmem:[%s59_s1 + $0x28] sm:$0xff] %v4_v0 }
   0x5   :  { %23 = vst [vmem:[%s59_s1 + $0x30] sm:$0xff] %v4_v0 }

// kernel: tile.29
= control target key start
LH: loop header
LB: loop body
LE: loop exit
PB: predicated region body
PF: predicated region fallthrough
CT: control target
= control target key end

     0   :  { %s353_s10 = smov 124   ;;  %s354_s11 = smov 116   ;;  %vm5_vm0 = vcmask 1041409   ;;  %vm7_vm1 = vcmask 31744   ;;  %vm13_vm2 = vcmask 1048544   ;;  %vm19_vm3 = vcmask 1015744   ;;  %s564_s0 = inlined_call_operand.vmem [shape: f32[49,4], index: 0, kind: input, shape index: {}]   ;;  %s565_s1 = inlined_call_operand.vmem [shape: f32[1,196], index: 1, kind: output, shape index: {}]  }
   0x1   :  { %v274_v0 = vld [vmem:[%s564_s0 + $0x1f] sm:$0x1]   ;;  %v276_v1 = vld [vmem:[%s564_s0 + $0x1d] sm:$0x1]   ;;  %v275_v2 = vld [vmem:[%s564_s0 + $0x1e] sm:$0x1]  }
   0x2   :  { %11 = vrot.lane.b32.xlu0 %v274_v0, %s353_s10  ;;  %23 = vrot.lane.b32.xlu1 %v276_v1, %s354_s11  ;;  %v277_v3 = vld [vmem:[%s564_s0 + $0x1c] sm:$0x1]   ;;  %s355_s16 = smov 120   ;;  %s356_s17 = smov 112   ;;  %v278_v4 = vld [vmem:[%s564_s0 + $0x1b] sm:$0x1]  }
   0x3   :  { %v279_v5 = vld [vmem:[%s564_s0 + $0x1a] sm:$0x1]   ;;  %s357_s22 = smov 108   ;;  %s358_s23 = smov 104   ;;  %v280_v6 = vld [vmem:[%s564_s0 + $0x19] sm:$0x1]  }
   0x4   :  { %v281_v7 = vld [vmem:[%s564_s0 + $0x18] sm:$0x1]   ;;  %s359_s28 = smov 100   ;;  %s360_s29 = smov 96   ;;  %v282_v8 = vld [vmem:[%s564_s0 + $0x17] sm:$0x1]  }
   0x5   :  { %v283_v9 = vld [vmem:[%s564_s0 + $0x16] sm:$0x1]   ;;  %s361_s5 = smov 92   ;;  %s362_s6 = smov 88   ;;  %v284_v10 = vld [vmem:[%s564_s0 + $0x15] sm:$0x1]  }
   0x6   :  { %17 = vrot.lane.b32.xlu0 %v275_v2, %s355_s16  ;;  %29 = vrot.lane.b32.xlu1 %v277_v3, %s356_s17  ;;  %v285_v11 = vld [vmem:[%s564_s0 + $0x14] sm:$0x1]   ;;  %s363_s11 = smov 84   ;;  %s364_s12 = smov 80   ;;  %v2_v12 = vld [vmem:[%s564_s0] sm:$0x1]  }
   0x7   :  { %v273_v13 = vld [vmem:[%s564_s0 + $0x1f] sm:$0x2]   ;;  %v286_v14 = vld [vmem:[%s564_s0 + $0x13] sm:$0x1]   ;;  %v287_v15 = vld [vmem:[%s564_s0 + $0x12] sm:$0x1]  }
   0x8   :  { %v6_v16 = vsel %vm5_vm0, %v273_v13, %v2_v12  ;;  %v289_v17 = vld [vmem:[%s564_s0 + $0x10] sm:$0x1]   ;;  %s365_s25 = smov 76   ;;  %s366_s26 = smov 72   ;;  %v288_v19 = vld [vmem:[%s564_s0 + $0x11] sm:$0x1]  }
   0x9   :  { %v290_v18 = vld [vmem:[%s564_s0 + $0x2f] sm:$0x2]   ;;  %8 = vst.msk [vmem:[#allocation0] ss:$8 sm:$0x3] %vm7_vm1, %v6_v16   ;;  %s367_s8 = smov 68  }
   0xa   :  { %35 = vrot.lane.b32.xlu0 %v278_v4, %s357_s22  ;;  %41 = vrot.lane.b32.xlu1 %v279_v5, %s358_s23  ;;  %v104_v20 = vsel %vm5_vm0, %v290_v18, %v289_v17  ;;  %v291_v21 = vld [vmem:[%s564_s0 + $0xf] sm:$0x1]   ;;  %v293_v23 = vld [vmem:[%s564_s0 + $0xe] sm:$0x1]   ;;  %s368_s9 = smov 64   ;;  %s369_s18 = smov 60  }
   0xb   :  { %v292_v22 = vld [vmem:[%s564_s0 + $0x2e] sm:$0x2]   ;;  %v294_v24 = vld [vmem:[%s564_s0 + $0x2d] sm:$0x2]   ;;  %v295_v27 = vld [vmem:[%s564_s0 + $0xd] sm:$0x1]  }
   0xc   :  { %v114_v25 = vsel %vm5_vm0, %v292_v22, %v291_v21  ;;  %v124_v26 = vsel %vm5_vm0, %v294_v24, %v293_v23  ;;  %v296_v28 = vld [vmem:[%s564_s0 + $0x2c] sm:$0x2]   ;;  %v297_v29 = vld [vmem:[%s564_s0 + $0xc] sm:$0x1]   ;;  %s370_s19 = smov 56   ;;  %s374_s10 = smov 40  }
   0xd   :  { %v298_v30 = vld [vmem:[%s564_s0 + $0x2b] sm:$0x2]   ;;  %v134_v31 = vsel %vm5_vm0, %v296_v28, %v295_v27  ;;  %v299_v33 = vld [vmem:[%s564_s0 + $0xb] sm:$0x1]   ;;  %v301_v35 = vld [vmem:[%s564_s0 + $0xa] sm:$0x1]  }
   0xe   :  { %47 = vrot.lane.b32.xlu0 %v280_v6, %s359_s28  ;;  %53 = vrot.lane.b32.xlu1 %v281_v7, %s360_s29  ;;  %v144_v32 = vsel %vm5_vm0, %v298_v30, %v297_v29  ;;  %v300_v34 = vld [vmem:[%s564_s0 + $0x2a] sm:$0x2]   ;;  %v302_v36 = vld [vmem:[%s564_s0 + $0x29] sm:$0x2]   ;;  %s371_s28 = smov 52   ;;  %s372_s29 = smov 48  }
   0xf   :  { %v154_v37 = vsel %vm5_vm0, %v300_v34, %v299_v33  ;;  %v164_v38 = vsel %vm5_vm0, %v302_v36, %v301_v35  ;;  %v303_v39 = vld [vmem:[%s564_s0 + $0x9] sm:$0x1]   ;;  %v305_v41 = vld [vmem:[%s564_s0 + $0x8] sm:$0x1]   ;;  %v307_v45 = vld [vmem:[%s564_s0 + $0x7] sm:$0x1]  }
  0x10   :  { %v304_v40 = vld [vmem:[%s564_s0 + $0x28] sm:$0x2]   ;;  %v306_v42 = vld [vmem:[%s564_s0 + $0x27] sm:$0x2]   ;;  %v308_v46 = vld [vmem:[%s564_s0 + $0x26] sm:$0x2]  }
  0x11   :  { %v174_v43 = vsel %vm5_vm0, %v304_v40, %v303_v39  ;;  %v184_v44 = vsel %vm5_vm0, %v306_v42, %v305_v41  ;;  %v309_v47 = vld [vmem:[%s564_s0 + $0x6] sm:$0x1]   ;;  %s376_s20 = smov 32   ;;  %v194_v49 = vsel %vm5_vm0, %v308_v46, %v307_v45  ;;  %v311_v51 = vld [vmem:[%s564_s0 + $0x5] sm:$0x1]   ;;  %s378_s30 = smov 24  }
  0x12   :  { %59 = vrot.lane.b32.xlu0 %v282_v8, %s361_s5  ;;  %65 = vrot.lane.b32.xlu1 %v283_v9, %s362_s6  ;;  %v310_v48 = vld [vmem:[%s564_s0 + $0x25] sm:$0x2]   ;;  %v312_v52 = vld [vmem:[%s564_s0 + $0x24] sm:$0x2]   ;;  %s382_s16 = smov 8   ;;  %s383_s17 = smov 4  }
  0x13   :  { %v204_v50 = vsel %vm5_vm0, %v310_v48, %v309_v47  ;;  %v313_v53 = vld [vmem:[%s564_s0 + $0x4] sm:$0x1]   ;;  %v214_v55 = vsel %vm5_vm0, %v312_v52, %v311_v51  ;;  %v315_v57 = vld [vmem:[%s564_s0 + $0x3] sm:$0x1]   ;;  %v317_v59 = vld [vmem:[%s564_s0 + $0x2] sm:$0x1]  }
  0x14   :  { %v314_v54 = vld [vmem:[%s564_s0 + $0x23] sm:$0x2]   ;;  %v316_v58 = vld [vmem:[%s564_s0 + $0x22] sm:$0x2]   ;;  %v318_v60 = vld [vmem:[%s564_s0 + $0x21] sm:$0x2]  }
  0x15   :  { %v224_v56 = vsel %vm5_vm0, %v314_v54, %v313_v53  ;;  %v234_v61 = vsel %vm5_vm0, %v316_v58, %v315_v57  ;;  %v244_v62 = vsel %vm5_vm0, %v318_v60, %v317_v59  ;;  %v319_v63 = vld [vmem:[%s564_s0 + $0x1] sm:$0x1]   ;;  %vm25_vm4 = vcmask 982944  }
  0x16   :  { %71 = vrot.lane.b32.xlu0 %v284_v10, %s363_s11  ;;  %77 = vrot.lane.b32.xlu1 %v285_v11, %s364_s12  ;;  %s380_s11 = smov 16   ;;  %v320_v0 = vld [vmem:[%s564_s0 + $0x20] sm:$0x2]   ;;  %s381_s0 = smov 12   ;;  %vm31_vm5 = vcmask 950144   ;;  %vm37_vm6 = vcmask 917344  }
  0x17   :  { %v254_v1 = vsel %vm5_vm0, %v320_v0, %v319_v63  ;;  %vm43_vm7 = vcmask 884544   ;;  %vm49_vm8 = vcmask 851744   ;;  %vm55_vm9 = vcmask 818944  }
  0x18   :  { %vm61_vm10 = vcmask 786144   ;;  %vm67_vm11 = vcmask 753344   ;;  %vm73_vm12 = vcmask 720544   ;;  %vm79_vm13 = vcmask 687744  }
  0x19   :  { %vm85_vm14 = vcmask 654944   ;;  %vm91_vm15 = vcmask 622144   ;;  %vm97_vm0 = vcmask 589344   ;;  %vm107_vm1 = vcmask 556544  }
  0x1a   :  { %83 = vrot.lane.b32.xlu0 %v286_v14, %s365_s25  ;;  %89 = vrot.lane.b32.xlu1 %v287_v15, %s366_s26 }
  0x1e   :  { %95 = vrot.lane.b32.xlu0 %v288_v19, %s367_s8  ;;  %105 = vrot.lane.b32.xlu1 %v104_v20, %s368_s9  ;;  %s373_s9 = smov 44  }
  0x22   :  { %115 = vrot.lane.b32.xlu0 %v114_v25, %s369_s18  ;;  %125 = vrot.lane.b32.xlu1 %v124_v26, %s370_s19  ;;  %s375_s19 = smov 36  }
  0x26   :  { %135 = vrot.lane.b32.xlu0 %v134_v31, %s371_s28  ;;  %145 = vrot.lane.b32.xlu1 %v144_v32, %s372_s29  ;;  %s377_s29 = smov 28  }
  0x2a   :  { %155 = vrot.lane.b32.xlu0 %v154_v37, %s373_s9  ;;  %165 = vrot.lane.b32.xlu1 %v164_v38, %s374_s10  ;;  %s379_s10 = smov 20  }
  0x2e   :  { %175 = vrot.lane.b32.xlu0 %v174_v43, %s375_s19  ;;  %185 = vrot.lane.b32.xlu1 %v184_v44, %s376_s20 }
  0x32   :  { %195 = vrot.lane.b32.xlu0 %v194_v49, %s377_s29  ;;  %205 = vrot.lane.b32.xlu1 %v204_v50, %s378_s30 }
  0x36   :  { %215 = vrot.lane.b32.xlu0 %v214_v55, %s379_s10  ;;  %225 = vrot.lane.b32.xlu1 %v224_v56, %s380_s11 }
  0x3a   :  { %235 = vrot.lane.b32.xlu0 %v234_v61, %s381_s0  ;;  %245 = vrot.lane.b32.xlu1 %v244_v62, %s382_s16 }
  0x3e   :  { %255 = vrot.lane.b32.xlu0 %v254_v1, %s383_s17 }
  0x74   :  { %v12_v2 = vpop.permute.xlu0 %11   ;;  %v24_v3 = vpop.permute.xlu1 %23  }
  0x75   :  { %14 = vst.msk [vmem:[#allocation0] sm:$0x1] %vm13_vm2, %v12_v2   ;;  %vm117_vm2 = vcmask 523744  }
  0x78   :  { %v18_v4 = vpop.permute.xlu0 %17   ;;  %v30_v5 = vpop.permute.xlu1 %29  }
  0x79   :  { %20 = vst.msk [vmem:[#allocation0] sm:$0x1] %vm19_vm3, %v18_v4   ;;  %vm127_vm3 = vcmask 490944  }
  0x7a   :  { %26 = vst.msk [vmem:[#allocation0] sm:$0x1] %vm25_vm4, %v24_v3   ;;  %vm137_vm4 = vcmask 458144  }
  0x7b   :  { %32 = vst.msk [vmem:[#allocation0] sm:$0x1] %vm31_vm5, %v30_v5   ;;  %vm147_vm5 = vcmask 425344  }
  0x7c   :  { %v36_v6 = vpop.permute.xlu0 %35   ;;  %v42_v7 = vpop.permute.xlu1 %41  }
  0x7d   :  { %38 = vst.msk [vmem:[#allocation0] sm:$0x1] %vm37_vm6, %v36_v6   ;;  %vm157_vm6 = vcmask 392544  }
  0x7e   :  { %44 = vst.msk [vmem:[#allocation0] sm:$0x1] %vm43_vm7, %v42_v7   ;;  %vm167_vm7 = vcmask 359744  }
  0x80   :  { %v48_v8 = vpop.permute.xlu0 %47   ;;  %v54_v9 = vpop.permute.xlu1 %53  }
  0x81   :  { %50 = vst.msk [vmem:[#allocation0] sm:$0x1] %vm49_vm8, %v48_v8   ;;  %vm177_vm8 = vcmask 326944  }
  0x82   :  { %56 = vst.msk [vmem:[#allocation0] sm:$0x1] %vm55_vm9, %v54_v9   ;;  %vm187_vm9 = vcmask 294144  }
  0x84   :  { %v60_v10 = vpop.permute.xlu0 %59   ;;  %v66_v11 = vpop.permute.xlu1 %65  }
  0x85   :  { %62 = vst.msk [vmem:[#allocation0] sm:$0x1] %vm61_vm10, %v60_v10   ;;  %vm197_vm10 = vcmask 261344  }
  0x86   :  { %68 = vst.msk [vmem:[#allocation0] sm:$0x1] %vm67_vm11, %v66_v11   ;;  %vm207_vm11 = vcmask 228544  }
  0x88   :  { %v72_v12 = vpop.permute.xlu0 %71   ;;  %v78_v13 = vpop.permute.xlu1 %77  }
  0x89   :  { %74 = vst.msk [vmem:[#allocation0] sm:$0x1] %vm73_vm12, %v72_v12   ;;  %vm217_vm12 = vcmask 195744  }
  0x8a   :  { %80 = vst.msk [vmem:[#allocation0] sm:$0x1] %vm79_vm13, %v78_v13   ;;  %vm227_vm13 = vcmask 162944  }
  0x8c   :  { %v84_v14 = vpop.permute.xlu0 %83   ;;  %v90_v15 = vpop.permute.xlu1 %89  }
  0x8d   :  { %86 = vst.msk [vmem:[#allocation0] sm:$0x1] %vm85_vm14, %v84_v14   ;;  %vm237_vm14 = vcmask 130144  }
  0x8e   :  { %92 = vst.msk [vmem:[#allocation0] sm:$0x1] %vm91_vm15, %v90_v15   ;;  %vm247_vm15 = vcmask 97344  }
  0x90   :  { %v96_v16 = vpop.permute.xlu0 %95   ;;  %v106_v17 = vpop.permute.xlu1 %105  }
  0x91   :  { %98 = vst.msk [vmem:[#allocation0] sm:$0x1] %vm97_vm0, %v96_v16   ;;  %vm257_vm0 = vcmask 64544  }
  0x92   :  { %108 = vst.msk [vmem:[#allocation0] ss:$8 sm:$0x3] %vm107_vm1, %v106_v17  }
  0x94   :  { %v116_v18 = vpop.permute.xlu0 %115   ;;  %v126_v19 = vpop.permute.xlu1 %125  }
  0x95   :  { %118 = vst.msk [vmem:[#allocation0] ss:$8 sm:$0x3] %vm117_vm2, %v116_v18  }
  0x96   :  { %128 = vst.msk [vmem:[#allocation0] ss:$8 sm:$0x3] %vm127_vm3, %v126_v19  }
  0x98   :  { %v136_v20 = vpop.permute.xlu0 %135   ;;  %v146_v21 = vpop.permute.xlu1 %145  }
  0x99   :  { %138 = vst.msk [vmem:[#allocation0] ss:$8 sm:$0x3] %vm137_vm4, %v136_v20  }
  0x9a   :  { %148 = vst.msk [vmem:[#allocation0] ss:$8 sm:$0x3] %vm147_vm5, %v146_v21  }
  0x9c   :  { %v156_v22 = vpop.permute.xlu0 %155   ;;  %v166_v23 = vpop.permute.xlu1 %165  }
  0x9d   :  { %158 = vst.msk [vmem:[#allocation0] ss:$8 sm:$0x3] %vm157_vm6, %v156_v22  }
  0x9e   :  { %168 = vst.msk [vmem:[#allocation0] ss:$8 sm:$0x3] %vm167_vm7, %v166_v23  }
  0xa0   :  { %v176_v24 = vpop.permute.xlu0 %175   ;;  %v186_v25 = vpop.permute.xlu1 %185  }
  0xa1   :  { %178 = vst.msk [vmem:[#allocation0] ss:$8 sm:$0x3] %vm177_vm8, %v176_v24  }
  0xa2   :  { %188 = vst.msk [vmem:[#allocation0] ss:$8 sm:$0x3] %vm187_vm9, %v186_v25  }
  0xa4   :  { %v196_v26 = vpop.permute.xlu0 %195   ;;  %v206_v27 = vpop.permute.xlu1 %205  }
  0xa5   :  { %198 = vst.msk [vmem:[#allocation0] ss:$8 sm:$0x3] %vm197_vm10, %v196_v26  }
  0xa6   :  { %208 = vst.msk [vmem:[#allocation0] ss:$8 sm:$0x3] %vm207_vm11, %v206_v27  }
  0xa8   :  { %v216_v28 = vpop.permute.xlu0 %215   ;;  %v226_v29 = vpop.permute.xlu1 %225  }
  0xa9   :  { %218 = vst.msk [vmem:[#allocation0] ss:$8 sm:$0x3] %vm217_vm12, %v216_v28  }
  0xaa   :  { %228 = vst.msk [vmem:[#allocation0] ss:$8 sm:$0x3] %vm227_vm13, %v226_v29  }
  0xac   :  { %v236_v30 = vpop.permute.xlu0 %235   ;;  %v246_v31 = vpop.permute.xlu1 %245  }
  0xad   :  { %238 = vst.msk [vmem:[#allocation0] ss:$8 sm:$0x3] %vm237_vm14, %v236_v30  }
  0xae   :  { %248 = vst.msk [vmem:[#allocation0] ss:$8 sm:$0x3] %vm247_vm15, %v246_v31  }
  0xb0   :  { %v256_v32 = vpop.permute.xlu0 %255  }
  0xb1   :  { %258 = vst.msk [vmem:[#allocation0] ss:$8 sm:$0x3] %vm257_vm0, %v256_v32  }
  0xb8   :  { %v263_v33 = vld [vmem:[#allocation0] sm:$0x1]  ;;  %v268_v34 = vld [vmem:[#allocation0 + $0x8] sm:$0x1] }
  0xb9   :  { %266 = vst [vmem:[%s565_s1] sm:$0x1] %v263_v33  ;;  %321 = vst [vmem:[%s565_s1 + $0x1] sm:$0x1] %v268_v34 }

// kernel: conv_ae_forward.1
= control target key start
LH: loop header
LB: loop body
LE: loop exit
PB: predicated region body
PF: predicated region fallthrough
CT: control target
= control target key end

     0   :  { %vm2459_vm0 = vcmask 130048   ;;  %vm3640_vm1 = vcmask 1041408   ;;  %vm3636_vm2 = vcmask 556032   ;;  %s8985_s1 = inlined_call_operand.vmem [shape: bf16[256,1296], index: 1, kind: input, shape index: {}]   ;;  %s8986_s0 = inlined_call_operand.vmem [shape: f32[16,256], index: 0, kind: input, shape index: {}]   ;;  %s8987_s3 = inlined_call_operand.vmem [shape: bf16[1296,196], index: 3, kind: input, shape index: {}]   ;;  %s8988_s2 = inlined_call_operand.vmem [shape: f32[1,1296], index: 2, kind: input, shape index: {}]   ;;  %s8989_s5 = inlined_call_operand.vmem [shape: bf16[196,1296], index: 5, kind: input, shape index: {}]   ;;  %s8990_s4 = inlined_call_operand.vmem [shape: f32[1,196], index: 4, kind: input, shape index: {}]   ;;  %s8991_s7 = inlined_call_operand.vmem [shape: bf16[1296,256], index: 7, kind: input, shape index: {}]   ;;  %s8992_s6 = inlined_call_operand.vmem [shape: f32[1,1296], index: 6, kind: input, shape index: {}]   ;;  %s8993_s8 = inlined_call_operand.vmem [shape: f32[1,256], index: 8, kind: input, shape index: {}]   ;;  %s8994_s9 = inlined_call_operand.vmem [shape: f32[16,256], index: 9, kind: output, shape index: {}]  }
   0x1   :  { %v5895_v0 = vld [vmem:[%s8985_s1 + $0x26c] ss:$44 sps:$4 sm:$0xff]   ;;  %v5897_v1 = vld [vmem:[%s8985_s1 + $0x268] ss:$44 sps:$4 sm:$0xff]   ;;  %v5900_v3 = vld [vmem:[%s8985_s1 + $0x270] ss:$44 sps:$4 sm:$0xff]  }
   0x2   :  { %1186 = vmatprep.subr.bf16.mxu0 %v5895_v0  ;;  %v5898_v2 = vld [vmem:[%s8985_s1 + $0x274] ss:$44 sps:$4 sm:$0xff]   ;;  %v5903_v5 = vld [vmem:[%s8985_s1 + $0x210] ss:$44 sps:$4 sm:$0xff]   ;;  %v5906_v7 = vld [vmem:[%s8985_s1 + $0x218] ss:$44 sps:$4 sm:$0xff]  }
   0x3   :  { %1187 = vmatpush1.bf16.msra.mxu0 %v5897_v1  ;;  %v5901_v4 = vld [vmem:[%s8985_s1 + $0x214] ss:$44 sps:$4 sm:$0xff]   ;;  %1229 = vmatprep.subr.bf16.mxu1 %v5898_v2  ;;  %v5904_v6 = vld [vmem:[%s8985_s1 + $0x21c] ss:$44 sps:$4 sm:$0xff]   ;;  %v5909_v9 = vld [vmem:[%s8985_s1 + $0x1b8] ss:$44 sps:$4 sm:$0xff]  }
   0x4   :  { %1230 = vmatpush1.bf16.msra.mxu1 %v5900_v3  ;;  %1188 = vmatprep.subr.bf16.mxu0 %v5901_v4  ;;  %v5907_v8 = vld [vmem:[%s8985_s1 + $0x1bc] ss:$44 sps:$4 sm:$0xff]   ;;  %v5910_v10 = vld [vmem:[%s8985_s1 + $0x1c4] ss:$44 sps:$4 sm:$0xff]   ;;  %v5912_v12 = vld [vmem:[%s8985_s1 + $0x1c0] ss:$44 sps:$4 sm:$0xff]  }
   0x5   :  { %1231 = vmatprep.subr.bf16.mxu1 %v5904_v6  ;;  %v5913_v11 = vld [vmem:[%s8985_s1 + $0x164] ss:$44 sps:$4 sm:$0xff]   ;;  %v5916_v13 = vld [vmem:[%s8985_s1 + $0x16c] ss:$44 sps:$4 sm:$0xff]   ;;  %v5918_v16 = vld [vmem:[%s8985_s1 + $0x168] ss:$44 sps:$4 sm:$0xff]  }
   0x6   :  { %v5915_v14 = vld [vmem:[%s8985_s1 + $0x160] ss:$44 sps:$4 sm:$0xff]   ;;  %v5921_v18 = vld [vmem:[%s8985_s1 + $0x108] ss:$44 sps:$4 sm:$0xff]   ;;  %v5924_v20 = vld [vmem:[%s8985_s1 + $0x110] ss:$44 sps:$4 sm:$0xff]  }
   0x7   :  { %1189 = vmatpush1.bf16.msra.mxu0 %v5903_v5  ;;  %v5919_v15 = vld [vmem:[%s8985_s1 + $0x10c] ss:$44 sps:$4 sm:$0xff]   ;;  %v5922_v17 = vld [vmem:[%s8985_s1 + $0x114] ss:$44 sps:$4 sm:$0xff]   ;;  %v5928_v21 = vld [vmem:[%s8985_s1 + $0xbc] ss:$44 sps:$4 sm:$0xff]  }
   0x8   :  { %1190 = vmatprep.subr.bf16.mxu0 %v5907_v8  ;;  %1232 = vmatpush1.bf16.msra.mxu1 %v5906_v7  ;;  %v5925_v19 = vld [vmem:[%s8985_s1 + $0xb4] ss:$44 sps:$4 sm:$0xff]   ;;  %v5927_v22 = vld [vmem:[%s8985_s1 + $0xb0] ss:$44 sps:$4 sm:$0xff]   ;;  %v5930_v24 = vld [vmem:[%s8985_s1 + $0xb8] ss:$44 sps:$4 sm:$0xff]  }
   0x9   :  { %1233 = vmatprep.subr.bf16.mxu1 %v5910_v10  ;;  %v5931_v23 = vld [vmem:[%s8985_s1 + $0x5c] ss:$44 sps:$4 sm:$0xff]   ;;  %v5934_v25 = vld [vmem:[%s8985_s1 + $0x64] ss:$44 sps:$4 sm:$0xff]   ;;  %v5936_v28 = vld [vmem:[%s8985_s1 + $0x60] ss:$44 sps:$4 sm:$0xff]  }
   0xa   :  { %v5933_v26 = vld [vmem:[%s8985_s1 + $0x58] ss:$44 sps:$4 sm:$0xff]   ;;  %v5939_v30 = vld [vmem:[%s8985_s1] ss:$44 sps:$4 sm:$0xff]   ;;  %v5942_v32 = vld [vmem:[%s8985_s1 + $0x8] ss:$44 sps:$4 sm:$0xff]  }
   0xb   :  { %1191 = vmatpush1.bf16.msra.mxu0 %v5909_v9  ;;  %v5937_v27 = vld [vmem:[%s8985_s1 + $0x4] ss:$44 sps:$4 sm:$0xff]   ;;  %v5940_v29 = vld [vmem:[%s8985_s1 + $0xc] ss:$44 sps:$4 sm:$0xff]   ;;  %v5946_v33 = vld [vmem:[%s8985_s1 + $0x534] ss:$44 sps:$4 sm:$0xff]  }
   0xc   :  { %1192 = vmatprep.subr.bf16.mxu0 %v5913_v11  ;;  %1234 = vmatpush1.bf16.msra.mxu1 %v5912_v12  ;;  %v5943_v31 = vld [vmem:[%s8985_s1 + $0x52c] ss:$44 sps:$4 sm:$0xff]   ;;  %v5945_v34 = vld [vmem:[%s8985_s1 + $0x528] ss:$44 sps:$4 sm:$0xff]   ;;  %v5948_v36 = vld [vmem:[%s8985_s1 + $0x530] ss:$44 sps:$4 sm:$0xff]  }
   0xd   :  { %1235 = vmatprep.subr.bf16.mxu1 %v5916_v13  ;;  %v5949_v35 = vld [vmem:[%s8985_s1 + $0x4d4] ss:$44 sps:$4 sm:$0xff]   ;;  %v5952_v37 = vld [vmem:[%s8985_s1 + $0x4dc] ss:$44 sps:$4 sm:$0xff]   ;;  %v5954_v40 = vld [vmem:[%s8985_s1 + $0x4d8] ss:$44 sps:$4 sm:$0xff]  }
   0xe   :  { %v5951_v38 = vld [vmem:[%s8985_s1 + $0x4d0] ss:$44 sps:$4 sm:$0xff]   ;;  %v5957_v42 = vld [vmem:[%s8985_s1 + $0x478] ss:$44 sps:$4 sm:$0xff]   ;;  %v5960_v44 = vld [vmem:[%s8985_s1 + $0x480] ss:$44 sps:$4 sm:$0xff]  }
   0xf   :  { %1193 = vmatpush1.bf16.msra.mxu0 %v5915_v14  ;;  %v5955_v39 = vld [vmem:[%s8985_s1 + $0x47c] ss:$44 sps:$4 sm:$0xff]   ;;  %v5958_v41 = vld [vmem:[%s8985_s1 + $0x484] ss:$44 sps:$4 sm:$0xff]   ;;  %v5964_v45 = vld [vmem:[%s8985_s1 + $0x42c] ss:$44 sps:$4 sm:$0xff]  }
  0x10   :  { %1194 = vmatprep.subr.bf16.mxu0 %v5919_v15  ;;  %1236 = vmatpush1.bf16.msra.mxu1 %v5918_v16  ;;  %v5961_v43 = vld [vmem:[%s8985_s1 + $0x424] ss:$44 sps:$4 sm:$0xff]   ;;  %v34_v46 = vld [vmem:[%s8986_s0 + $0x8] sm:$0xff]  ;;  %v36_v47 = vld [vmem:[%s8986_s0 + $0x18] sm:$0xff] }
  0x11   :  { %1237 = vmatprep.subr.bf16.mxu1 %v5922_v17  ;;  %v5963_v48 = vld [vmem:[%s8985_s1 + $0x420] ss:$44 sps:$4 sm:$0xff]   ;;  %v7038_v49 = vpack.c.bf16 %v36_v47, %v34_v46  ;;  %v5966_v51 = vld [vmem:[%s8985_s1 + $0x428] ss:$44 sps:$4 sm:$0xff]   ;;  %v5972_v55 = vld [vmem:[%s8985_s1 + $0x3d0] ss:$44 sps:$4 sm:$0xff]  }
  0x12   :  { %v5967_v50 = vld [vmem:[%s8985_s1 + $0x3cc] ss:$44 sps:$4 sm:$0xff]   ;;  %v5970_v52 = vld [vmem:[%s8985_s1 + $0x3d4] ss:$44 sps:$4 sm:$0xff]   ;;  %v5976_v56 = vld [vmem:[%s8985_s1 + $0x37c] ss:$44 sps:$4 sm:$0xff]  }
  0x13   :  { %1195 = vmatpush1.bf16.msra.mxu0 %v5921_v18  ;;  %1218 = vmatprep.mubr.bf16.mxu0 %v7038_v49  ;;  %v5969_v53 = vld [vmem:[%s8985_s1 + $0x3c8] ss:$44 sps:$4 sm:$0xff]   ;;  %v5975_v57 = vld [vmem:[%s8985_s1 + $0x370] ss:$44 sps:$4 sm:$0xff]   ;;  %v5978_v59 = vld [vmem:[%s8985_s1 + $0x378] ss:$44 sps:$4 sm:$0xff]  }
  0x14   :  { %1196 = vmatprep.subr.bf16.mxu0 %v5925_v19  ;;  %1238 = vmatpush1.bf16.msra.mxu1 %v5924_v20  ;;  %v5973_v54 = vld [vmem:[%s8985_s1 + $0x374] ss:$44 sps:$4 sm:$0xff]   ;;  %v5979_v58 = vld [vmem:[%s8985_s1 + $0x31c] ss:$44 sps:$4 sm:$0xff]   ;;  %v5982_v60 = vld [vmem:[%s8985_s1 + $0x324] ss:$44 sps:$4 sm:$0xff]  }
  0x15   :  { %1239 = vmatprep.subr.bf16.mxu1 %v5928_v21  ;;  %1261 = vmatprep.mubr.bf16.mxu1 %v7038_v49  ;;  %v5981_v61 = vld [vmem:[%s8985_s1 + $0x318] ss:$44 sps:$4 sm:$0xff]   ;;  %v5984_v63 = vld [vmem:[%s8985_s1 + $0x320] ss:$44 sps:$4 sm:$0xff]   ;;  %v35_v3 = vld [vmem:[%s8986_s0 + $0x10] sm:$0xff] }
  0x16   :  { %v5985_v62 = vld [vmem:[%s8985_s1 + $0x2c4] ss:$44 sps:$4 sm:$0xff]   ;;  %v5987_v0 = vld [vmem:[%s8985_s1 + $0x2c0] ss:$44 sps:$4 sm:$0xff]   ;;  %v5993_v4 = vld [vmem:[%s8985_s1 + $0x27c] ss:$44 sps:$4 sm:$0xff]  }
  0x17   :  { %1197 = vmatpush1.bf16.msra.mxu0 %v5927_v22  ;;  %v5988_v1 = vld [vmem:[%s8985_s1 + $0x2cc] ss:$44 sps:$4 sm:$0xff]   ;;  %v33_v2 = vld [vmem:[%s8986_s0] sm:$0xff]  ;;  %v5990_v5 = vld [vmem:[%s8985_s1 + $0x2c8] ss:$44 sps:$4 sm:$0xff]  }
  0x18   :  { %1198 = vmatprep.subr.bf16.mxu0 %v5931_v23  ;;  %1240 = vmatpush1.bf16.msra.mxu1 %v5930_v24  ;;  %v7102_v6 = vpack.c.bf16 %v35_v3, %v33_v2  ;;  %v5996_v7 = vld [vmem:[%s8985_s1 + $0x284] ss:$44 sps:$4 sm:$0xff]   ;;  %v5994_v10 = vld [vmem:[%s8985_s1 + $0x280] ss:$44 sps:$4 sm:$0xff]   ;;  %v6000_v14 = vld [vmem:[%s8985_s1 + $0x228] ss:$44 sps:$4 sm:$0xff]  }
  0x19   :  { %1241 = vmatprep.subr.bf16.mxu1 %v5934_v25  ;;  %v5991_v8 = vld [vmem:[%s8985_s1 + $0x278] ss:$44 sps:$4 sm:$0xff]   ;;  %v5997_v12 = vld [vmem:[%s8985_s1 + $0x220] ss:$44 sps:$4 sm:$0xff]   ;;  %v6003_v16 = vld [vmem:[%s8985_s1 + $0x1c8] ss:$44 sps:$4 sm:$0xff]  }
  0x1a   :  { %v5999_v9 = vld [vmem:[%s8985_s1 + $0x224] ss:$44 sps:$4 sm:$0xff]   ;;  %v6002_v11 = vld [vmem:[%s8985_s1 + $0x22c] ss:$44 sps:$4 sm:$0xff]   ;;  %v6008_v15 = vld [vmem:[%s8985_s1 + $0x1d4] ss:$44 sps:$4 sm:$0xff]  }
  0x1b   :  { %1199 = vmatpush1.bf16.msra.mxu0 %v5933_v26  ;;  %v6005_v13 = vld [vmem:[%s8985_s1 + $0x1cc] ss:$44 sps:$4 sm:$0xff]   ;;  %v6011_v17 = vld [vmem:[%s8985_s1 + $0x174] ss:$44 sps:$4 sm:$0xff]   ;;  %v6006_v18 = vld [vmem:[%s8985_s1 + $0x1d0] ss:$44 sps:$4 sm:$0xff]  }
  0x1c   :  { %1200 = vmatprep.subr.bf16.mxu0 %v5937_v27  ;;  %1242 = vmatpush1.bf16.msra.mxu1 %v5936_v28  ;;  %v6014_v19 = vld [vmem:[%s8985_s1 + $0x17c] ss:$44 sps:$4 sm:$0xff]   ;;  %v6012_v22 = vld [vmem:[%s8985_s1 + $0x178] ss:$44 sps:$4 sm:$0xff]   ;;  %v6018_v26 = vld [vmem:[%s8985_s1 + $0x120] ss:$44 sps:$4 sm:$0xff]  }
  0x1d   :  { %1243 = vmatprep.subr.bf16.mxu1 %v5940_v29  ;;  %v6009_v20 = vld [vmem:[%s8985_s1 + $0x170] ss:$44 sps:$4 sm:$0xff]   ;;  %v6015_v24 = vld [vmem:[%s8985_s1 + $0x118] ss:$44 sps:$4 sm:$0xff]   ;;  %v6021_v28 = vld [vmem:[%s8985_s1 + $0xc0] ss:$44 sps:$4 sm:$0xff]  }
  0x1e   :  { %v6017_v21 = vld [vmem:[%s8985_s1 + $0x11c] ss:$44 sps:$4 sm:$0xff]   ;;  %v6020_v23 = vld [vmem:[%s8985_s1 + $0x124] ss:$44 sps:$4 sm:$0xff]   ;;  %v6026_v27 = vld [vmem:[%s8985_s1 + $0xcc] ss:$44 sps:$4 sm:$0xff]  }
  0x1f   :  { %1201 = vmatpush1.bf16.msra.mxu0 %v5939_v30  ;;  %v6023_v25 = vld [vmem:[%s8985_s1 + $0xc4] ss:$44 sps:$4 sm:$0xff]   ;;  %v6029_v29 = vld [vmem:[%s8985_s1 + $0x6c] ss:$44 sps:$4 sm:$0xff]   ;;  %v6024_v30 = vld [vmem:[%s8985_s1 + $0xc8] ss:$44 sps:$4 sm:$0xff]  }
  0x20   :  { %1202 = vmatprep.subr.bf16.mxu0 %v5943_v31  ;;  %1244 = vmatpush1.bf16.msra.mxu1 %v5942_v32  ;;  %v6032_v31 = vld [vmem:[%s8985_s1 + $0x74] ss:$44 sps:$4 sm:$0xff]   ;;  %v6078_v3 = vld [vmem:[%s8985_s1 + $0x330] ss:$44 sps:$4 sm:$0xff]  }
  0x21   :  { %1245 = vmatprep.subr.bf16.mxu1 %v5946_v33  ;;  %v6027_v32 = vld [vmem:[%s8985_s1 + $0x68] ss:$44 sps:$4 sm:$0xff]  }
  0x22   :  { %v6035_v33 = vld [vmem:[%s8985_s1 + $0x14] ss:$44 sps:$4 sm:$0xff]  }
  0x23   :  { %1203 = vmatpush2.bf16.msra.mxu0 %v5945_v34  ;;  %v6030_v34 = vld [vmem:[%s8985_s1 + $0x70] ss:$44 sps:$4 sm:$0xff]   ;;  %v6048_v46 = vld [vmem:[%s8985_s1 + $0x4e8] ss:$44 sps:$4 sm:$0xff]  }
  0x24   :  { %1204 = vmatprep.subr.bf16.mxu0 %v5949_v35  ;;  %1246 = vmatpush2.bf16.msra.mxu1 %v5948_v36  ;;  %v6038_v35 = vld [vmem:[%s8985_s1 + $0x1c] ss:$44 sps:$4 sm:$0xff]   ;;  %v6056_v47 = vld [vmem:[%s8985_s1 + $0x494] ss:$44 sps:$4 sm:$0xff]  }
  0x25   :  { %1247 = vmatprep.subr.bf16.mxu1 %v5952_v37  ;;  %v6033_v36 = vld [vmem:[%s8985_s1 + $0x10] ss:$44 sps:$4 sm:$0xff]   ;;  %v6083_v2 = vld [vmem:[%s8985_s1 + $0x2d4] ss:$44 sps:$4 sm:$0xff]  }
  0x26   :  { %v6041_v37 = vld [vmem:[%s8985_s1 + $0x53c] ss:$44 sps:$4 sm:$0xff]  }
  0x27   :  { %1205 = vmatpush2.bf16.msra.mxu0 %v5951_v38  ;;  %v6036_v38 = vld [vmem:[%s8985_s1 + $0x18] ss:$44 sps:$4 sm:$0xff]  }
  0x28   :  { %1206 = vmatprep.subr.bf16.mxu0 %v5955_v39  ;;  %1248 = vmatpush2.bf16.msra.mxu1 %v5954_v40  ;;  %v6044_v39 = vld [vmem:[%s8985_s1 + $0x544] ss:$44 sps:$4 sm:$0xff]  }
  0x29   :  { %1249 = vmatprep.subr.bf16.mxu1 %v5958_v41  ;;  %v6039_v40 = vld [vmem:[%s8985_s1 + $0x538] ss:$44 sps:$4 sm:$0xff]  }
  0x2a   :  { %v6047_v41 = vld [vmem:[%s8985_s1 + $0x4e4] ss:$44 sps:$4 sm:$0xff]  }
  0x2b   :  { %1207 = vmatpush2.bf16.msra.mxu0 %v5957_v42  ;;  %v6042_v42 = vld [vmem:[%s8985_s1 + $0x540] ss:$44 sps:$4 sm:$0xff]  }
  0x2c   :  { %1208 = vmatprep.subr.bf16.mxu0 %v5961_v43  ;;  %1250 = vmatpush2.bf16.msra.mxu1 %v5960_v44  ;;  %v6050_v43 = vld [vmem:[%s8985_s1 + $0x4ec] ss:$44 sps:$4 sm:$0xff]  }
  0x2d   :  { %1251 = vmatprep.subr.bf16.mxu1 %v5964_v45  ;;  %v6045_v44 = vld [vmem:[%s8985_s1 + $0x4e0] ss:$44 sps:$4 sm:$0xff]  }
  0x2e   :  { %v6053_v45 = vld [vmem:[%s8985_s1 + $0x48c] ss:$44 sps:$4 sm:$0xff]  }
  0x2f   :  { %1209 = vmatpush2.bf16.msra.mxu0 %v5963_v48  ;;  %v6051_v48 = vld [vmem:[%s8985_s1 + $0x488] ss:$44 sps:$4 sm:$0xff]  }
  0x30   :  { %1210 = vmatprep.subr.bf16.mxu0 %v5967_v50  ;;  %1252 = vmatpush2.bf16.msra.mxu1 %v5966_v51  ;;  %v6059_v50 = vld [vmem:[%s8985_s1 + $0x434] ss:$44 sps:$4 sm:$0xff]   ;;  %v6054_v51 = vld [vmem:[%s8985_s1 + $0x490] ss:$44 sps:$4 sm:$0xff]  }
  0x31   :  { %1253 = vmatprep.subr.bf16.mxu1 %v5970_v52  ;;  %v6062_v52 = vld [vmem:[%s8985_s1 + $0x43c] ss:$44 sps:$4 sm:$0xff]  }
  0x33   :  { %1211 = vmatpush2.bf16.msra.mxu0 %v5969_v53  ;;  %v6057_v53 = vld [vmem:[%s8985_s1 + $0x430] ss:$44 sps:$4 sm:$0xff]  }
  0x34   :  { %1212 = vmatprep.subr.bf16.mxu0 %v5973_v54  ;;  %1254 = vmatpush2.bf16.msra.mxu1 %v5972_v55  ;;  %v6065_v54 = vld [vmem:[%s8985_s1 + $0x3dc] ss:$44 sps:$4 sm:$0xff]   ;;  %v6060_v55 = vld [vmem:[%s8985_s1 + $0x438] ss:$44 sps:$4 sm:$0xff]  }
  0x35   :  { %1255 = vmatprep.subr.bf16.mxu1 %v5976_v56  ;;  %v6068_v56 = vld [vmem:[%s8985_s1 + $0x3e4] ss:$44 sps:$4 sm:$0xff]  }
  0x37   :  { %1213 = vmatpush2.bf16.msra.mxu0 %v5975_v57  ;;  %v6063_v57 = vld [vmem:[%s8985_s1 + $0x3d8] ss:$44 sps:$4 sm:$0xff]  }
  0x38   :  { %1214 = vmatprep.subr.bf16.mxu0 %v5979_v58  ;;  %1256 = vmatpush2.bf16.msra.mxu1 %v5978_v59  ;;  %v6071_v58 = vld [vmem:[%s8985_s1 + $0x384] ss:$44 sps:$4 sm:$0xff]   ;;  %v6066_v59 = vld [vmem:[%s8985_s1 + $0x3e0] ss:$44 sps:$4 sm:$0xff]  }
  0x39   :  { %1257 = vmatprep.subr.bf16.mxu1 %v5982_v60  ;;  %v6074_v60 = vld [vmem:[%s8985_s1 + $0x38c] ss:$44 sps:$4 sm:$0xff]  }
  0x3b   :  { %1215 = vmatpush2.bf16.msra.mxu0 %v5981_v61  ;;  %v6069_v61 = vld [vmem:[%s8985_s1 + $0x380] ss:$44 sps:$4 sm:$0xff]  }
  0x3c   :  { %1216 = vmatprep.subr.bf16.mxu0 %v5985_v62  ;;  %1258 = vmatpush2.bf16.msra.mxu1 %v5984_v63  ;;  %v6077_v62 = vld [vmem:[%s8985_s1 + $0x32c] ss:$44 sps:$4 sm:$0xff]   ;;  %v6072_v63 = vld [vmem:[%s8985_s1 + $0x388] ss:$44 sps:$4 sm:$0xff]  }
  0x3d   :  { %1259 = vmatprep.subr.bf16.mxu1 %v5988_v1  ;;  %v6075_v1 = vld [vmem:[%s8985_s1 + $0x328] ss:$44 sps:$4 sm:$0xff]  }
  0x3f   :  { %1217 = vmatpush2.bf16.msra.mxu0 %v5987_v0  ;;  %v6080_v0 = vld [vmem:[%s8985_s1 + $0x334] ss:$44 sps:$4 sm:$0xff]  }
  0x40   :  { %1272 = vmatprep.subr.bf16.mxu0 %v5993_v4  ;;  %1260 = vmatpush2.bf16.msra.mxu1 %v5990_v5  ;;  %v6086_v4 = vld [vmem:[%s8985_s1 + $0x2dc] ss:$44 sps:$4 sm:$0xff]  }
  0x41   :  { %1315 = vmatprep.subr.bf16.mxu1 %v5996_v7  ;;  %v6081_v5 = vld [vmem:[%s8985_s1 + $0x2d0] ss:$44 sps:$4 sm:$0xff]   ;;  %v6089_v7 = vld [vmem:[%s8985_s1 + $0x28c] ss:$44 sps:$4 sm:$0xff]  }
  0x42   :  { %1219 = vmatmul.mubr.bf16.vlgmr.msra.gmra.mxu0 %v7102_v6 }
  0x43   :  { %1273 = vmatpush1.bf16.msra.mxu0 %v5991_v8  ;;  %1304 = vmatprep.mubr.bf16.mxu0 %v7038_v49  ;;  %v6084_v8 = vld [vmem:[%s8985_s1 + $0x2d8] ss:$44 sps:$4 sm:$0xff]  }
  0x44   :  { %1262 = vmatmul.mubr.bf16.vlgmr.msra.gmra.mxu1 %v7102_v6  ;;  %1274 = vmatprep.subr.bf16.mxu0 %v5999_v9  ;;  %v6114_v9 = vld [vmem:[%s8985_s1 + $0x550] ss:$44 sps:$4 sm:$0xff]  }
  0x45   :  { %1316 = vmatpush1.bf16.msra.mxu1 %v5994_v10  ;;  %1347 = vmatprep.mubr.bf16.mxu1 %v7038_v49  ;;  %v6087_v10 = vld [vmem:[%s8985_s1 + $0x288] ss:$44 sps:$4 sm:$0xff]  }
  0x46   :  { %1317 = vmatprep.subr.bf16.mxu1 %v6002_v11  ;;  %v6092_v11 = vld [vmem:[%s8985_s1 + $0x234] ss:$44 sps:$4 sm:$0xff]  }
  0x47   :  { %1275 = vmatpush1.bf16.msra.mxu0 %v5997_v12  ;;  %v6115_v12 = vld [vmem:[%s8985_s1 + $0x290] ss:$44 sps:$4 sm:$0xff]  }
  0x48   :  { %1276 = vmatprep.subr.bf16.mxu0 %v6005_v13  ;;  %v6119_v13 = vld [vmem:[%s8985_s1 + $0x4f8] ss:$44 sps:$4 sm:$0xff]  }
  0x49   :  { %1318 = vmatpush1.bf16.msra.mxu1 %v6000_v14  ;;  %v6090_v14 = vld [vmem:[%s8985_s1 + $0x230] ss:$44 sps:$4 sm:$0xff]  }
  0x4a   :  { %1319 = vmatprep.subr.bf16.mxu1 %v6008_v15  ;;  %v6095_v15 = vld [vmem:[%s8985_s1 + $0x1dc] ss:$44 sps:$4 sm:$0xff]  }
  0x4b   :  { %1277 = vmatpush1.bf16.msra.mxu0 %v6003_v16  ;;  %v6120_v16 = vld [vmem:[%s8985_s1 + $0x238] ss:$44 sps:$4 sm:$0xff]  }
  0x4c   :  { %1278 = vmatprep.subr.bf16.mxu0 %v6011_v17  ;;  %v6124_v17 = vld [vmem:[%s8985_s1 + $0x4a0] ss:$44 sps:$4 sm:$0xff]  }
  0x4d   :  { %1320 = vmatpush1.bf16.msra.mxu1 %v6006_v18  ;;  %v6093_v18 = vld [vmem:[%s8985_s1 + $0x1d8] ss:$44 sps:$4 sm:$0xff]  }
  0x4e   :  { %1321 = vmatprep.subr.bf16.mxu1 %v6014_v19  ;;  %v6098_v19 = vld [vmem:[%s8985_s1 + $0x184] ss:$44 sps:$4 sm:$0xff]  }
  0x4f   :  { %1279 = vmatpush1.bf16.msra.mxu0 %v6009_v20  ;;  %v6129_v20 = vld [vmem:[%s8985_s1 + $0x448] ss:$44 sps:$4 sm:$0xff]  }
  0x50   :  { %1280 = vmatprep.subr.bf16.mxu0 %v6017_v21  ;;  %v6096_v21 = vld [vmem:[%s8985_s1 + $0x180] ss:$44 sps:$4 sm:$0xff]  }
  0x51   :  { %1322 = vmatpush1.bf16.msra.mxu1 %v6012_v22  ;;  %v6101_v22 = vld [vmem:[%s8985_s1 + $0x12c] ss:$44 sps:$4 sm:$0xff]  }
  0x52   :  { %1323 = vmatprep.subr.bf16.mxu1 %v6020_v23  ;;  %v6130_v23 = vld [vmem:[%s8985_s1 + $0x188] ss:$44 sps:$4 sm:$0xff]  }
  0x53   :  { %1281 = vmatpush1.bf16.msra.mxu0 %v6015_v24  ;;  %v6134_v24 = vld [vmem:[%s8985_s1 + $0x3f0] ss:$44 sps:$4 sm:$0xff]  }
  0x54   :  { %1282 = vmatprep.subr.bf16.mxu0 %v6023_v25  ;;  %v6099_v25 = vld [vmem:[%s8985_s1 + $0x128] ss:$44 sps:$4 sm:$0xff]  }
  0x55   :  { %1324 = vmatpush1.bf16.msra.mxu1 %v6018_v26  ;;  %v6104_v26 = vld [vmem:[%s8985_s1 + $0xd4] ss:$44 sps:$4 sm:$0xff]  }
  0x56   :  { %1325 = vmatprep.subr.bf16.mxu1 %v6026_v27  ;;  %v6135_v27 = vld [vmem:[%s8985_s1 + $0x130] ss:$44 sps:$4 sm:$0xff]  }
  0x57   :  { %1283 = vmatpush1.bf16.msra.mxu0 %v6021_v28  ;;  %v6139_v28 = vld [vmem:[%s8985_s1 + $0x398] ss:$44 sps:$4 sm:$0xff]  }
  0x58   :  { %1284 = vmatprep.subr.bf16.mxu0 %v6029_v29  ;;  %v6102_v29 = vld [vmem:[%s8985_s1 + $0xd0] ss:$44 sps:$4 sm:$0xff]  }
  0x59   :  { %1326 = vmatpush1.bf16.msra.mxu1 %v6024_v30  ;;  %v6107_v30 = vld [vmem:[%s8985_s1 + $0x7c] ss:$44 sps:$4 sm:$0xff]  }
  0x5a   :  { %1327 = vmatprep.subr.bf16.mxu1 %v6032_v31  ;;  %v6140_v31 = vld [vmem:[%s8985_s1 + $0xd8] ss:$44 sps:$4 sm:$0xff]  }
  0x5b   :  { %1285 = vmatpush1.bf16.msra.mxu0 %v6027_v32  ;;  %v6144_v32 = vld [vmem:[%s8985_s1 + $0x340] ss:$44 sps:$4 sm:$0xff]  }
  0x5c   :  { %1286 = vmatprep.subr.bf16.mxu0 %v6035_v33  ;;  %v6105_v33 = vld [vmem:[%s8985_s1 + $0x78] ss:$44 sps:$4 sm:$0xff]  }
  0x5d   :  { %1328 = vmatpush1.bf16.msra.mxu1 %v6030_v34  ;;  %v6110_v34 = vld [vmem:[%s8985_s1 + $0x24] ss:$44 sps:$4 sm:$0xff]  }
  0x5e   :  { %1329 = vmatprep.subr.bf16.mxu1 %v6038_v35  ;;  %v6145_v35 = vld [vmem:[%s8985_s1 + $0x80] ss:$44 sps:$4 sm:$0xff]  }
  0x5f   :  { %1287 = vmatpush1.bf16.msra.mxu0 %v6033_v36  ;;  %v6149_v36 = vld [vmem:[%s8985_s1 + $0x2e8] ss:$44 sps:$4 sm:$0xff]  }
  0x60   :  { %1288 = vmatprep.subr.bf16.mxu0 %v6041_v37  ;;  %v6108_v37 = vld [vmem:[%s8985_s1 + $0x20] ss:$44 sps:$4 sm:$0xff]  }
  0x61   :  { %1330 = vmatpush1.bf16.msra.mxu1 %v6036_v38  ;;  %v6113_v38 = vld [vmem:[%s8985_s1 + $0x54c] ss:$44 sps:$4 sm:$0xff]  }
  0x62   :  { %1331 = vmatprep.subr.bf16.mxu1 %v6044_v39  ;;  %v6150_v39 = vld [vmem:[%s8985_s1 + $0x28] ss:$44 sps:$4 sm:$0xff]  }
  0x63   :  { %1289 = vmatpush2.bf16.msra.mxu0 %v6039_v40  ;;  %v6153_v40 = vld [vmem:[%s8987_s3 + $0x74] ss:$8 sps:$4 sm:$0xff]  }
  0x64   :  { %1290 = vmatprep.subr.bf16.mxu0 %v6047_v41  ;;  %v6111_v41 = vld [vmem:[%s8985_s1 + $0x548] ss:$44 sps:$4 sm:$0xff]  }
  0x65   :  { %1332 = vmatpush2.bf16.msra.mxu1 %v6042_v42  ;;  %v6118_v42 = vld [vmem:[%s8985_s1 + $0x4f4] ss:$44 sps:$4 sm:$0xff]  }
  0x66   :  { %1333 = vmatprep.subr.bf16.mxu1 %v6050_v43  ;;  %v6151_v43 = vld [vmem:[%s8987_s3 + $0x70] ss:$8 sps:$4 sm:$0xff]  }
  0x67   :  { %1291 = vmatpush2.bf16.msra.mxu0 %v6045_v44  ;;  %v6159_v44 = vld [vmem:[%s8987_s3 + $0x64] ss:$8 sps:$4 sm:$0xff]  }
  0x68   :  { %1292 = vmatprep.subr.bf16.mxu0 %v6053_v45  ;;  %v6116_v45 = vld [vmem:[%s8985_s1 + $0x4f0] ss:$44 sps:$4 sm:$0xff]  }
  0x69   :  { %1334 = vmatpush2.bf16.msra.mxu1 %v6048_v46  ;;  %v6123_v46 = vld [vmem:[%s8985_s1 + $0x49c] ss:$44 sps:$4 sm:$0xff]  }
  0x6a   :  { %1335 = vmatprep.subr.bf16.mxu1 %v6056_v47  ;;  %v6157_v47 = vld [vmem:[%s8987_s3 + $0x60] ss:$8 sps:$4 sm:$0xff]  }
  0x6b   :  { %1293 = vmatpush2.bf16.msra.mxu0 %v6051_v48  ;;  %v6165_v48 = vld [vmem:[%s8987_s3 + $0x54] ss:$8 sps:$4 sm:$0xff]  }
  0x6c   :  { %1294 = vmatprep.subr.bf16.mxu0 %v6059_v50  ;;  %v6121_v50 = vld [vmem:[%s8985_s1 + $0x498] ss:$44 sps:$4 sm:$0xff]  }
  0x6d   :  { %1336 = vmatpush2.bf16.msra.mxu1 %v6054_v51  ;;  %v6128_v51 = vld [vmem:[%s8985_s1 + $0x444] ss:$44 sps:$4 sm:$0xff]  }
  0x6e   :  { %1337 = vmatprep.subr.bf16.mxu1 %v6062_v52  ;;  %v6163_v52 = vld [vmem:[%s8987_s3 + $0x50] ss:$8 sps:$4 sm:$0xff]  }
  0x6f   :  { %1295 = vmatpush2.bf16.msra.mxu0 %v6057_v53  ;;  %v6171_v53 = vld [vmem:[%s8987_s3 + $0x44] ss:$8 sps:$4 sm:$0xff]  }
  0x70   :  { %1296 = vmatprep.subr.bf16.mxu0 %v6065_v54  ;;  %v6126_v54 = vld [vmem:[%s8985_s1 + $0x440] ss:$44 sps:$4 sm:$0xff]  }
  0x71   :  { %1338 = vmatpush2.bf16.msra.mxu1 %v6060_v55  ;;  %v6133_v55 = vld [vmem:[%s8985_s1 + $0x3ec] ss:$44 sps:$4 sm:$0xff]  }
  0x72   :  { %1339 = vmatprep.subr.bf16.mxu1 %v6068_v56  ;;  %v6169_v56 = vld [vmem:[%s8987_s3 + $0x40] ss:$8 sps:$4 sm:$0xff]  }
  0x73   :  { %1297 = vmatpush2.bf16.msra.mxu0 %v6063_v57  ;;  %v6177_v57 = vld [vmem:[%s8987_s3 + $0x34] ss:$8 sps:$4 sm:$0xff]  }
  0x74   :  { %1298 = vmatprep.subr.bf16.mxu0 %v6071_v58  ;;  %v6131_v58 = vld [vmem:[%s8985_s1 + $0x3e8] ss:$44 sps:$4 sm:$0xff]  }
  0x75   :  { %1340 = vmatpush2.bf16.msra.mxu1 %v6066_v59  ;;  %v6138_v59 = vld [vmem:[%s8985_s1 + $0x394] ss:$44 sps:$4 sm:$0xff]  }
  0x76   :  { %1341 = vmatprep.subr.bf16.mxu1 %v6074_v60  ;;  %v6175_v60 = vld [vmem:[%s8987_s3 + $0x30] ss:$8 sps:$4 sm:$0xff]  }
  0x77   :  { %1299 = vmatpush2.bf16.msra.mxu0 %v6069_v61  ;;  %v6183_v61 = vld [vmem:[%s8987_s3 + $0x24] ss:$8 sps:$4 sm:$0xff]  }
  0x78   :  { %1300 = vmatprep.subr.bf16.mxu0 %v6077_v62  ;;  %v6136_v62 = vld [vmem:[%s8985_s1 + $0x390] ss:$44 sps:$4 sm:$0xff]  }
  0x79   :  { %1342 = vmatpush2.bf16.msra.mxu1 %v6072_v63  ;;  %v6143_v63 = vld [vmem:[%s8985_s1 + $0x33c] ss:$44 sps:$4 sm:$0xff]  }
  0x7a   :  { %1343 = vmatprep.subr.bf16.mxu1 %v6080_v0  ;;  %v6181_v0 = vld [vmem:[%s8987_s3 + $0x20] ss:$8 sps:$4 sm:$0xff]  }
  0x7b   :  { %1301 = vmatpush2.bf16.msra.mxu0 %v6075_v1  ;;  %v6189_v1 = vld [vmem:[%s8987_s3 + $0x14] ss:$8 sps:$4 sm:$0xff]  }
  0x7c   :  { %1302 = vmatprep.subr.bf16.mxu0 %v6083_v2  ;;  %v6141_v2 = vld [vmem:[%s8985_s1 + $0x338] ss:$44 sps:$4 sm:$0xff]  }
  0x7d   :  { %1344 = vmatpush2.bf16.msra.mxu1 %v6078_v3  ;;  %v6148_v3 = vld [vmem:[%s8985_s1 + $0x2e4] ss:$44 sps:$4 sm:$0xff]  }
  0x7e   :  { %1345 = vmatprep.subr.bf16.mxu1 %v6086_v4  ;;  %v6187_v4 = vld [vmem:[%s8987_s3 + $0x10] ss:$8 sps:$4 sm:$0xff]  }
  0x7f   :  { %1303 = vmatpush2.bf16.msra.mxu0 %v6081_v5  ;;  %v6195_v5 = vld [vmem:[%s8987_s3 + $0x4] ss:$8 sps:$4 sm:$0xff]  }
  0x80   :  { %1358 = vmatprep.subr.bf16.mxu0 %v6089_v7  ;;  %v6146_v7 = vld [vmem:[%s8985_s1 + $0x2e0] ss:$44 sps:$4 sm:$0xff]  }
  0x81   :  { %1346 = vmatpush2.bf16.msra.mxu1 %v6084_v8  ;;  %v6156_v8 = vld [vmem:[%s8987_s3 + $0x174] ss:$8 sps:$4 sm:$0xff]  }
  0x82   :  { %1305 = vmatmul.mubr.bf16.vlgmr.msra.gmra.mxu0 %v7102_v6  ;;  %5872 = vmatprep.subr.bf16.mxu1 %v6114_v9  ;;  %v6193_v9 = vld [vmem:[%s8987_s3] ss:$8 sps:$4 sm:$0xff]  }
  0x83   :  { %1359 = vmatpush1.bf16.msra.mxu0 %v6087_v10  ;;  %1390 = vmatprep.mubr.bf16.mxu0 %v7038_v49  ;;  %v6201_v10 = vld [vmem:[%s8987_s3 + $0xf4] ss:$8 sps:$4 sm:$0xff]  }
  0x84   :  { %1348 = vmatmul.mubr.bf16.vlgmr.msra.gmra.mxu1 %v7102_v6  ;;  %1360 = vmatprep.subr.bf16.mxu0 %v6092_v11  ;;  %v6154_v11 = vld [vmem:[%s8987_s3 + $0x170] ss:$8 sps:$4 sm:$0xff]  }
  0x85   :  { %5873 = vmatpush3.bf16.msra.mxu1 %v6115_v12  ;;  %1433 = vmatprep.mubr.bf16.mxu1 %v7038_v49  ;;  %v6125_v49 = vld [vmem:[%s8985_s1 + $0x1e0] ss:$44 sps:$4 sm:$0xff]  }
  0x86   :  { %5874 = vmatprep.subr.bf16.mxu1 %v6119_v13  ;;  %v6162_v12 = vld [vmem:[%s8987_s3 + $0x164] ss:$8 sps:$4 sm:$0xff]   ;;  %v6199_v13 = vld [vmem:[%s8987_s3 + $0xf0] ss:$8 sps:$4 sm:$0xff]  }
  0x87   :  { %1361 = vmatpush1.bf16.msra.mxu0 %v6090_v14  ;;  %v6207_v14 = vld [vmem:[%s8987_s3 + $0xe4] ss:$8 sps:$4 sm:$0xff]  }
  0x88   :  { %1362 = vmatprep.subr.bf16.mxu0 %v6095_v15  ;;  %v6160_v15 = vld [vmem:[%s8987_s3 + $0x160] ss:$8 sps:$4 sm:$0xff]  }
  0x89   :  { %5875 = vmatpush3.bf16.msra.mxu1 %v6120_v16  ;;  %v6168_v16 = vld [vmem:[%s8987_s3 + $0x154] ss:$8 sps:$4 sm:$0xff]  }
  0x8a   :  { %5876 = vmatprep.subr.bf16.mxu1 %v6124_v17  ;;  %v6213_v17 = vld [vmem:[%s8987_s3 + $0xd4] ss:$8 sps:$4 sm:$0xff]  }
  0x8b   :  { %1363 = vmatpush1.bf16.msra.mxu0 %v6093_v18  ;;  %v6166_v18 = vld [vmem:[%s8987_s3 + $0x150] ss:$8 sps:$4 sm:$0xff]  }
  0x8c   :  { %1364 = vmatprep.subr.bf16.mxu0 %v6098_v19  ;;  %v6174_v19 = vld [vmem:[%s8987_s3 + $0x144] ss:$8 sps:$4 sm:$0xff]  }
  0x8d   :  { %5877 = vmatpush3.bf16.msra.mxu1 %v6125_v49  ;;  %v6211_v49 = vld [vmem:[%s8987_s3 + $0xd0] ss:$8 sps:$4 sm:$0xff]  }
  0x8e   :  { %5878 = vmatprep.subr.bf16.mxu1 %v6129_v20  ;;  %v6219_v20 = vld [vmem:[%s8987_s3 + $0xc4] ss:$8 sps:$4 sm:$0xff]  }
  0x8f   :  { %1365 = vmatpush1.bf16.msra.mxu0 %v6096_v21  ;;  %v6172_v21 = vld [vmem:[%s8987_s3 + $0x140] ss:$8 sps:$4 sm:$0xff]  }
  0x90   :  { %1366 = vmatprep.subr.bf16.mxu0 %v6101_v22  ;;  %v6180_v22 = vld [vmem:[%s8987_s3 + $0x134] ss:$8 sps:$4 sm:$0xff]  }
  0x91   :  { %5879 = vmatpush3.bf16.msra.mxu1 %v6130_v23  ;;  %v6217_v23 = vld [vmem:[%s8987_s3 + $0xc0] ss:$8 sps:$4 sm:$0xff]  }
  0x92   :  { %5880 = vmatprep.subr.bf16.mxu1 %v6134_v24  ;;  %v6225_v24 = vld [vmem:[%s8987_s3 + $0xb4] ss:$8 sps:$4 sm:$0xff]  }
  0x93   :  { %1367 = vmatpush1.bf16.msra.mxu0 %v6099_v25  ;;  %v6178_v25 = vld [vmem:[%s8987_s3 + $0x130] ss:$8 sps:$4 sm:$0xff]  }
  0x94   :  { %1368 = vmatprep.subr.bf16.mxu0 %v6104_v26  ;;  %v6186_v26 = vld [vmem:[%s8987_s3 + $0x124] ss:$8 sps:$4 sm:$0xff]  }
  0x95   :  { %5881 = vmatpush3.bf16.msra.mxu1 %v6135_v27  ;;  %v6223_v27 = vld [vmem:[%s8987_s3 + $0xb0] ss:$8 sps:$4 sm:$0xff]  }
  0x96   :  { %5882 = vmatprep.subr.bf16.mxu1 %v6139_v28  ;;  %v6231_v28 = vld [vmem:[%s8987_s3 + $0xa4] ss:$8 sps:$4 sm:$0xff]  }
  0x97   :  { %1369 = vmatpush1.bf16.msra.mxu0 %v6102_v29  ;;  %v6184_v29 = vld [vmem:[%s8987_s3 + $0x120] ss:$8 sps:$4 sm:$0xff]  }
  0x98   :  { %1370 = vmatprep.subr.bf16.mxu0 %v6107_v30  ;;  %v6192_v30 = vld [vmem:[%s8987_s3 + $0x114] ss:$8 sps:$4 sm:$0xff]  }
  0x99   :  { %5883 = vmatpush3.bf16.msra.mxu1 %v6140_v31  ;;  %v6190_v31 = vld [vmem:[%s8987_s3 + $0x110] ss:$8 sps:$4 sm:$0xff]  }
  0x9a   :  { %5884 = vmatprep.subr.bf16.mxu1 %v6144_v32  ;;  %v6229_v32 = vld [vmem:[%s8987_s3 + $0xa0] ss:$8 sps:$4 sm:$0xff]  }
  0x9b   :  { %1371 = vmatpush1.bf16.msra.mxu0 %v6105_v33  ;;  %v6237_v33 = vld [vmem:[%s8987_s3 + $0x94] ss:$8 sps:$4 sm:$0xff]  }
  0x9c   :  { %1372 = vmatprep.subr.bf16.mxu0 %v6110_v34  ;;  %v6198_v34 = vld [vmem:[%s8987_s3 + $0x104] ss:$8 sps:$4 sm:$0xff]  }
  0x9d   :  { %5885 = vmatpush3.bf16.msra.mxu1 %v6145_v35  ;;  %v6196_v35 = vld [vmem:[%s8987_s3 + $0x100] ss:$8 sps:$4 sm:$0xff]  }
  0x9e   :  { %5886 = vmatprep.subr.bf16.mxu1 %v6149_v36  ;;  %v6235_v36 = vld [vmem:[%s8987_s3 + $0x90] ss:$8 sps:$4 sm:$0xff]  }
  0x9f   :  { %1373 = vmatpush1.bf16.msra.mxu0 %v6108_v37  ;;  %v6243_v37 = vld [vmem:[%s8987_s3 + $0x84] ss:$8 sps:$4 sm:$0xff]  }
  0xa0   :  { %1374 = vmatprep.subr.bf16.mxu0 %v6113_v38  ;;  %v6204_v38 = vld [vmem:[%s8987_s3 + $0x1f4] ss:$8 sps:$4 sm:$0xff]  }
  0xa1   :  { %5887 = vmatpush3.bf16.msra.mxu1 %v6150_v39  ;;  %v6202_v39 = vld [vmem:[%s8987_s3 + $0x1f0] ss:$8 sps:$4 sm:$0xff]  }
  0xa2   :  { %2463 = vmatprep.subr.bf16.mxu1 %v6153_v40  ;;  %v6241_v40 = vld [vmem:[%s8987_s3 + $0x80] ss:$8 sps:$4 sm:$0xff]  }
  0xa3   :  { %1375 = vmatpush2.bf16.msra.mxu0 %v6111_v41  ;;  %v6249_v41 = vld [vmem:[%s8987_s3 + $0x274] ss:$8 sps:$4 sm:$0xff]  }
  0xa4   :  { %1376 = vmatprep.subr.bf16.mxu0 %v6118_v42  ;;  %1434 = vmatmul.mubr.bf16.vlgmr.msra.gmra.mxu1 %v7102_v6  ;;  %v6210_v42 = vld [vmem:[%s8987_s3 + $0x1e4] ss:$8 sps:$4 sm:$0xff]  }
  0xa5   :  { %2464 = vmatpush1.bf16.msra.mxu1 %v6151_v43  ;;  %v6208_v43 = vld [vmem:[%s8987_s3 + $0x1e0] ss:$8 sps:$4 sm:$0xff]  }
  0xa6   :  { %2465 = vmatprep.subr.bf16.mxu1 %v6159_v44  ;;  %v6216_v44 = vld [vmem:[%s8987_s3 + $0x1d4] ss:$8 sps:$4 sm:$0xff]  }
  0xa7   :  { %1377 = vmatpush2.bf16.msra.mxu0 %v6116_v45  ;;  %v6214_v45 = vld [vmem:[%s8987_s3 + $0x1d0] ss:$8 sps:$4 sm:$0xff]  }
  0xa8   :  { %1378 = vmatprep.subr.bf16.mxu0 %v6123_v46  ;;  %v6222_v46 = vld [vmem:[%s8987_s3 + $0x1c4] ss:$8 sps:$4 sm:$0xff]  }
  0xa9   :  { %2466 = vmatpush1.bf16.msra.mxu1 %v6157_v47  ;;  %v6220_v47 = vld [vmem:[%s8987_s3 + $0x1c0] ss:$8 sps:$4 sm:$0xff]  }
  0xaa   :  { %2467 = vmatprep.subr.bf16.mxu1 %v6165_v48  ;;  %v6228_v48 = vld [vmem:[%s8987_s3 + $0x1b4] ss:$8 sps:$4 sm:$0xff]  }
  0xab   :  { %1379 = vmatpush2.bf16.msra.mxu0 %v6121_v50  ;;  %v6226_v50 = vld [vmem:[%s8987_s3 + $0x1b0] ss:$8 sps:$4 sm:$0xff]  }
  0xac   :  { %1380 = vmatprep.subr.bf16.mxu0 %v6128_v51  ;;  %v6234_v51 = vld [vmem:[%s8987_s3 + $0x1a4] ss:$8 sps:$4 sm:$0xff]  }
  0xad   :  { %2468 = vmatpush1.bf16.msra.mxu1 %v6163_v52  ;;  %v6232_v52 = vld [vmem:[%s8987_s3 + $0x1a0] ss:$8 sps:$4 sm:$0xff]  }
  0xae   :  { %2469 = vmatprep.subr.bf16.mxu1 %v6171_v53  ;;  %v6240_v53 = vld [vmem:[%s8987_s3 + $0x194] ss:$8 sps:$4 sm:$0xff]  }
  0xaf   :  { %1381 = vmatpush2.bf16.msra.mxu0 %v6126_v54  ;;  %v235_v54 = vlaneseq }
  0xb0   :  { %1382 = vmatprep.subr.bf16.mxu0 %v6133_v55  ;;  %v6238_v55 = vld [vmem:[%s8987_s3 + $0x190] ss:$8 sps:$4 sm:$0xff]  }
  0xb1   :  { %2470 = vmatpush1.bf16.msra.mxu1 %v6169_v56  ;;  %v6246_v56 = vld [vmem:[%s8987_s3 + $0x184] ss:$8 sps:$4 sm:$0xff]  }
  0xb2   :  { %2471 = vmatprep.subr.bf16.mxu1 %v6177_v57  ;;  %v7639_v57 = vshrl.u32 %v235_v54, 7  ;;  %v6285_v54 = vld [vmem:[%s8987_s3 + $0x214] ss:$8 sps:$4 sm:$0xff]  }
  0xb3   :  { %1383 = vmatpush2.bf16.msra.mxu0 %v6131_v58  ;;  %v6244_v58 = vld [vmem:[%s8987_s3 + $0x180] ss:$8 sps:$4 sm:$0xff]  }
  0xb4   :  { %1384 = vmatprep.subr.bf16.mxu0 %v6138_v59  ;;  %v6252_v59 = vld [vmem:[%s8987_s3 + $0x374] ss:$8 sps:$4 sm:$0xff]  }
  0xb5   :  { %2472 = vmatpush1.bf16.msra.mxu1 %v6175_v60  ;;  %v7648_v60 = vsub.s32 1, %v7639_v57 }
  0xb6   :  { %2473 = vmatprep.subr.bf16.mxu1 %v6183_v61  ;;  %v7651_v61 = vsub.s32 2, %v7639_v57 }
  0xb7   :  { %1385 = vmatpush2.bf16.msra.mxu0 %v6136_v62  ;;  %v7656_v62 = vld [vmem:[%s8988_s2] sm:$0xff] }
  0xb8   :  { %1386 = vmatprep.subr.bf16.mxu0 %v6143_v63  ;;  %v249_v63 = vsub.s32 3, %v7639_v57 }
  0xb9   :  { %2474 = vmatpush1.bf16.msra.mxu1 %v6181_v0  ;;  %v7660_v0 = vsub.s32 0, %v7639_v57 }
  0xba   :  { %2475 = vmatprep.subr.bf16.mxu1 %v6189_v1 }
  0xbb   :  { %1387 = vmatpush2.bf16.msra.mxu0 %v6141_v2  ;;  %v242_v2 = vrot.slane %v7656_v62, %v7648_v60 }
  0xbc   :  { %1388 = vmatprep.subr.bf16.mxu0 %v6148_v3  ;;  %v246_v3 = vrot.slane %v7656_v62, %v7651_v61 }
  0xbd   :  { %2476 = vmatpush1.bf16.msra.mxu1 %v6187_v4  ;;  %v250_v4 = vrot.slane %v7656_v62, %v249_v63 }
  0xbe   :  { %2477 = vmatprep.subr.bf16.mxu1 %v6195_v5  ;;  %v238_v5 = vrot.slane %v7656_v62, %v7660_v0 }
  0xbf   :  { %1389 = vmatpush2.bf16.msra.mxu0 %v6146_v7 }
  0xc0   :  { %2506 = vmatprep.subr.bf16.mxu0 %v6156_v8 }
  0xc1   :  { %2478 = vmatpush1.bf16.msra.mxu1 %v6193_v9 }
  0xc2   :  { %1391 = vmatmul.mubr.bf16.vlgmr.msra.gmra.mxu0 %v7102_v6  ;;  %2479 = vmatprep.subr.bf16.mxu1 %v6201_v10  ;;  %v6205_v6 = vld [vmem:[%s8987_s3 + $0xe0] ss:$8 sps:$4 sm:$0xff]  }
  0xc3   :  { %2507 = vmatpush1.bf16.msra.mxu0 %v6154_v11 }
  0xc4   :  { %2508 = vmatprep.subr.bf16.mxu0 %v6162_v12 }
  0xc5   :  { %2480 = vmatpush2.bf16.msra.mxu1 %v6199_v13 }
  0xc6   :  { %2481 = vmatprep.subr.bf16.mxu1 %v6207_v14 }
  0xc7   :  { %2509 = vmatpush1.bf16.msra.mxu0 %v6160_v15 }
  0xc8   :  { %2510 = vmatprep.subr.bf16.mxu0 %v6168_v16 }
  0xc9   :  { %2482 = vmatpush2.bf16.msra.mxu1 %v6205_v6 }
  0xca   :  { %2483 = vmatprep.subr.bf16.mxu1 %v6213_v17 }
  0xcb   :  { %2511 = vmatpush1.bf16.msra.mxu0 %v6166_v18 }
  0xcc   :  { %2512 = vmatprep.subr.bf16.mxu0 %v6174_v19 }
  0xcd   :  { %2484 = vmatpush2.bf16.msra.mxu1 %v6211_v49 }
  0xce   :  { %2485 = vmatprep.subr.bf16.mxu1 %v6219_v20 }
  0xcf   :  { %2513 = vmatpush1.bf16.msra.mxu0 %v6172_v21 }
  0xd0   :  { %2514 = vmatprep.subr.bf16.mxu0 %v6180_v22 }
  0xd1   :  { %2486 = vmatpush2.bf16.msra.mxu1 %v6217_v23 }
  0xd2   :  { %2487 = vmatprep.subr.bf16.mxu1 %v6225_v24 }
  0xd3   :  { %2515 = vmatpush1.bf16.msra.mxu0 %v6178_v25 }
  0xd4   :  { %2516 = vmatprep.subr.bf16.mxu0 %v6186_v26 }
  0xd5   :  { %2488 = vmatpush2.bf16.msra.mxu1 %v6223_v27 }
  0xd6   :  { %2489 = vmatprep.subr.bf16.mxu1 %v6231_v28 }
  0xd7   :  { %2517 = vmatpush1.bf16.msra.mxu0 %v6184_v29  ;;  %v6247_v29 = vld [vmem:[%s8987_s3 + $0x270] ss:$8 sps:$4 sm:$0xff]  }
  0xd8   :  { %2518 = vmatprep.subr.bf16.mxu0 %v6192_v30 }
  0xd9   :  { %2490 = vmatpush2.bf16.msra.mxu1 %v6229_v32  ;;  %v6255_v32 = vld [vmem:[%s8987_s3 + $0x264] ss:$8 sps:$4 sm:$0xff]  }
  0xda   :  { %2491 = vmatprep.subr.bf16.mxu1 %v6237_v33 }
  0xdb   :  { %2519 = vmatpush1.bf16.msra.mxu0 %v6190_v31 }
  0xdc   :  { %2520 = vmatprep.subr.bf16.mxu0 %v6198_v34  ;;  %v6250_v34 = vld [vmem:[%s8987_s3 + $0x370] ss:$8 sps:$4 sm:$0xff]  }
  0xdd   :  { %2492 = vmatpush2.bf16.msra.mxu1 %v6235_v36  ;;  %v6253_v36 = vld [vmem:[%s8987_s3 + $0x260] ss:$8 sps:$4 sm:$0xff]  }
  0xde   :  { %2493 = vmatprep.subr.bf16.mxu1 %v6243_v37  ;;  %v6261_v37 = vld [vmem:[%s8987_s3 + $0x254] ss:$8 sps:$4 sm:$0xff]  }
  0xdf   :  { %2521 = vmatpush1.bf16.msra.mxu0 %v6196_v35  ;;  %v6258_v35 = vld [vmem:[%s8987_s3 + $0x364] ss:$8 sps:$4 sm:$0xff]  }
  0xe0   :  { %2522 = vmatprep.subr.bf16.mxu0 %v6204_v38  ;;  %v6256_v38 = vld [vmem:[%s8987_s3 + $0x360] ss:$8 sps:$4 sm:$0xff]  }
  0xe1   :  { %2494 = vmatpush2.bf16.msra.mxu1 %v6241_v40  ;;  %v6259_v40 = vld [vmem:[%s8987_s3 + $0x250] ss:$8 sps:$4 sm:$0xff]  }
  0xe2   :  { %2549 = vmatprep.subr.bf16.mxu1 %v6249_v41  ;;  %v6267_v41 = vld [vmem:[%s8987_s3 + $0x244] ss:$8 sps:$4 sm:$0xff]  }
  0xe3   :  { %2523 = vmatpush2.bf16.msra.mxu0 %v6202_v39  ;;  %v6264_v39 = vld [vmem:[%s8987_s3 + $0x354] ss:$8 sps:$4 sm:$0xff]  }
  0xe4   :  { %2524 = vmatprep.subr.bf16.mxu0 %v6210_v42  ;;  %v6262_v42 = vld [vmem:[%s8987_s3 + $0x350] ss:$8 sps:$4 sm:$0xff]  }
  0xe7   :  { %2525 = vmatpush2.bf16.msra.mxu0 %v6208_v43  ;;  %v6270_v43 = vld [vmem:[%s8987_s3 + $0x344] ss:$8 sps:$4 sm:$0xff]  }
  0xe8   :  { %2526 = vmatprep.subr.bf16.mxu0 %v6216_v44  ;;  %v6265_v44 = vld [vmem:[%s8987_s3 + $0x240] ss:$8 sps:$4 sm:$0xff]  }
  0xeb   :  { %2527 = vmatpush2.bf16.msra.mxu0 %v6214_v45  ;;  %v6273_v45 = vld [vmem:[%s8987_s3 + $0x234] ss:$8 sps:$4 sm:$0xff]  }
  0xec   :  { %2528 = vmatprep.subr.bf16.mxu0 %v6222_v46  ;;  %v6268_v46 = vld [vmem:[%s8987_s3 + $0x340] ss:$8 sps:$4 sm:$0xff]  }
  0xef   :  { %2529 = vmatpush2.bf16.msra.mxu0 %v6220_v47  ;;  %v6276_v47 = vld [vmem:[%s8987_s3 + $0x334] ss:$8 sps:$4 sm:$0xff]  }
  0xf0   :  { %2530 = vmatprep.subr.bf16.mxu0 %v6228_v48  ;;  %v6271_v48 = vld [vmem:[%s8987_s3 + $0x230] ss:$8 sps:$4 sm:$0xff]  }
  0xf3   :  { %2531 = vmatpush2.bf16.msra.mxu0 %v6226_v50  ;;  %v6279_v50 = vld [vmem:[%s8987_s3 + $0x224] ss:$8 sps:$4 sm:$0xff]  }
  0xf4   :  { %2532 = vmatprep.subr.bf16.mxu0 %v6234_v51  ;;  %v6274_v51 = vld [vmem:[%s8987_s3 + $0x330] ss:$8 sps:$4 sm:$0xff]  }
  0xf7   :  { %2533 = vmatpush2.bf16.msra.mxu0 %v6232_v52  ;;  %v6282_v52 = vld [vmem:[%s8987_s3 + $0x324] ss:$8 sps:$4 sm:$0xff]  }
  0xf8   :  { %2534 = vmatprep.subr.bf16.mxu0 %v6240_v53  ;;  %v6277_v53 = vld [vmem:[%s8987_s3 + $0x220] ss:$8 sps:$4 sm:$0xff]  }
  0xfb   :  { %2535 = vmatpush2.bf16.msra.mxu0 %v6238_v55  ;;  %v6280_v55 = vld [vmem:[%s8987_s3 + $0x320] ss:$8 sps:$4 sm:$0xff]  }
  0xfc   :  { %2536 = vmatprep.subr.bf16.mxu0 %v6246_v56  ;;  %v6288_v56 = vld [vmem:[%s8987_s3 + $0x314] ss:$8 sps:$4 sm:$0xff]  }
  0xff   :  { %2537 = vmatpush2.bf16.msra.mxu0 %v6244_v58  ;;  %v6283_v58 = vld [vmem:[%s8987_s3 + $0x210] ss:$8 sps:$4 sm:$0xff]  }
 0x100   :  { %2592 = vmatprep.subr.bf16.mxu0 %v6252_v59  ;;  %v6291_v59 = vld [vmem:[%s8987_s3 + $0x204] ss:$8 sps:$4 sm:$0xff]  }
 0x102   :  { %v1220_v1 = vpop.f32.mrf.mxu0 }
 0x103   :  { %v1221_v15 = vadd.f32 %v1220_v1, %v238_v5  ;;  %v6286_v1 = vld [vmem:[%s8987_s3 + $0x310] ss:$8 sps:$4 sm:$0xff]  }
 0x104   :  { %v1222_v7 = vpop.f32.mrf.mxu0  ;;  %v1263_v8 = vpop.f32.mrf.mxu1 }
 0x105   :  { %v1223_v9 = vadd.f32 %v1222_v7, %v242_v2  ;;  %v1264_v10 = vadd.f32 %v1263_v8, %v246_v3  ;;  %v1442_v26 = vmax.f32 %v1221_v15, 0.0  ;;  %v6300_v7 = vld [vmem:[%s8987_s3 + $0x3f4] ss:$8 sps:$4 sm:$0xff]   ;;  %v6295_v8 = vld [vmem:[%s8987_s3 + $0x2f0] ss:$8 sps:$4 sm:$0xff]  }
 0x106   :  { %v1224_v11 = vpop.f32.mrf.mxu0  ;;  %v1265_v12 = vpop.f32.mrf.mxu1  ;;  %v6312_v15 = vld [vmem:[%s8987_s3 + $0x3d4] ss:$8 sps:$4 sm:$0xff]  }
 0x107   :  { %v1225_v13 = vadd.f32 %v1224_v11, %v238_v5  ;;  %v1266_v14 = vadd.f32 %v1265_v12, %v250_v4  ;;  %v1443_v19 = vmax.f32 %v1223_v9, 0.0  ;;  %v1444_v49 = vmax.f32 %v1264_v10, 0.0  ;;  %v6292_v5 = vld [vmem:[%s8987_s3 + $0x300] ss:$8 sps:$4 sm:$0xff]   ;;  %v6303_v9 = vld [vmem:[%s8987_s3 + $0x2e4] ss:$8 sps:$4 sm:$0xff]  }
 0x108   :  { %v1226_v16 = vpop.f32.mrf.mxu0  ;;  %v1267_v6 = vpop.f32.mrf.mxu1  ;;  %v6298_v10 = vld [vmem:[%s8987_s3 + $0x3f0] ss:$8 sps:$4 sm:$0xff]   ;;  %v6306_v11 = vld [vmem:[%s8987_s3 + $0x3e4] ss:$8 sps:$4 sm:$0xff]   ;;  %v6301_v12 = vld [vmem:[%s8987_s3 + $0x2e0] ss:$8 sps:$4 sm:$0xff]  }
 0x109   :  { %v1227_v17 = vadd.f32 %v1226_v16, %v242_v2  ;;  %v1268_v18 = vadd.f32 %v1267_v6, %v246_v3  ;;  %v1453_v20 = vmax.f32 %v1225_v13, 0.0  ;;  %v1445_v22 = vmax.f32 %v1266_v14, 0.0  ;;  %v6294_v2 = vld [vmem:[%s8987_s3 + $0x304] ss:$8 sps:$4 sm:$0xff]   ;;  %v6289_v3 = vld [vmem:[%s8987_s3 + $0x200] ss:$8 sps:$4 sm:$0xff]  }
 0x10a   :  { %v1269_v21 = vpop.f32.mrf.mxu1  ;;  %v6309_v13 = vld [vmem:[%s8987_s3 + $0x2d4] ss:$8 sps:$4 sm:$0xff]   ;;  %v6304_v14 = vld [vmem:[%s8987_s3 + $0x3e0] ss:$8 sps:$4 sm:$0xff]   ;;  %v6307_v16 = vld [vmem:[%s8987_s3 + $0x2d0] ss:$8 sps:$4 sm:$0xff]  }
 0x10b   :  { %v1454_v23 = vmax.f32 %v1227_v17, 0.0  ;;  %v1455_v24 = vmax.f32 %v1268_v18, 0.0  ;;  %v1270_v25 = vadd.f32 %v1269_v21, %v250_v4  ;;  %v1464_v30 = vpack.c.bf16 %v1453_v20, %v1442_v26  ;;  %v6297_v4 = vld [vmem:[%s8987_s3 + $0x2f4] ss:$8 sps:$4 sm:$0xff]   ;;  %v6315_v6 = vld [vmem:[%s8987_s3 + $0x2c4] ss:$8 sps:$4 sm:$0xff]  }
 0x10c   :  { %v6310_v17 = vld [vmem:[%s8987_s3 + $0x3d0] ss:$8 sps:$4 sm:$0xff]   ;;  %v6318_v18 = vld [vmem:[%s8987_s3 + $0x3c4] ss:$8 sps:$4 sm:$0xff]   ;;  %v6316_v20 = vld [vmem:[%s8987_s3 + $0x3c0] ss:$8 sps:$4 sm:$0xff]  }
 0x10d   :  { %v1465_v27 = vpack.c.bf16 %v1454_v23, %v1443_v19  ;;  %v1456_v28 = vmax.f32 %v1270_v25, 0.0  ;;  %v1466_v31 = vpack.c.bf16 %v1455_v24, %v1444_v49  ;;  %v6313_v19 = vld [vmem:[%s8987_s3 + $0x2c0] ss:$8 sps:$4 sm:$0xff]   ;;  %v6321_v49 = vld [vmem:[%s8987_s3 + $0x2b4] ss:$8 sps:$4 sm:$0xff]   ;;  %v257_v24 = vsub.s32 5, %v7639_v57 }
 0x10e   :  { %v6324_v21 = vld [vmem:[%s8987_s3 + $0x3b4] ss:$8 sps:$4 sm:$0xff]   ;;  %v6327_v23 = vld [vmem:[%s8987_s3 + $0x2a4] ss:$8 sps:$4 sm:$0xff]   ;;  %v261_v25 = vsub.s32 6, %v7639_v57 }
 0x10f   :  { %v1467_v33 = vpack.c.bf16 %v1456_v28, %v1445_v22  ;;  %2495 = vmatprep.mubr.bf16.mxu1 %v1465_v27  ;;  %v6319_v22 = vld [vmem:[%s8987_s3 + $0x2b0] ss:$8 sps:$4 sm:$0xff]   ;;  %v265_v27 = vsub.s32 7, %v7639_v57  ;;  %v253_v28 = vsub.s32 4, %v7639_v57  ;;  %v6785_v57 = vld [vmem:[%s8991_s7 + $0x284] ss:$8 sps:$4 sm:$0xff]  }
 0x110   :  { %2496 = vmatmul.mubr.bf16.vlgmr.msra.gmra.mxu1 %v1464_v30  ;;  %v6322_v26 = vld [vmem:[%s8987_s3 + $0x3b0] ss:$8 sps:$4 sm:$0xff]   ;;  %v6325_v30 = vld [vmem:[%s8987_s3 + $0x2a0] ss:$8 sps:$4 sm:$0xff]  }
 0x111   :  { %2550 = vmatpush1.bf16.msra.mxu1 %v6247_v29  ;;  %2538 = vmatprep.mubr.bf16.mxu0 %v1467_v33  ;;  %v6330_v29 = vld [vmem:[%s8987_s3 + $0x3a4] ss:$8 sps:$4 sm:$0xff]   ;;  %v262_v33 = vrot.slane %v7656_v62, %v261_v25 }
 0x112   :  { %2539 = vmatmul.mubr.bf16.vlgmr.msra.gmra.mxu0 %v1466_v31  ;;  %2551 = vmatprep.subr.bf16.mxu1 %v6255_v32  ;;  %v258_v32 = vrot.slane %v7656_v62, %v257_v24 }
 0x113   :  { %2593 = vmatpush1.bf16.msra.mxu0 %v6250_v34  ;;  %v6333_v34 = vld [vmem:[%s8987_s3 + $0x294] ss:$8 sps:$4 sm:$0xff]  }
 0x114   :  { %2594 = vmatprep.subr.bf16.mxu0 %v6258_v35  ;;  %v266_v35 = vrot.slane %v7656_v62, %v265_v27 }
 0x115   :  { %2552 = vmatpush1.bf16.msra.mxu1 %v6253_v36  ;;  %v6328_v36 = vld [vmem:[%s8987_s3 + $0x3a0] ss:$8 sps:$4 sm:$0xff]  }
 0x116   :  { %2553 = vmatprep.subr.bf16.mxu1 %v6261_v37  ;;  %v254_v37 = vrot.slane %v7656_v62, %v253_v28  ;;  %v6339_v62 = vld [vmem:[%s8987_s3 + $0x284] ss:$8 sps:$4 sm:$0xff]  }
 0x117   :  { %2595 = vmatpush1.bf16.msra.mxu0 %v6256_v38 }
 0x118   :  { %2596 = vmatprep.subr.bf16.mxu0 %v6264_v39 }
 0x119   :  { %2554 = vmatpush1.bf16.msra.mxu1 %v6259_v40  ;;  %v6336_v40 = vld [vmem:[%s8987_s3 + $0x394] ss:$8 sps:$4 sm:$0xff]  }
 0x11a   :  { %2555 = vmatprep.subr.bf16.mxu1 %v6267_v41  ;;  %v6331_v41 = vld [vmem:[%s8987_s3 + $0x290] ss:$8 sps:$4 sm:$0xff]  }
 0x11b   :  { %2597 = vmatpush1.bf16.msra.mxu0 %v6262_v42 }
 0x11c   :  { %2598 = vmatprep.subr.bf16.mxu0 %v6270_v43 }
 0x11d   :  { %2556 = vmatpush1.bf16.msra.mxu1 %v6265_v44 }
 0x11e   :  { %2557 = vmatprep.subr.bf16.mxu1 %v6273_v45 }
 0x11f   :  { %2599 = vmatpush1.bf16.msra.mxu0 %v6268_v46 }
 0x120   :  { %2600 = vmatprep.subr.bf16.mxu0 %v6276_v47 }
 0x121   :  { %2558 = vmatpush1.bf16.msra.mxu1 %v6271_v48  ;;  %v6334_v48 = vld [vmem:[%s8987_s3 + $0x390] ss:$8 sps:$4 sm:$0xff]  }
 0x122   :  { %2559 = vmatprep.subr.bf16.mxu1 %v6279_v50 }
 0x123   :  { %2601 = vmatpush1.bf16.msra.mxu0 %v6274_v51 }
 0x124   :  { %2602 = vmatprep.subr.bf16.mxu0 %v6282_v52 }
 0x125   :  { %2560 = vmatpush1.bf16.msra.mxu1 %v6277_v53  ;;  %v6342_v53 = vld [vmem:[%s8987_s3 + $0x384] ss:$8 sps:$4 sm:$0xff]  }
 0x126   :  { %2561 = vmatprep.subr.bf16.mxu1 %v6285_v54 }
 0x127   :  { %2603 = vmatpush1.bf16.msra.mxu0 %v6280_v55 }
 0x128   :  { %2604 = vmatprep.subr.bf16.mxu0 %v6288_v56  ;;  %v6337_v56 = vld [vmem:[%s8987_s3 + $0x280] ss:$8 sps:$4 sm:$0xff]  }
 0x129   :  { %2562 = vmatpush1.bf16.msra.mxu1 %v6283_v58 }
 0x12a   :  { %2563 = vmatprep.subr.bf16.mxu1 %v6291_v59 }
 0x12b   :  { %2605 = vmatpush1.bf16.msra.mxu0 %v6286_v1 }
 0x12c   :  { %2606 = vmatprep.subr.bf16.mxu0 %v6294_v2 }
 0x12d   :  { %2564 = vmatpush1.bf16.msra.mxu1 %v6289_v3  ;;  %v6345_v3 = vld [vmem:[%s8987_s3 + $0x474] ss:$8 sps:$4 sm:$0xff]  }
 0x12e   :  { %2565 = vmatprep.subr.bf16.mxu1 %v6297_v4 }
 0x12f   :  { %2607 = vmatpush1.bf16.msra.mxu0 %v6292_v5 }
 0x130   :  { %2608 = vmatprep.subr.bf16.mxu0 %v6300_v7 }
 0x131   :  { %2566 = vmatpush2.bf16.msra.mxu1 %v6295_v8 }
 0x132   :  { %2567 = vmatprep.subr.bf16.mxu1 %v6303_v9  ;;  %v6340_v9 = vld [vmem:[%s8987_s3 + $0x380] ss:$8 sps:$4 sm:$0xff]  }
 0x133   :  { %2609 = vmatpush2.bf16.msra.mxu0 %v6298_v10 }
 0x134   :  { %2610 = vmatprep.subr.bf16.mxu0 %v6306_v11 }
 0x135   :  { %2568 = vmatpush2.bf16.msra.mxu1 %v6301_v12 }
 0x136   :  { %2569 = vmatprep.subr.bf16.mxu1 %v6309_v13  ;;  %v6343_v13 = vld [vmem:[%s8987_s3 + $0x470] ss:$8 sps:$4 sm:$0xff]  }
 0x137   :  { %2611 = vmatpush2.bf16.msra.mxu0 %v6304_v14 }
 0x138   :  { %2612 = vmatprep.subr.bf16.mxu0 %v6312_v15 }
 0x139   :  { %2570 = vmatpush2.bf16.msra.mxu1 %v6307_v16  ;;  %v6348_v16 = vld [vmem:[%s8987_s3 + $0x464] ss:$8 sps:$4 sm:$0xff]  }
 0x13a   :  { %2571 = vmatprep.subr.bf16.mxu1 %v6315_v6 }
 0x13b   :  { %2613 = vmatpush2.bf16.msra.mxu0 %v6310_v17  ;;  %v6346_v17 = vld [vmem:[%s8987_s3 + $0x460] ss:$8 sps:$4 sm:$0xff]  }
 0x13c   :  { %2614 = vmatprep.subr.bf16.mxu0 %v6318_v18  ;;  %v6351_v18 = vld [vmem:[%s8987_s3 + $0x454] ss:$8 sps:$4 sm:$0xff]  }
 0x13d   :  { %2572 = vmatpush2.bf16.msra.mxu1 %v6313_v19  ;;  %v6349_v19 = vld [vmem:[%s8987_s3 + $0x450] ss:$8 sps:$4 sm:$0xff]  }
 0x13e   :  { %2573 = vmatprep.subr.bf16.mxu1 %v6321_v49  ;;  %v6354_v49 = vld [vmem:[%s8987_s3 + $0x444] ss:$8 sps:$4 sm:$0xff]  }
 0x13f   :  { %2615 = vmatpush2.bf16.msra.mxu0 %v6316_v20  ;;  %v6352_v20 = vld [vmem:[%s8987_s3 + $0x440] ss:$8 sps:$4 sm:$0xff]  }
 0x140   :  { %2616 = vmatprep.subr.bf16.mxu0 %v6324_v21  ;;  %v6357_v21 = vld [vmem:[%s8987_s3 + $0x434] ss:$8 sps:$4 sm:$0xff]  }
 0x141   :  { %2574 = vmatpush2.bf16.msra.mxu1 %v6319_v22  ;;  %v6355_v22 = vld [vmem:[%s8987_s3 + $0x430] ss:$8 sps:$4 sm:$0xff]  }
 0x142   :  { %v1306_v31 = vpop.f32.mrf.mxu0  ;;  %2575 = vmatprep.subr.bf16.mxu1 %v6327_v23  ;;  %v6360_v23 = vld [vmem:[%s8987_s3 + $0x424] ss:$8 sps:$4 sm:$0xff]  }
 0x143   :  { %2617 = vmatpush2.bf16.msra.mxu0 %v6322_v26  ;;  %v1307_v50 = vadd.f32 %v1306_v31, %v254_v37  ;;  %v6358_v26 = vld [vmem:[%s8987_s3 + $0x420] ss:$8 sps:$4 sm:$0xff]   ;;  %v6366_v31 = vld [vmem:[%s8987_s3 + $0x404] ss:$8 sps:$4 sm:$0xff]  }
 0x144   :  { %v1308_v38 = vpop.f32.mrf.mxu0  ;;  %v1349_v39 = vpop.f32.mrf.mxu1  ;;  %2618 = vmatprep.subr.bf16.mxu0 %v6330_v29  ;;  %v6363_v29 = vld [vmem:[%s8987_s3 + $0x414] ss:$8 sps:$4 sm:$0xff]  }
 0x145   :  { %2576 = vmatpush2.bf16.msra.mxu1 %v6325_v30  ;;  %v1309_v42 = vadd.f32 %v1308_v38, %v258_v32  ;;  %v1350_v43 = vadd.f32 %v1349_v39, %v262_v33  ;;  %v1446_v10 = vmax.f32 %v1307_v50, 0.0  ;;  %v6361_v30 = vld [vmem:[%s8987_s3 + $0x410] ss:$8 sps:$4 sm:$0xff]   ;;  %v6378_v39 = vld [vmem:[%s8987_s3 + $0x4c4] ss:$8 sps:$4 sm:$0xff]  }
 0x146   :  { %v1310_v44 = vpop.f32.mrf.mxu0  ;;  %v1351_v45 = vpop.f32.mrf.mxu1  ;;  %2577 = vmatprep.subr.bf16.mxu1 %v6333_v34  ;;  %v6367_v34 = vld [vmem:[%s8987_s3 + $0x4f0] ss:$8 sps:$4 sm:$0xff]  }
 0x147   :  { %v1311_v46 = vadd.f32 %v1310_v44, %v254_v37  ;;  %v1352_v47 = vadd.f32 %v1351_v45, %v266_v35  ;;  %2619 = vmatpush2.bf16.msra.mxu0 %v6328_v36  ;;  %v1447_v58 = vmax.f32 %v1309_v42, 0.0  ;;  %v1448_v59 = vmax.f32 %v1350_v43, 0.0  ;;  %v6370_v36 = vld [vmem:[%s8987_s3 + $0x4e0] ss:$8 sps:$4 sm:$0xff]   ;;  %v6375_v37 = vld [vmem:[%s8987_s3 + $0x4d4] ss:$8 sps:$4 sm:$0xff]  }
 0x148   :  { %v1312_v51 = vpop.f32.mrf.mxu0  ;;  %v1353_v52 = vpop.f32.mrf.mxu1  ;;  %2620 = vmatprep.subr.bf16.mxu0 %v6336_v40  ;;  %v6373_v38 = vld [vmem:[%s8987_s3 + $0x4d0] ss:$8 sps:$4 sm:$0xff]   ;;  %v6376_v40 = vld [vmem:[%s8987_s3 + $0x4c0] ss:$8 sps:$4 sm:$0xff]   ;;  %v6384_v44 = vld [vmem:[%s8987_s3 + $0x4a4] ss:$8 sps:$4 sm:$0xff]  }
 0x149   :  { %v1313_v54 = vadd.f32 %v1312_v51, %v258_v32  ;;  %v1354_v55 = vadd.f32 %v1353_v52, %v262_v33  ;;  %2578 = vmatpush2.bf16.msra.mxu1 %v6331_v41  ;;  %v1457_v1 = vmax.f32 %v1311_v46, 0.0  ;;  %v1449_v4 = vmax.f32 %v1352_v47, 0.0  ;;  %v6364_v32 = vld [vmem:[%s8987_s3 + $0x400] ss:$8 sps:$4 sm:$0xff]   ;;  %v6369_v33 = vld [vmem:[%s8987_s3 + $0x4f4] ss:$8 sps:$4 sm:$0xff]  }
 0x14a   :  { %v1355_v2 = vpop.f32.mrf.mxu1  ;;  %2579 = vmatprep.subr.bf16.mxu1 %v6339_v62  ;;  %v6381_v41 = vld [vmem:[%s8987_s3 + $0x4b4] ss:$8 sps:$4 sm:$0xff]   ;;  %v6379_v43 = vld [vmem:[%s8987_s3 + $0x4b0] ss:$8 sps:$4 sm:$0xff]   ;;  %v232_v62 = vld [vmem:[%s8988_s2 + $0x8] sm:$0x7] }
 0x14b   :  { %v1458_v5 = vmax.f32 %v1313_v54, 0.0  ;;  %v1459_v7 = vmax.f32 %v1354_v55, 0.0  ;;  %v1356_v8 = vadd.f32 %v1355_v2, %v266_v35  ;;  %2621 = vmatpush2.bf16.msra.mxu0 %v6334_v48  ;;  %v1468_v14 = vpack.c.bf16 %v1457_v1, %v1446_v10  ;;  %v6372_v35 = vld [vmem:[%s8987_s3 + $0x4e4] ss:$8 sps:$4 sm:$0xff]   ;;  %v6382_v46 = vld [vmem:[%s8987_s3 + $0x4a0] ss:$8 sps:$4 sm:$0xff]  }
 0x14c   :  { %2622 = vmatprep.subr.bf16.mxu0 %v6342_v53  ;;  %v6387_v48 = vld [vmem:[%s8987_s3 + $0x494] ss:$8 sps:$4 sm:$0xff]   ;;  %v274_v50 = vrot.slane %v232_v62, %v7648_v60  ;;  %v270_v52 = vrot.slane %v232_v62, %v7660_v0  ;;  %v6385_v54 = vld [vmem:[%s8987_s3 + $0x490] ss:$8 sps:$4 sm:$0xff]  }
 0x14d   :  { %v1469_v11 = vpack.c.bf16 %v1458_v5, %v1447_v58  ;;  %v1460_v12 = vmax.f32 %v1356_v8, 0.0  ;;  %2580 = vmatpush2.bf16.msra.mxu1 %v6337_v56  ;;  %v1470_v15 = vpack.c.bf16 %v1459_v7, %v1448_v59  ;;  %v6390_v56 = vld [vmem:[%s8987_s3 + $0x484] ss:$8 sps:$4 sm:$0xff]   ;;  %v6388_v5 = vld [vmem:[%s8987_s3 + $0x480] ss:$8 sps:$4 sm:$0xff]   ;;  %v278_v7 = vrot.slane %v232_v62, %v7651_v61 }
 0x14e   :  { %2635 = vmatprep.subr.bf16.mxu1 %v6345_v3  ;;  %v6426_v62 = vld [vmem:[%s8989_s5 + $0xb4] ss:$44 sps:$4 sm:$0xff]  }
 0x14f   :  { %v1471_v6 = vpack.c.bf16 %v1460_v12, %v1449_v4  ;;  %2581 = vmatprep.mubr.bf16.mxu1 %v1469_v11  ;;  %2623 = vmatpush2.bf16.msra.mxu0 %v6340_v9  ;;  %v6393_v11 = vld [vmem:[%s8987_s3 + $0x504] ss:$8 sps:$4 sm:$0xff]  }
 0x150   :  { %2582 = vmatmul.mubr.bf16.vlgmr.msra.gmra.mxu1 %v1468_v14 }
 0x151   :  { %2636 = vmatpush1.bf16.msra.mxu1 %v6343_v13  ;;  %2624 = vmatprep.mubr.bf16.mxu0 %v1471_v6 }
 0x152   :  { %2625 = vmatmul.mubr.bf16.vlgmr.msra.gmra.mxu0 %v1470_v15  ;;  %2637 = vmatprep.subr.bf16.mxu1 %v6348_v16  ;;  %v6391_v16 = vld [vmem:[%s8987_s3 + $0x500] ss:$8 sps:$4 sm:$0xff]  }
 0x155   :  { %2638 = vmatpush1.bf16.msra.mxu1 %v6346_v17 }
 0x156   :  { %2639 = vmatprep.subr.bf16.mxu1 %v6351_v18 }
 0x159   :  { %2640 = vmatpush1.bf16.msra.mxu1 %v6349_v19  ;;  %v6840_v19 = vmov 0  }
 0x15a   :  { %2641 = vmatprep.subr.bf16.mxu1 %v6354_v49 }
 0x15d   :  { %2642 = vmatpush1.bf16.msra.mxu1 %v6352_v20 }
 0x15e   :  { %2643 = vmatprep.subr.bf16.mxu1 %v6357_v21 }
 0x161   :  { %2644 = vmatpush1.bf16.msra.mxu1 %v6355_v22  ;;  %v6394_v22 = vld [vmem:[%s8989_s5 + $0x268] ss:$44 sps:$4 sm:$0xff]  }
 0x162   :  { %2645 = vmatprep.subr.bf16.mxu1 %v6360_v23  ;;  %v6396_v23 = vld [vmem:[%s8989_s5 + $0x26c] ss:$44 sps:$4 sm:$0xff]  }
 0x163   :  { %3674 = vmatprep.subr.bf16.mxu0 %v6396_v23  ;;  %v6467_v23 = vld [vmem:[%s8989_s5 + $0x2c8] ss:$44 sps:$4 sm:$0xff]  }
 0x164   :  { %v5888_v42 = vpop.f32.mrf.mxu1  ;;  %3675 = vmatpush1.bf16.msra.mxu0 %v6394_v22  ;;  %v6464_v22 = vld [vmem:[%s8989_s5 + $0x2c0] ss:$44 sps:$4 sm:$0xff]  }
 0x165   :  { %2646 = vmatpush1.bf16.msra.mxu1 %v6358_v26  ;;  %v6397_v26 = vld [vmem:[%s8989_s5 + $0x270] ss:$44 sps:$4 sm:$0xff]  }
 0x166   :  { %2647 = vmatprep.subr.bf16.mxu1 %v6363_v29  ;;  %v5889_v45 = vpop.f32.mrf.mxu1  ;;  %v6399_v29 = vld [vmem:[%s8989_s5 + $0x274] ss:$44 sps:$4 sm:$0xff]  }
 0x167   :  { %v5890_v8 = vadd.f32 %v5889_v45, %v5888_v42  ;;  %v6420_v42 = vld [vmem:[%s8989_s5 + $0x10c] ss:$44 sps:$4 sm:$0xff]   ;;  %v6421_v45 = vld [vmem:[%s8989_s5 + $0x110] ss:$44 sps:$4 sm:$0xff]  }
 0x168   :  { %v5891_v51 = vpop.f32.mrf.mxu1 }
 0x169   :  { %2648 = vmatpush1.bf16.msra.mxu1 %v6361_v30  ;;  %v1436_v6 = vadd.f32 %v5890_v8, %v278_v7  ;;  %v6400_v30 = vld [vmem:[%s8989_s5 + $0x210] ss:$44 sps:$4 sm:$0xff]  }
 0x16a   :  { %2649 = vmatprep.subr.bf16.mxu1 %v6366_v31  ;;  %v5892_v1 = vpop.f32.mrf.mxu1  ;;  %v6402_v31 = vld [vmem:[%s8989_s5 + $0x214] ss:$44 sps:$4 sm:$0xff]  }
 0x16b   :  { %v5893_v10 = vadd.f32 %v5892_v1, %v5891_v51  ;;  %v1452_v49 = vmax.f32 %v1436_v6, 0.0  ;;  %3676 = vmatprep.subr.bf16.mxu0 %v6402_v31  ;;  %v6435_v51 = vld [vmem:[%s8989_s5 + $0x64] ss:$44 sps:$4 sm:$0xff]   ;;  %v2872_v1 = vld [vmem:[%s8989_s5 + $0x428] sm:$0x33] }
 0x16c   :  { %3677 = vmatpush1.bf16.msra.mxu0 %v6400_v30  ;;  %v6460_v6 = vld [vmem:[%s8989_s5 + $0x31c] ss:$44 sps:$4 sm:$0xff]  }
 0x16d   :  { %2650 = vmatpush1.bf16.msra.mxu1 %v6364_v32  ;;  %v1439_v18 = vadd.f32 %v5893_v10, %v278_v7  ;;  %v6403_v32 = vld [vmem:[%s8989_s5 + $0x218] ss:$44 sps:$4 sm:$0xff]   ;;  %v6451_v10 = vld [vmem:[%s8989_s5 + $0x3d4] ss:$44 sps:$4 sm:$0xff]  }
 0x16e   :  { %2651 = vmatprep.subr.bf16.mxu1 %v6369_v33  ;;  %v6405_v33 = vld [vmem:[%s8989_s5 + $0x21c] ss:$44 sps:$4 sm:$0xff]  }
 0x16f   :  { %v1463_v20 = vmax.f32 %v1439_v18, 0.0  ;;  %v6458_v18 = vld [vmem:[%s8989_s5 + $0x318] ss:$44 sps:$4 sm:$0xff]  }
 0x171   :  { %2652 = vmatpush2.bf16.msra.mxu1 %v6367_v34  ;;  %v1474_v21 = vpack.c.bf16 %v1463_v20, %v1452_v49  ;;  %v6408_v34 = vld [vmem:[%s8989_s5 + $0x1bc] ss:$44 sps:$4 sm:$0xff]   ;;  %v6461_v49 = vld [vmem:[%s8989_s5 + $0x320] ss:$44 sps:$4 sm:$0xff]   ;;  %v6466_v20 = vld [vmem:[%s8989_s5 + $0x2c4] ss:$44 sps:$4 sm:$0xff]  }
 0x172   :  { %2653 = vmatprep.subr.bf16.mxu1 %v6372_v35  ;;  %v6406_v35 = vld [vmem:[%s8989_s5 + $0x1b8] ss:$44 sps:$4 sm:$0xff]   ;;  %3678 = vmatprep.subr.bf16.mxu0 %v6408_v34 }
 0x173   :  { %3679 = vmatpush1.bf16.msra.mxu0 %v6406_v35 }
 0x175   :  { %2654 = vmatpush2.bf16.msra.mxu1 %v6370_v36  ;;  %v6411_v36 = vld [vmem:[%s8989_s5 + $0x1c4] ss:$44 sps:$4 sm:$0xff]  }
 0x176   :  { %2655 = vmatprep.subr.bf16.mxu1 %v6375_v37  ;;  %v6409_v37 = vld [vmem:[%s8989_s5 + $0x1c0] ss:$44 sps:$4 sm:$0xff]  }
 0x179   :  { %2656 = vmatpush2.bf16.msra.mxu1 %v6373_v38  ;;  %v6414_v38 = vld [vmem:[%s8989_s5 + $0x164] ss:$44 sps:$4 sm:$0xff]  }
 0x17a   :  { %2657 = vmatprep.subr.bf16.mxu1 %v6378_v39  ;;  %v6417_v39 = vld [vmem:[%s8989_s5 + $0x16c] ss:$44 sps:$4 sm:$0xff]   ;;  %3680 = vmatprep.subr.bf16.mxu0 %v6414_v38 }
 0x17d   :  { %2658 = vmatpush2.bf16.msra.mxu1 %v6376_v40  ;;  %v6412_v40 = vld [vmem:[%s8989_s5 + $0x160] ss:$44 sps:$4 sm:$0xff]  }
 0x17e   :  { %2659 = vmatprep.subr.bf16.mxu1 %v6381_v41  ;;  %v6415_v41 = vld [vmem:[%s8989_s5 + $0x168] ss:$44 sps:$4 sm:$0xff]   ;;  %3681 = vmatpush1.bf16.msra.mxu0 %v6412_v40 }
 0x17f   :  { %3682 = vmatprep.subr.bf16.mxu0 %v6420_v42 }
 0x181   :  { %2660 = vmatpush2.bf16.msra.mxu1 %v6379_v43  ;;  %v6423_v43 = vld [vmem:[%s8989_s5 + $0x114] ss:$44 sps:$4 sm:$0xff]  }
 0x182   :  { %v1392_v47 = vpop.f32.mrf.mxu0  ;;  %2661 = vmatprep.subr.bf16.mxu1 %v6384_v44  ;;  %v6418_v44 = vld [vmem:[%s8989_s5 + $0x108] ss:$44 sps:$4 sm:$0xff]  }
 0x183   :  { %v1393_v2 = vadd.f32 %v1392_v47, %v270_v52  ;;  %v6424_v47 = vld [vmem:[%s8989_s5 + $0xb0] ss:$44 sps:$4 sm:$0xff]   ;;  %3683 = vmatpush1.bf16.msra.mxu0 %v6418_v44 }
 0x184   :  { %v1394_v53 = vpop.f32.mrf.mxu0  ;;  %3684 = vmatprep.subr.bf16.mxu0 %v6426_v62 }
 0x185   :  { %2662 = vmatpush2.bf16.msra.mxu1 %v6382_v46  ;;  %v1395_v58 = vadd.f32 %v1394_v53, %v274_v50  ;;  %v1450_v14 = vmax.f32 %v1393_v2, 0.0  ;;  %v6429_v46 = vld [vmem:[%s8989_s5 + $0xbc] ss:$44 sps:$4 sm:$0xff]   ;;  %v6433_v53 = vld [vmem:[%s8989_s5 + $0x60] ss:$44 sps:$4 sm:$0xff]  }
 0x186   :  { %v1396_v55 = vpop.f32.mrf.mxu0  ;;  %2663 = vmatprep.subr.bf16.mxu1 %v6387_v48  ;;  %v6427_v48 = vld [vmem:[%s8989_s5 + $0xb8] ss:$44 sps:$4 sm:$0xff]  }
 0x187   :  { %v1397_v59 = vadd.f32 %v1396_v55, %v270_v52  ;;  %v1451_v12 = vmax.f32 %v1395_v58, 0.0  ;;  %v6430_v52 = vld [vmem:[%s8989_s5 + $0x58] ss:$44 sps:$4 sm:$0xff]   ;;  %3685 = vmatpush1.bf16.msra.mxu0 %v6424_v47  ;;  %v6439_v58 = vld [vmem:[%s8989_s5 + $0x8] ss:$44 sps:$4 sm:$0xff]  }
 0x188   :  { %v1398_v3 = vpop.f32.mrf.mxu0  ;;  %v6441_v55 = vld [vmem:[%s8989_s5 + $0xc] ss:$44 sps:$4 sm:$0xff]  }
 0x189   :  { %v1399_v4 = vadd.f32 %v1398_v3, %v274_v50  ;;  %2664 = vmatpush2.bf16.msra.mxu1 %v6385_v54  ;;  %v1461_v9 = vmax.f32 %v1397_v59, 0.0  ;;  %v6432_v50 = vld [vmem:[%s8989_s5 + $0x5c] ss:$44 sps:$4 sm:$0xff]   ;;  %v6438_v54 = vld [vmem:[%s8989_s5 + $0x4] ss:$44 sps:$4 sm:$0xff]   ;;  %v5690_v3 = vcombine.high %v2872_v1, %v2872_v1 }
 0x18a   :  { %2665 = vmatprep.subr.bf16.mxu1 %v6390_v56  ;;  %3686 = vmatprep.subr.bf16.mxu0 %v6432_v50  ;;  %v6436_v56 = vld [vmem:[%s8989_s5] ss:$44 sps:$4 sm:$0xff]  }
 0x18b   :  { %v1462_v13 = vmax.f32 %v1399_v4, 0.0  ;;  %v1472_v17 = vpack.c.bf16 %v1461_v9, %v1450_v14  ;;  %3687 = vmatpush1.bf16.msra.mxu0 %v6430_v52  ;;  %v2871_v59 = vld [vmem:[%s8989_s5 + $0x420] sm:$0x33]  ;;  %v6448_v9 = vld [vmem:[%s8989_s5 + $0x3cc] ss:$44 sps:$4 sm:$0xff]  }
 0x18c   :  { %3688 = vmatprep.subr.bf16.mxu0 %v6438_v54  ;;  %v5688_v2 = vcombine.high %v2871_v59, %v2871_v59  ;;  %v5687_v4 = vcombine.low %v2871_v59, %v2871_v59  ;;  %v6457_v14 = vld [vmem:[%s8989_s5 + $0x37c] ss:$44 sps:$4 sm:$0xff]  }
 0x18d   :  { %v1473_v15 = vpack.c.bf16 %v1462_v13, %v1451_v12  ;;  %2666 = vmatpush2.bf16.msra.mxu1 %v6388_v5  ;;  %v5689_v5 = vcombine.low %v2872_v1, %v2872_v1  ;;  %v6449_v12 = vld [vmem:[%s8989_s5 + $0x3d0] ss:$44 sps:$4 sm:$0xff]   ;;  %v6454_v13 = vld [vmem:[%s8989_s5 + $0x374] ss:$44 sps:$4 sm:$0xff]  }
 0x18e   :  { %2692 = vmatprep.subr.bf16.mxu1 %v6393_v11  ;;  %v3642_v7 = vsel %vm3640_vm1, %v5687_v4, 0  ;;  %v6446_v11 = vld [vmem:[%s8989_s5 + $0x3c8] ss:$44 sps:$4 sm:$0xff]  }
 0x18f   :  { %2667 = vmatprep.mubr.bf16.mxu1 %v1473_v15  ;;  %3689 = vmatpush1.bf16.msra.mxu0 %v6436_v56  ;;  %v3648_v8 = vsel %vm3640_vm1, %v5689_v5, 0  ;;  %v6452_v15 = vld [vmem:[%s8989_s5 + $0x370] ss:$44 sps:$4 sm:$0xff]  }
 0x190   :  { %2668 = vmatmul.mubr.bf16.vlgmr.msra.gmra.mxu1 %v1472_v17  ;;  %5698 = vmatprep.subr.msk.bf16.mxu0 %vm3640_vm1, %v5688_v2  ;;  %v6463_v17 = vld [vmem:[%s8989_s5 + $0x324] ss:$44 sps:$4 sm:$0xff]  }
 0x191   :  { %2693 = vmatpush1.bf16.msra.mxu1 %v6391_v16  ;;  %2710 = vmatprep.mubr.bf16.mxu1 %v6840_v19  ;;  %v6455_v16 = vld [vmem:[%s8989_s5 + $0x378] ss:$44 sps:$4 sm:$0xff]  }
 0x192   :  { %3717 = vmatprep.subr.bf16.mxu1 %v6399_v29  ;;  %v6475_v29 = vld [vmem:[%s8989_s5 + $0x284] ss:$44 sps:$4 sm:$0xff]  }
 0x193   :  { %3697 = vmatpush2.bf16.msra.mxu0 %v3642_v7 }
 0x194   :  { %3698 = vmatprep.subr.bf16.mxu0 %v6448_v9 }
 0x197   :  { %3699 = vmatpush2.bf16.msra.mxu0 %v6446_v11 }
 0x198   :  { %5554 = vmatmul.mubr.msk.bf16.vlgmr.msra.gmra.mxu1 %vm2459_vm0, %v1474_v21  ;;  %3700 = vmatprep.subr.bf16.mxu0 %v6454_v13  ;;  %v6469_v21 = vld [vmem:[%s8989_s5 + $0x2cc] ss:$44 sps:$4 sm:$0xff]  }
 0x199   :  { %3718 = vmatpush1.bf16.msra.mxu1 %v6397_v26  ;;  %v6472_v26 = vld [vmem:[%s8989_s5 + $0x27c] ss:$44 sps:$4 sm:$0xff]  }
 0x19a   :  { %3719 = vmatprep.subr.bf16.mxu1 %v6405_v33 }
 0x19b   :  { %3701 = vmatpush2.bf16.msra.mxu0 %v6452_v15 }
 0x19c   :  { %3702 = vmatprep.subr.bf16.mxu0 %v6460_v6 }
 0x19d   :  { %3720 = vmatpush1.bf16.msra.mxu1 %v6403_v32 }
 0x19e   :  { %3721 = vmatprep.subr.bf16.mxu1 %v6411_v36 }
 0x19f   :  { %3703 = vmatpush2.bf16.msra.mxu0 %v6458_v18 }
 0x1a0   :  { %3704 = vmatprep.subr.bf16.mxu0 %v6466_v20 }
 0x1a1   :  { %3722 = vmatpush1.bf16.msra.mxu1 %v6409_v37 }
 0x1a2   :  { %3723 = vmatprep.subr.bf16.mxu1 %v6417_v39  ;;  %v1637_v39 = vld [vmem:[%s8990_s4] sm:$0x3] }
 0x1a3   :  { %3705 = vmatpush2.bf16.msra.mxu0 %v6464_v22  ;;  %v1646_v42 = vrot.slane %v1637_v39, %v7648_v60 }
 0x1a4   :  { %3760 = vmatprep.subr.bf16.mxu0 %v6472_v26 }
 0x1a5   :  { %3724 = vmatpush1.bf16.msra.mxu1 %v6415_v41 }
 0x1a6   :  { %3725 = vmatprep.subr.bf16.mxu1 %v6423_v43  ;;  %v1642_v43 = vrot.slane %v1637_v39, %v7660_v0  ;;  %v6484_v39 = vld [vmem:[%s8989_s5 + $0x1cc] ss:$44 sps:$4 sm:$0xff]  }
 0x1a9   :  { %3726 = vmatpush1.bf16.msra.mxu1 %v6421_v45 }
 0x1aa   :  { %3727 = vmatprep.subr.bf16.mxu1 %v6429_v46 }
 0x1ad   :  { %3728 = vmatpush1.bf16.msra.mxu1 %v6427_v48 }
 0x1ae   :  { %3729 = vmatprep.subr.bf16.mxu1 %v6435_v51 }
 0x1b1   :  { %3730 = vmatpush1.bf16.msra.mxu1 %v6433_v53 }
 0x1b2   :  { %3731 = vmatprep.subr.bf16.mxu1 %v6441_v55 }
 0x1b5   :  { %3732 = vmatpush1.bf16.msra.mxu1 %v6439_v58 }
 0x1b6   :  { %5700 = vmatprep.subr.msk.bf16.mxu1 %vm3640_vm1, %v5690_v3 }
 0x1b9   :  { %3740 = vmatpush2.bf16.msra.mxu1 %v3648_v8 }
 0x1ba   :  { %3741 = vmatprep.subr.bf16.mxu1 %v6451_v10 }
 0x1bd   :  { %3742 = vmatpush2.bf16.msra.mxu1 %v6449_v12 }
 0x1be   :  { %3743 = vmatprep.subr.bf16.mxu1 %v6457_v14 }
 0x1c1   :  { %3744 = vmatpush2.bf16.msra.mxu1 %v6455_v16 }
 0x1c2   :  { %3745 = vmatprep.subr.bf16.mxu1 %v6463_v17 }
 0x1c5   :  { %3746 = vmatpush2.bf16.msra.mxu1 %v6461_v49 }
 0x1c6   :  { %3747 = vmatprep.subr.bf16.mxu1 %v6469_v21 }
 0x1c9   :  { %3748 = vmatpush2.bf16.msra.mxu1 %v6467_v23 }
 0x1ca   :  { %3803 = vmatprep.subr.bf16.mxu1 %v6475_v29 }
 0x1d0   :  { %v2497_v30 = vpop.f32.mrf.mxu1 }
 0x1d1   :  { %v2498_v47 = vadd.f32 %v2497_v30, %v1642_v43  ;;  %v6470_v30 = vld [vmem:[%s8989_s5 + $0x278] ss:$44 sps:$4 sm:$0xff]  }
 0x1d2   :  { %v2499_v31 = vpop.f32.mrf.mxu1  ;;  %v2540_v33 = vpop.f32.mrf.mxu0 }
 0x1d3   :  { %v2500_v62 = vadd.f32 %v2499_v31, %v1646_v42  ;;  %v2541_v55 = vadd.f32 %v2540_v33, %v2498_v47  ;;  %v6473_v31 = vld [vmem:[%s8989_s5 + $0x280] ss:$44 sps:$4 sm:$0xff]   ;;  %v6499_v47 = vld [vmem:[%s8989_s5 + $0x124] ss:$44 sps:$4 sm:$0xff]  }
 0x1d4   :  { %v2501_v32 = vpop.f32.mrf.mxu1  ;;  %v2542_v35 = vpop.f32.mrf.mxu0 }
 0x1d5   :  { %v2502_v46 = vadd.f32 %v2501_v32, %v1642_v43  ;;  %v2543_v53 = vadd.f32 %v2542_v35, %v2500_v62  ;;  %v6478_v35 = vld [vmem:[%s8989_s5 + $0x224] ss:$44 sps:$4 sm:$0xff]   ;;  %v6490_v43 = vld [vmem:[%s8989_s5 + $0x174] ss:$44 sps:$4 sm:$0xff]  }
 0x1d6   :  { %v2503_v34 = vpop.f32.mrf.mxu1  ;;  %v2544_v37 = vpop.f32.mrf.mxu0  ;;  %v6491_v62 = vld [vmem:[%s8989_s5 + $0x178] ss:$44 sps:$4 sm:$0xff]  }
 0x1d7   :  { %v2504_v51 = vadd.f32 %v2503_v34, %v1646_v42  ;;  %v2545_v54 = vadd.f32 %v2544_v37, %v2502_v46  ;;  %v6476_v37 = vld [vmem:[%s8989_s5 + $0x220] ss:$44 sps:$4 sm:$0xff]   ;;  %v6485_v42 = vld [vmem:[%s8989_s5 + $0x1d0] ss:$44 sps:$4 sm:$0xff]  }
 0x1d8   :  { %v2546_v40 = vpop.f32.mrf.mxu0  ;;  %v6496_v46 = vld [vmem:[%s8989_s5 + $0x11c] ss:$44 sps:$4 sm:$0xff]  }
 0x1d9   :  { %v2547_v59 = vadd.f32 %v2546_v40, %v2504_v51  ;;  %v6487_v40 = vld [vmem:[%s8989_s5 + $0x1d4] ss:$44 sps:$4 sm:$0xff]   ;;  %v6502_v51 = vld [vmem:[%s8989_s5 + $0xc4] ss:$44 sps:$4 sm:$0xff]  }
 0x210   :  { %v2583_v36 = vpop.f32.mrf.mxu1 }
 0x211   :  { %v2584_v3 = vadd.f32 %v2583_v36, %v2541_v55  ;;  %v6481_v36 = vld [vmem:[%s8989_s5 + $0x22c] ss:$44 sps:$4 sm:$0xff]  }
 0x212   :  { %v2585_v38 = vpop.f32.mrf.mxu1  ;;  %v2626_v44 = vpop.f32.mrf.mxu0  ;;  %v6508_v55 = vld [vmem:[%s8989_s5 + $0x6c] ss:$44 sps:$4 sm:$0xff]  }
 0x213   :  { %v2586_v1 = vadd.f32 %v2585_v38, %v2543_v53  ;;  %v2627_v11 = vadd.f32 %v2626_v44, %v2584_v3  ;;  %v6479_v38 = vld [vmem:[%s8989_s5 + $0x228] ss:$44 sps:$4 sm:$0xff]   ;;  %v6500_v53 = vld [vmem:[%s8989_s5 + $0xc0] ss:$44 sps:$4 sm:$0xff]  }
 0x214   :  { %v2587_v41 = vpop.f32.mrf.mxu1  ;;  %v2628_v48 = vpop.f32.mrf.mxu0  ;;  %v6493_v44 = vld [vmem:[%s8989_s5 + $0x17c] ss:$44 sps:$4 sm:$0xff]   ;;  %v2873_v3 = vld [vmem:[%s8989_s5 + $0x430] sm:$0x33] }
 0x215   :  { %v2588_v2 = vadd.f32 %v2587_v41, %v2545_v54  ;;  %v2629_v9 = vadd.f32 %v2628_v48, %v2586_v1  ;;  %v6482_v41 = vld [vmem:[%s8989_s5 + $0x1c8] ss:$44 sps:$4 sm:$0xff]   ;;  %v6494_v48 = vld [vmem:[%s8989_s5 + $0x118] ss:$44 sps:$4 sm:$0xff]  }
 0x216   :  { %v2589_v45 = vpop.f32.mrf.mxu1  ;;  %v2630_v56 = vpop.f32.mrf.mxu0  ;;  %v6503_v54 = vld [vmem:[%s8989_s5 + $0xc8] ss:$44 sps:$4 sm:$0xff]  }
 0x217   :  { %v2590_v5 = vadd.f32 %v2589_v45, %v2547_v59  ;;  %v2631_v10 = vadd.f32 %v2630_v56, %v2588_v2  ;;  %v6488_v45 = vld [vmem:[%s8989_s5 + $0x170] ss:$44 sps:$4 sm:$0xff]   ;;  %v6511_v56 = vld [vmem:[%s8989_s5 + $0x74] ss:$44 sps:$4 sm:$0xff]  }
 0x218   :  { %v2632_v7 = vpop.f32.mrf.mxu0  ;;  %v6509_v59 = vld [vmem:[%s8989_s5 + $0x70] ss:$44 sps:$4 sm:$0xff]   ;;  %v6514_v1 = vld [vmem:[%s8989_s5 + $0x14] ss:$44 sps:$4 sm:$0xff]  }
 0x219   :  { %v2633_v13 = vadd.f32 %v2632_v7, %v2590_v5  ;;  %v6517_v2 = vld [vmem:[%s8989_s5 + $0x1c] ss:$44 sps:$4 sm:$0xff]   ;;  %v6515_v5 = vld [vmem:[%s8989_s5 + $0x18] ss:$44 sps:$4 sm:$0xff]  }
 0x21a   :  { %v2874_v7 = vld [vmem:[%s8989_s5 + $0x438] sm:$0x33] }
 0x250   :  { %v2669_v50 = vpop.f32.mrf.mxu1 }
 0x251   :  { %v2670_v16 = vadd.f32 %v2669_v50, %v2627_v11  ;;  %v6497_v50 = vld [vmem:[%s8989_s5 + $0x120] ss:$44 sps:$4 sm:$0xff]   ;;  %v5693_v11 = vcombine.low %v2874_v7, %v2874_v7 }
 0x252   :  { %v2671_v52 = vpop.f32.mrf.mxu1 }
 0x253   :  { %v2672_v14 = vadd.f32 %v2671_v52, %v2629_v9  ;;  %v6505_v52 = vld [vmem:[%s8989_s5 + $0xcc] ss:$44 sps:$4 sm:$0xff]   ;;  %v5694_v9 = vcombine.high %v2874_v7, %v2874_v7 }
 0x254   :  { %v2673_v58 = vpop.f32.mrf.mxu1 }
 0x255   :  { %v2674_v15 = vadd.f32 %v2673_v58, %v2631_v10  ;;  %v6506_v58 = vld [vmem:[%s8989_s5 + $0x68] ss:$44 sps:$4 sm:$0xff]   ;;  %v5691_v10 = vcombine.low %v2873_v3, %v2873_v3 }
 0x256   :  { %v2675_v4 = vpop.f32.mrf.mxu1 }
 0x257   :  { %v2676_v17 = vadd.f32 %v2675_v4, %v2633_v13  ;;  %v6512_v4 = vld [vmem:[%s8989_s5 + $0x10] ss:$44 sps:$4 sm:$0xff]  }
 0x258   :  { %v2712_v8 = vpop.f32.mrf.mxu1  ;;  %v6527_v13 = vld [vmem:[%s8989_s5 + $0x3e4] ss:$44 sps:$4 sm:$0xff]  }
 0x259   :  { %v2713_v20 = vadd.f32 %v2712_v8, %v2670_v16  ;;  %v5692_v8 = vcombine.high %v2873_v3, %v2873_v3  ;;  %v6522_v16 = vld [vmem:[%s8989_s5 + $0x3d8] ss:$44 sps:$4 sm:$0xff]   ;;  %v6580_v3 = vld [vmem:[%s8989_s5 + $0x448] ss:$0 sps:$4 sm:$0x33]  }
 0x25a   :  { %v2714_v12 = vpop.f32.mrf.mxu1  ;;  %v3672_v7 = vsel %vm3640_vm1, %v6580_v3, 0  ;;  %v6654_v3 = vld [vmem:[%s8991_s7 + $0x1e0] ss:$8 sps:$4 sm:$0xff]  }
 0x25b   :  { %v2715_v18 = vadd.f32 %v2714_v12, %v2672_v14  ;;  %v2721_v32 = vmax.f32 %v2713_v20, 0.0  ;;  %v6524_v12 = vld [vmem:[%s8989_s5 + $0x3dc] ss:$44 sps:$4 sm:$0xff]   ;;  %v3654_v14 = vsel %vm3640_vm1, %v5691_v10, 0  ;;  %v6587_v10 = vld [vmem:[%s8989_s5 + $0x394] ss:$44 sps:$4 sm:$0xff]  }
 0x25c   :  { %v2716_v6 = vpop.f32.mrf.mxu1  ;;  %v6531_v20 = vld [vmem:[%s8989_s5 + $0x388] ss:$44 sps:$4 sm:$0xff]  }
 0x25d   :  { %v2717_v49 = vadd.f32 %v2716_v6, %v2674_v15  ;;  %v2722_v26 = vmax.f32 %v2715_v18, 0.0  ;;  %v3660_v15 = vsel %vm3640_vm1, %v5693_v11, 0  ;;  %v6525_v6 = vld [vmem:[%s8989_s5 + $0x3e0] ss:$44 sps:$4 sm:$0xff]   ;;  %v6585_v11 = vld [vmem:[%s8989_s5 + $0x390] ss:$44 sps:$4 sm:$0xff]  }
 0x25e   :  { %v2718_v21 = vpop.f32.mrf.mxu1  ;;  %v6533_v18 = vld [vmem:[%s8989_s5 + $0x38c] ss:$44 sps:$4 sm:$0xff]  }
 0x25f   :  { %v2719_v22 = vadd.f32 %v2718_v21, %v2676_v17  ;;  %v2723_v23 = vmax.f32 %v2717_v49, 0.0  ;;  %v6530_v17 = vld [vmem:[%s8989_s5 + $0x384] ss:$44 sps:$4 sm:$0xff]   ;;  %v6528_v49 = vld [vmem:[%s8989_s5 + $0x380] ss:$44 sps:$4 sm:$0xff]  }
 0x260   :  { %v6536_v21 = vld [vmem:[%s8989_s5 + $0x32c] ss:$44 sps:$4 sm:$0xff]  }
 0x261   :  { %v2724_v29 = vmax.f32 %v2719_v22, 0.0  ;;  %v8156_v34 = vpack.c.bf16 %v2723_v23, %v2721_v32  ;;  %v6539_v22 = vld [vmem:[%s8989_s5 + $0x334] ss:$44 sps:$4 sm:$0xff]   ;;  %v6543_v32 = vld [vmem:[%s8989_s5 + $0x2d8] ss:$44 sps:$4 sm:$0xff]  }
 0x262   :  { %v6534_v23 = vld [vmem:[%s8989_s5 + $0x328] ss:$44 sps:$4 sm:$0xff]  }
 0x263   :  { %v8154_v33 = vpack.c.bf16 %v2724_v29, %v2722_v26  ;;  %v6537_v26 = vld [vmem:[%s8989_s5 + $0x330] ss:$44 sps:$4 sm:$0xff]   ;;  %v6542_v29 = vld [vmem:[%s8989_s5 + $0x2d4] ss:$44 sps:$4 sm:$0xff]  }
 0x265   :  { %5699 = vmatprep.mubr.msk.bf16.mxu0 %vm3636_vm2, %v8154_v33  ;;  %5701 = vmatprep.mubr.msk.bf16.mxu1 %vm3636_vm2, %v8154_v33 }
 0x266   :  { %3707 = vmatmul.mubr.bf16.vlgmr.msra.gmra.mxu0 %v8156_v34  ;;  %3750 = vmatmul.mubr.bf16.vlgmr.msra.gmra.mxu1 %v8156_v34 }
 0x267   :  { %3761 = vmatpush1.bf16.msra.mxu0 %v6470_v30  ;;  %3804 = vmatpush1.bf16.msra.mxu1 %v6473_v31  ;;  %v6545_v30 = vld [vmem:[%s8989_s5 + $0x2dc] ss:$44 sps:$4 sm:$0xff]  }
 0x268   :  { %5703 = vmatprep.mubr.msk.bf16.mxu0 %vm3636_vm2, %v8154_v33  ;;  %5705 = vmatprep.mubr.msk.bf16.mxu1 %vm3636_vm2, %v8154_v33  ;;  %v6540_v31 = vld [vmem:[%s8989_s5 + $0x2d0] ss:$44 sps:$4 sm:$0xff]  }
 0x269   :  { %3762 = vmatprep.subr.bf16.mxu0 %v6478_v35  ;;  %3805 = vmatprep.subr.bf16.mxu1 %v6481_v36  ;;  %v6548_v35 = vld [vmem:[%s8989_s5 + $0x28c] ss:$44 sps:$4 sm:$0xff]   ;;  %v6546_v36 = vld [vmem:[%s8989_s5 + $0x288] ss:$44 sps:$4 sm:$0xff]  }
 0x26b   :  { %3763 = vmatpush1.bf16.msra.mxu0 %v6476_v37  ;;  %3806 = vmatpush1.bf16.msra.mxu1 %v6479_v38  ;;  %v6549_v37 = vld [vmem:[%s8989_s5 + $0x290] ss:$44 sps:$4 sm:$0xff]   ;;  %v6552_v38 = vld [vmem:[%s8989_s5 + $0x234] ss:$44 sps:$4 sm:$0xff]  }
 0x26c   :  { %3764 = vmatprep.subr.bf16.mxu0 %v6484_v39  ;;  %3807 = vmatprep.subr.bf16.mxu1 %v6487_v40  ;;  %v6550_v39 = vld [vmem:[%s8989_s5 + $0x230] ss:$44 sps:$4 sm:$0xff]   ;;  %v6553_v40 = vld [vmem:[%s8989_s5 + $0x238] ss:$44 sps:$4 sm:$0xff]  }
 0x26f   :  { %3765 = vmatpush1.bf16.msra.mxu0 %v6482_v41  ;;  %3808 = vmatpush1.bf16.msra.mxu1 %v6485_v42  ;;  %v6556_v41 = vld [vmem:[%s8989_s5 + $0x1dc] ss:$44 sps:$4 sm:$0xff]   ;;  %v6554_v42 = vld [vmem:[%s8989_s5 + $0x1d8] ss:$44 sps:$4 sm:$0xff]  }
 0x270   :  { %3766 = vmatprep.subr.bf16.mxu0 %v6490_v43  ;;  %3809 = vmatprep.subr.bf16.mxu1 %v6493_v44  ;;  %v6560_v43 = vld [vmem:[%s8989_s5 + $0x184] ss:$44 sps:$4 sm:$0xff]   ;;  %v6558_v44 = vld [vmem:[%s8989_s5 + $0x180] ss:$44 sps:$4 sm:$0xff]  }
 0x273   :  { %3767 = vmatpush1.bf16.msra.mxu0 %v6488_v45  ;;  %3810 = vmatpush1.bf16.msra.mxu1 %v6491_v62  ;;  %v6561_v45 = vld [vmem:[%s8989_s5 + $0x188] ss:$44 sps:$4 sm:$0xff]   ;;  %v6564_v62 = vld [vmem:[%s8989_s5 + $0x12c] ss:$44 sps:$4 sm:$0xff]  }
 0x274   :  { %3768 = vmatprep.subr.bf16.mxu0 %v6496_v46  ;;  %3811 = vmatprep.subr.bf16.mxu1 %v6499_v47  ;;  %v6562_v46 = vld [vmem:[%s8989_s5 + $0x128] ss:$44 sps:$4 sm:$0xff]   ;;  %v6565_v47 = vld [vmem:[%s8989_s5 + $0x130] ss:$44 sps:$4 sm:$0xff]  }
 0x277   :  { %3769 = vmatpush1.bf16.msra.mxu0 %v6494_v48  ;;  %3812 = vmatpush1.bf16.msra.mxu1 %v6497_v50  ;;  %v6568_v48 = vld [vmem:[%s8989_s5 + $0xd4] ss:$44 sps:$4 sm:$0xff]   ;;  %v6566_v50 = vld [vmem:[%s8989_s5 + $0xd0] ss:$44 sps:$4 sm:$0xff]  }
 0x278   :  { %3770 = vmatprep.subr.bf16.mxu0 %v6502_v51  ;;  %3813 = vmatprep.subr.bf16.mxu1 %v6505_v52  ;;  %v6569_v51 = vld [vmem:[%s8989_s5 + $0xd8] ss:$44 sps:$4 sm:$0xff]   ;;  %v6572_v52 = vld [vmem:[%s8989_s5 + $0x7c] ss:$44 sps:$4 sm:$0xff]  }
 0x27b   :  { %3771 = vmatpush1.bf16.msra.mxu0 %v6500_v53  ;;  %3814 = vmatpush1.bf16.msra.mxu1 %v6503_v54  ;;  %v6570_v53 = vld [vmem:[%s8989_s5 + $0x78] ss:$44 sps:$4 sm:$0xff]   ;;  %v6573_v54 = vld [vmem:[%s8989_s5 + $0x80] ss:$44 sps:$4 sm:$0xff]  }
 0x27c   :  { %3772 = vmatprep.subr.bf16.mxu0 %v6508_v55  ;;  %3815 = vmatprep.subr.bf16.mxu1 %v6511_v56  ;;  %v6576_v55 = vld [vmem:[%s8989_s5 + $0x24] ss:$44 sps:$4 sm:$0xff]  }
 0x27d   :  { %v2875_v56 = vld [vmem:[%s8989_s5 + $0x440] sm:$0x33] }
 0x27f   :  { %3773 = vmatpush1.bf16.msra.mxu0 %v6506_v58  ;;  %3816 = vmatpush1.bf16.msra.mxu1 %v6509_v59  ;;  %v6574_v58 = vld [vmem:[%s8989_s5 + $0x20] ss:$44 sps:$4 sm:$0xff]   ;;  %v6577_v59 = vld [vmem:[%s8989_s5 + $0x28] ss:$44 sps:$4 sm:$0xff]  }
 0x280   :  { %3774 = vmatprep.subr.bf16.mxu0 %v6514_v1  ;;  %3817 = vmatprep.subr.bf16.mxu1 %v6517_v2  ;;  %v5696_v1 = vcombine.high %v2875_v56, %v2875_v56  ;;  %v5695_v2 = vcombine.low %v2875_v56, %v2875_v56  ;;  %v6645_v56 = vld [vmem:[%s8991_s7 + $0xf0] ss:$8 sps:$4 sm:$0xff]  }
 0x283   :  { %3775 = vmatpush1.bf16.msra.mxu0 %v6512_v4  ;;  %3818 = vmatpush1.bf16.msra.mxu1 %v6515_v5  ;;  %v3666_v4 = vsel %vm3640_vm1, %v5695_v2, 0  ;;  %v6583_v5 = vld [vmem:[%s8989_s5 + $0x3ec] ss:$44 sps:$4 sm:$0xff]   ;;  %v6651_v2 = vld [vmem:[%s8991_s7 + $0xe0] ss:$8 sps:$4 sm:$0xff]  }
 0x284   :  { %5702 = vmatprep.subr.msk.bf16.mxu0 %vm3640_vm1, %v5692_v8  ;;  %5704 = vmatprep.subr.msk.bf16.mxu1 %vm3640_vm1, %v5694_v9  ;;  %v6581_v8 = vld [vmem:[%s8989_s5 + $0x3e8] ss:$44 sps:$4 sm:$0xff]   ;;  %v6584_v9 = vld [vmem:[%s8989_s5 + $0x3f0] ss:$44 sps:$4 sm:$0xff]  }
 0x287   :  { %3783 = vmatpush2.bf16.msra.mxu0 %v3654_v14  ;;  %3826 = vmatpush2.bf16.msra.mxu1 %v3660_v15  ;;  %v6589_v14 = vld [vmem:[%s8989_s5 + $0x338] ss:$44 sps:$4 sm:$0xff]   ;;  %v6592_v15 = vld [vmem:[%s8989_s5 + $0x340] ss:$44 sps:$4 sm:$0xff]  }
 0x288   :  { %3784 = vmatprep.subr.bf16.mxu0 %v6524_v12  ;;  %3827 = vmatprep.subr.bf16.mxu1 %v6527_v13  ;;  %v6588_v12 = vld [vmem:[%s8989_s5 + $0x398] ss:$44 sps:$4 sm:$0xff]   ;;  %v6591_v13 = vld [vmem:[%s8989_s5 + $0x33c] ss:$44 sps:$4 sm:$0xff]  }
 0x28b   :  { %3785 = vmatpush2.bf16.msra.mxu0 %v6522_v16  ;;  %3828 = vmatpush2.bf16.msra.mxu1 %v6525_v6  ;;  %v6595_v16 = vld [vmem:[%s8989_s5 + $0x2e4] ss:$44 sps:$4 sm:$0xff]   ;;  %v6593_v6 = vld [vmem:[%s8989_s5 + $0x2e0] ss:$44 sps:$4 sm:$0xff]  }
 0x28c   :  { %3786 = vmatprep.subr.bf16.mxu0 %v6530_v17  ;;  %3829 = vmatprep.subr.bf16.mxu1 %v6533_v18  ;;  %v6596_v17 = vld [vmem:[%s8989_s5 + $0x2e8] ss:$44 sps:$4 sm:$0xff]  }
 0x28d   :  { %v6599_v18 = vld [vmem:[%s8991_s7 + $0x74] ss:$8 sps:$4 sm:$0xff]  }
 0x28f   :  { %3787 = vmatpush2.bf16.msra.mxu0 %v6528_v49  ;;  %3830 = vmatpush2.bf16.msra.mxu1 %v6531_v20  ;;  %v6602_v49 = vld [vmem:[%s8991_s7 + $0x174] ss:$8 sps:$4 sm:$0xff]   ;;  %v6597_v20 = vld [vmem:[%s8991_s7 + $0x70] ss:$8 sps:$4 sm:$0xff]  }
 0x290   :  { %3788 = vmatprep.subr.bf16.mxu0 %v6536_v21  ;;  %3831 = vmatprep.subr.bf16.mxu1 %v6539_v22  ;;  %v6600_v21 = vld [vmem:[%s8991_s7 + $0x170] ss:$8 sps:$4 sm:$0xff]   ;;  %v6605_v22 = vld [vmem:[%s8991_s7 + $0x64] ss:$8 sps:$4 sm:$0xff]  }
 0x293   :  { %3789 = vmatpush2.bf16.msra.mxu0 %v6534_v23  ;;  %3832 = vmatpush2.bf16.msra.mxu1 %v6537_v26  ;;  %v6608_v23 = vld [vmem:[%s8991_s7 + $0x164] ss:$8 sps:$4 sm:$0xff]   ;;  %v6603_v26 = vld [vmem:[%s8991_s7 + $0x60] ss:$8 sps:$4 sm:$0xff]  }
 0x294   :  { %3790 = vmatprep.subr.bf16.mxu0 %v6542_v29  ;;  %3833 = vmatprep.subr.bf16.mxu1 %v6545_v30  ;;  %v6606_v29 = vld [vmem:[%s8991_s7 + $0x160] ss:$8 sps:$4 sm:$0xff]   ;;  %v6611_v30 = vld [vmem:[%s8991_s7 + $0x54] ss:$8 sps:$4 sm:$0xff]  }
 0x297   :  { %3791 = vmatpush2.bf16.msra.mxu0 %v6540_v31  ;;  %3834 = vmatpush2.bf16.msra.mxu1 %v6543_v32  ;;  %v6609_v31 = vld [vmem:[%s8991_s7 + $0x50] ss:$8 sps:$4 sm:$0xff]  }
 0x298   :  { %3846 = vmatprep.subr.bf16.mxu0 %v6548_v35  ;;  %3889 = vmatprep.subr.bf16.mxu1 %v6840_v19  ;;  %v6612_v32 = vld [vmem:[%s8991_s7 + $0x150] ss:$8 sps:$4 sm:$0xff]   ;;  %v6617_v35 = vld [vmem:[%s8991_s7 + $0x44] ss:$8 sps:$4 sm:$0xff]  }
 0x29a   :  { %3793 = vmatmul.mubr.bf16.vlgmr.msra.gmra.mxu0 %v8156_v34  ;;  %3836 = vmatmul.mubr.bf16.vlgmr.msra.gmra.mxu1 %v8156_v34 }
 0x29b   :  { %3847 = vmatpush1.bf16.msra.mxu0 %v6546_v36  ;;  %5707 = vmatprep.mubr.msk.bf16.mxu0 %vm3636_vm2, %v8154_v33  ;;  %v6620_v36 = vld [vmem:[%s8991_s7 + $0x144] ss:$8 sps:$4 sm:$0xff]  }
 0x29c   :  { %3890 = vmatpush1.bf16.msra.mxu1 %v6549_v37  ;;  %5708 = vmatprep.mubr.msk.bf16.mxu1 %vm3636_vm2, %v8154_v33  ;;  %v6557_v33 = vld [vmem:[%s8989_s5 + $0x1e0] ss:$44 sps:$4 sm:$0xff]  }
 0x29d   :  { %3848 = vmatprep.subr.bf16.mxu0 %v6552_v38  ;;  %3891 = vmatprep.subr.bf16.mxu1 %v6840_v19  ;;  %v6615_v37 = vld [vmem:[%s8991_s7 + $0x40] ss:$8 sps:$4 sm:$0xff]  }
 0x29e   :  { %v6618_v38 = vld [vmem:[%s8991_s7 + $0x140] ss:$8 sps:$4 sm:$0xff]  }
 0x29f   :  { %3849 = vmatpush1.bf16.msra.mxu0 %v6550_v39  ;;  %v6623_v39 = vld [vmem:[%s8991_s7 + $0x34] ss:$8 sps:$4 sm:$0xff]  }
 0x2a0   :  { %3892 = vmatpush1.bf16.msra.mxu1 %v6553_v40  ;;  %3850 = vmatprep.subr.bf16.mxu0 %v6556_v41  ;;  %v6626_v40 = vld [vmem:[%s8991_s7 + $0x134] ss:$8 sps:$4 sm:$0xff]   ;;  %v6621_v41 = vld [vmem:[%s8991_s7 + $0x30] ss:$8 sps:$4 sm:$0xff]  }
 0x2a1   :  { %3893 = vmatprep.subr.bf16.mxu1 %v6840_v19 }
 0x2a3   :  { %3851 = vmatpush1.bf16.msra.mxu0 %v6554_v42  ;;  %v6624_v42 = vld [vmem:[%s8991_s7 + $0x130] ss:$8 sps:$4 sm:$0xff]  }
 0x2a4   :  { %3894 = vmatpush1.bf16.msra.mxu1 %v6557_v33  ;;  %3852 = vmatprep.subr.bf16.mxu0 %v6560_v43  ;;  %v6629_v33 = vld [vmem:[%s8991_s7 + $0x24] ss:$8 sps:$4 sm:$0xff]  }
 0x2a5   :  { %3895 = vmatprep.subr.bf16.mxu1 %v6840_v19  ;;  %v6632_v43 = vld [vmem:[%s8991_s7 + $0x124] ss:$8 sps:$4 sm:$0xff]  }
 0x2a7   :  { %3853 = vmatpush1.bf16.msra.mxu0 %v6558_v44  ;;  %v6627_v44 = vld [vmem:[%s8991_s7 + $0x20] ss:$8 sps:$4 sm:$0xff]  }
 0x2a8   :  { %3896 = vmatpush1.bf16.msra.mxu1 %v6561_v45  ;;  %3854 = vmatprep.subr.bf16.mxu0 %v6564_v62  ;;  %v6630_v45 = vld [vmem:[%s8991_s7 + $0x120] ss:$8 sps:$4 sm:$0xff]   ;;  %v6635_v62 = vld [vmem:[%s8991_s7 + $0x14] ss:$8 sps:$4 sm:$0xff]  }
 0x2a9   :  { %3897 = vmatprep.subr.bf16.mxu1 %v6840_v19 }
 0x2ab   :  { %3855 = vmatpush1.bf16.msra.mxu0 %v6562_v46  ;;  %v6638_v46 = vld [vmem:[%s8991_s7 + $0x114] ss:$8 sps:$4 sm:$0xff]  }
 0x2ac   :  { %3898 = vmatpush1.bf16.msra.mxu1 %v6565_v47  ;;  %3856 = vmatprep.subr.bf16.mxu0 %v6568_v48  ;;  %v6633_v47 = vld [vmem:[%s8991_s7 + $0x10] ss:$8 sps:$4 sm:$0xff]  }
 0x2ad   :  { %3899 = vmatprep.subr.bf16.mxu1 %v6840_v19  ;;  %v6636_v48 = vld [vmem:[%s8991_s7 + $0x110] ss:$8 sps:$4 sm:$0xff]  }
 0x2af   :  { %3857 = vmatpush1.bf16.msra.mxu0 %v6566_v50  ;;  %v6641_v50 = vld [vmem:[%s8991_s7 + $0x4] ss:$8 sps:$4 sm:$0xff]  }
 0x2b0   :  { %3900 = vmatpush1.bf16.msra.mxu1 %v6569_v51  ;;  %3858 = vmatprep.subr.bf16.mxu0 %v6572_v52  ;;  %v6644_v51 = vld [vmem:[%s8991_s7 + $0x104] ss:$8 sps:$4 sm:$0xff]   ;;  %v6639_v52 = vld [vmem:[%s8991_s7] ss:$8 sps:$4 sm:$0xff]  }
 0x2b1   :  { %3901 = vmatprep.subr.bf16.mxu1 %v6840_v19 }
 0x2b3   :  { %3859 = vmatpush1.bf16.msra.mxu0 %v6570_v53  ;;  %v6642_v53 = vld [vmem:[%s8991_s7 + $0x100] ss:$8 sps:$4 sm:$0xff]  }
 0x2b4   :  { %3902 = vmatpush1.bf16.msra.mxu1 %v6573_v54  ;;  %3860 = vmatprep.subr.bf16.mxu0 %v6576_v55  ;;  %v6647_v54 = vld [vmem:[%s8991_s7 + $0xf4] ss:$8 sps:$4 sm:$0xff]  }
 0x2b5   :  { %3903 = vmatprep.subr.bf16.mxu1 %v6840_v19  ;;  %v6650_v55 = vld [vmem:[%s8991_s7 + $0x1f4] ss:$8 sps:$4 sm:$0xff]  }
 0x2b7   :  { %3861 = vmatpush1.bf16.msra.mxu0 %v6574_v58  ;;  %v6648_v58 = vld [vmem:[%s8991_s7 + $0x1f0] ss:$8 sps:$4 sm:$0xff]  }
 0x2b8   :  { %3904 = vmatpush1.bf16.msra.mxu1 %v6577_v59  ;;  %5706 = vmatprep.subr.msk.bf16.mxu0 %vm3640_vm1, %v5696_v1  ;;  %v6653_v59 = vld [vmem:[%s8991_s7 + $0xe4] ss:$8 sps:$4 sm:$0xff]  }
 0x2b9   :  { %3911 = vmatprep.subr.bf16.mxu1 %v6840_v19  ;;  %v6656_v1 = vld [vmem:[%s8991_s7 + $0x1e4] ss:$8 sps:$4 sm:$0xff]  }
 0x2bb   :  { %3869 = vmatpush2.bf16.msra.mxu0 %v3666_v4  ;;  %v6659_v4 = vld [vmem:[%s8991_s7 + $0xd4] ss:$8 sps:$4 sm:$0xff]  }
 0x2bc   :  { %3912 = vmatpush2.bf16.msra.mxu1 %v3672_v7  ;;  %3870 = vmatprep.subr.bf16.mxu0 %v6583_v5  ;;  %v6662_v5 = vld [vmem:[%s8991_s7 + $0x1d4] ss:$8 sps:$4 sm:$0xff]   ;;  %v6657_v7 = vld [vmem:[%s8991_s7 + $0xd0] ss:$8 sps:$4 sm:$0xff]  }
 0x2bd   :  { %3913 = vmatprep.subr.bf16.mxu1 %v6840_v19 }
 0x2bf   :  { %3871 = vmatpush2.bf16.msra.mxu0 %v6581_v8  ;;  %v6660_v8 = vld [vmem:[%s8991_s7 + $0x1d0] ss:$8 sps:$4 sm:$0xff]  }
 0x2c0   :  { %3914 = vmatpush2.bf16.msra.mxu1 %v6584_v9  ;;  %3872 = vmatprep.subr.bf16.mxu0 %v6587_v10  ;;  %v6665_v9 = vld [vmem:[%s8991_s7 + $0xc4] ss:$8 sps:$4 sm:$0xff]  }
 0x2c1   :  { %3915 = vmatprep.subr.bf16.mxu1 %v6840_v19  ;;  %v6668_v10 = vld [vmem:[%s8991_s7 + $0x1c4] ss:$8 sps:$4 sm:$0xff]  }
 0x2c3   :  { %3873 = vmatpush2.bf16.msra.mxu0 %v6585_v11  ;;  %v6663_v11 = vld [vmem:[%s8991_s7 + $0xc0] ss:$8 sps:$4 sm:$0xff]  }
 0x2c4   :  { %3916 = vmatpush2.bf16.msra.mxu1 %v6588_v12  ;;  %3874 = vmatprep.subr.bf16.mxu0 %v6591_v13  ;;  %v6666_v12 = vld [vmem:[%s8991_s7 + $0x1c0] ss:$8 sps:$4 sm:$0xff]   ;;  %v6671_v13 = vld [vmem:[%s8991_s7 + $0xb4] ss:$8 sps:$4 sm:$0xff]  }
 0x2c5   :  { %3917 = vmatprep.subr.bf16.mxu1 %v6840_v19 }
 0x2c7   :  { %3875 = vmatpush2.bf16.msra.mxu0 %v6589_v14  ;;  %v6674_v14 = vld [vmem:[%s8991_s7 + $0x1b4] ss:$8 sps:$4 sm:$0xff]  }
 0x2c8   :  { %3918 = vmatpush2.bf16.msra.mxu1 %v6592_v15  ;;  %3876 = vmatprep.subr.bf16.mxu0 %v6595_v16  ;;  %v6669_v15 = vld [vmem:[%s8991_s7 + $0xb0] ss:$8 sps:$4 sm:$0xff]  }
 0x2c9   :  { %3919 = vmatprep.subr.bf16.mxu1 %v6840_v19  ;;  %v6672_v16 = vld [vmem:[%s8991_s7 + $0x1b0] ss:$8 sps:$4 sm:$0xff]  }
 0x2cb   :  { %3877 = vmatpush2.bf16.msra.mxu0 %v6593_v6  ;;  %v6677_v6 = vld [vmem:[%s8991_s7 + $0xa4] ss:$8 sps:$4 sm:$0xff]  }
 0x2cc   :  { %3920 = vmatpush2.bf16.msra.mxu1 %v6596_v17  ;;  %4950 = vmatprep.subr.bf16.mxu0 %v6599_v18  ;;  %v6680_v17 = vld [vmem:[%s8991_s7 + $0x1a4] ss:$8 sps:$4 sm:$0xff]   ;;  %v6675_v18 = vld [vmem:[%s8991_s7 + $0xa0] ss:$8 sps:$4 sm:$0xff]  }
 0x2cd   :  { %4993 = vmatprep.subr.bf16.mxu1 %v6602_v49  ;;  %v6678_v49 = vld [vmem:[%s8991_s7 + $0x1a0] ss:$8 sps:$4 sm:$0xff]  }
 0x2ce   :  { %3879 = vmatmul.mubr.bf16.vlgmr.msra.gmra.mxu0 %v8156_v34 }
 0x2cf   :  { %3922 = vmatmul.mubr.bf16.vlgmr.msra.gmra.mxu1 %v8156_v34  ;;  %4951 = vmatpush1.bf16.msra.mxu0 %v6597_v20  ;;  %v6614_v34 = vld [vmem:[%s8991_s7 + $0x154] ss:$8 sps:$4 sm:$0xff]  }
 0x2d0   :  { %4994 = vmatpush1.bf16.msra.mxu1 %v6600_v21  ;;  %4952 = vmatprep.subr.bf16.mxu0 %v6605_v22  ;;  %v6683_v20 = vld [vmem:[%s8991_s7 + $0x94] ss:$8 sps:$4 sm:$0xff]   ;;  %v6681_v22 = vld [vmem:[%s8991_s7 + $0x90] ss:$8 sps:$4 sm:$0xff]  }
 0x2d1   :  { %4995 = vmatprep.subr.bf16.mxu1 %v6608_v23  ;;  %v6686_v21 = vld [vmem:[%s8991_s7 + $0x194] ss:$8 sps:$4 sm:$0xff]   ;;  %v6684_v23 = vld [vmem:[%s8991_s7 + $0x190] ss:$8 sps:$4 sm:$0xff]  }
 0x2d3   :  { %4953 = vmatpush1.bf16.msra.mxu0 %v6603_v26  ;;  %v6689_v26 = vld [vmem:[%s8991_s7 + $0x84] ss:$8 sps:$4 sm:$0xff]  }
 0x2d4   :  { %4996 = vmatpush1.bf16.msra.mxu1 %v6606_v29  ;;  %4954 = vmatprep.subr.bf16.mxu0 %v6611_v30  ;;  %v6692_v29 = vld [vmem:[%s8991_s7 + $0x184] ss:$8 sps:$4 sm:$0xff]   ;;  %v6687_v30 = vld [vmem:[%s8991_s7 + $0x80] ss:$8 sps:$4 sm:$0xff]  }
 0x2d5   :  { %4997 = vmatprep.subr.bf16.mxu1 %v6614_v34  ;;  %v6690_v34 = vld [vmem:[%s8991_s7 + $0x180] ss:$8 sps:$4 sm:$0xff]  }
 0x2d7   :  { %4955 = vmatpush1.bf16.msra.mxu0 %v6609_v31  ;;  %v6695_v31 = vld [vmem:[%s8991_s7 + $0x274] ss:$8 sps:$4 sm:$0xff]  }
 0x2d8   :  { %4998 = vmatpush1.bf16.msra.mxu1 %v6612_v32  ;;  %4956 = vmatprep.subr.bf16.mxu0 %v6617_v35  ;;  %v6698_v32 = vld [vmem:[%s8991_s7 + $0x374] ss:$8 sps:$4 sm:$0xff]   ;;  %v8649_v35 = vld [vmem:[%s8992_s6] sm:$0xff] }
 0x2d9   :  { %4999 = vmatprep.subr.bf16.mxu1 %v6620_v36 }
 0x2db   :  { %4957 = vmatpush1.bf16.msra.mxu0 %v6615_v37 }
 0x2dc   :  { %5000 = vmatpush1.bf16.msra.mxu1 %v6618_v38  ;;  %4958 = vmatprep.subr.bf16.mxu0 %v6623_v39  ;;  %v2888_v38 = vrot.slane %v8649_v35, %v7648_v60  ;;  %v2896_v39 = vrot.slane %v8649_v35, %v249_v63 }
 0x2dd   :  { %5001 = vmatprep.subr.bf16.mxu1 %v6626_v40  ;;  %v2884_v40 = vrot.slane %v8649_v35, %v7660_v0 }
 0x2df   :  { %4959 = vmatpush1.bf16.msra.mxu0 %v6621_v41  ;;  %v2892_v41 = vrot.slane %v8649_v35, %v7651_v61 }
 0x2e0   :  { %5002 = vmatpush1.bf16.msra.mxu1 %v6624_v42  ;;  %4960 = vmatprep.subr.bf16.mxu0 %v6629_v33 }
 0x2e1   :  { %5003 = vmatprep.subr.bf16.mxu1 %v6632_v43 }
 0x2e3   :  { %4961 = vmatpush1.bf16.msra.mxu0 %v6627_v44 }
 0x2e4   :  { %5004 = vmatpush1.bf16.msra.mxu1 %v6630_v45  ;;  %4962 = vmatprep.subr.bf16.mxu0 %v6635_v62 }
 0x2e5   :  { %5005 = vmatprep.subr.bf16.mxu1 %v6638_v46 }
 0x2e7   :  { %4963 = vmatpush1.bf16.msra.mxu0 %v6633_v47 }
 0x2e8   :  { %5006 = vmatpush1.bf16.msra.mxu1 %v6636_v48  ;;  %4964 = vmatprep.subr.bf16.mxu0 %v6641_v50 }
 0x2e9   :  { %5007 = vmatprep.subr.bf16.mxu1 %v6644_v51 }
 0x2eb   :  { %4965 = vmatpush1.bf16.msra.mxu0 %v6639_v52 }
 0x2ec   :  { %5008 = vmatpush1.bf16.msra.mxu1 %v6642_v53  ;;  %4966 = vmatprep.subr.bf16.mxu0 %v6647_v54 }
 0x2ed   :  { %5009 = vmatprep.subr.bf16.mxu1 %v6650_v55 }
 0x2ef   :  { %4967 = vmatpush2.bf16.msra.mxu0 %v6645_v56 }
 0x2f0   :  { %5010 = vmatpush2.bf16.msra.mxu1 %v6648_v58  ;;  %4968 = vmatprep.subr.bf16.mxu0 %v6653_v59 }
 0x2f1   :  { %5011 = vmatprep.subr.bf16.mxu1 %v6656_v1 }
 0x2f3   :  { %4969 = vmatpush2.bf16.msra.mxu0 %v6651_v2 }
 0x2f4   :  { %5012 = vmatpush2.bf16.msra.mxu1 %v6654_v3  ;;  %4970 = vmatprep.subr.bf16.mxu0 %v6659_v4 }
 0x2f5   :  { %5013 = vmatprep.subr.bf16.mxu1 %v6662_v5 }
 0x2f7   :  { %4971 = vmatpush2.bf16.msra.mxu0 %v6657_v7  ;;  %v6693_v7 = vld [vmem:[%s8991_s7 + $0x270] ss:$8 sps:$4 sm:$0xff]  }
 0x2f8   :  { %5014 = vmatpush2.bf16.msra.mxu1 %v6660_v8  ;;  %4972 = vmatprep.subr.bf16.mxu0 %v6665_v9  ;;  %v6696_v8 = vld [vmem:[%s8991_s7 + $0x370] ss:$8 sps:$4 sm:$0xff]  }
 0x2f9   :  { %5015 = vmatprep.subr.bf16.mxu1 %v6668_v10 }
 0x2fb   :  { %4973 = vmatpush2.bf16.msra.mxu0 %v6663_v11  ;;  %v6701_v11 = vld [vmem:[%s8991_s7 + $0x264] ss:$8 sps:$4 sm:$0xff]  }
 0x2fc   :  { %5016 = vmatpush2.bf16.msra.mxu1 %v6666_v12  ;;  %4974 = vmatprep.subr.bf16.mxu0 %v6671_v13  ;;  %v6704_v12 = vld [vmem:[%s8991_s7 + $0x364] ss:$8 sps:$4 sm:$0xff]   ;;  %v6699_v13 = vld [vmem:[%s8991_s7 + $0x260] ss:$8 sps:$4 sm:$0xff]  }
 0x2fd   :  { %5017 = vmatprep.subr.bf16.mxu1 %v6674_v14  ;;  %v6702_v14 = vld [vmem:[%s8991_s7 + $0x360] ss:$8 sps:$4 sm:$0xff]  }
 0x2ff   :  { %4975 = vmatpush2.bf16.msra.mxu0 %v6669_v15  ;;  %v6707_v15 = vld [vmem:[%s8991_s7 + $0x254] ss:$8 sps:$4 sm:$0xff]  }
 0x300   :  { %5018 = vmatpush2.bf16.msra.mxu1 %v6672_v16  ;;  %4976 = vmatprep.subr.bf16.mxu0 %v6677_v6  ;;  %v6710_v16 = vld [vmem:[%s8991_s7 + $0x354] ss:$8 sps:$4 sm:$0xff]   ;;  %v6705_v6 = vld [vmem:[%s8991_s7 + $0x250] ss:$8 sps:$4 sm:$0xff]  }
 0x301   :  { %5019 = vmatprep.subr.bf16.mxu1 %v6680_v17  ;;  %v6708_v17 = vld [vmem:[%s8991_s7 + $0x350] ss:$8 sps:$4 sm:$0xff]  }
 0x303   :  { %4977 = vmatpush2.bf16.msra.mxu0 %v6675_v18  ;;  %v6713_v18 = vld [vmem:[%s8991_s7 + $0x244] ss:$8 sps:$4 sm:$0xff]  }
 0x304   :  { %5020 = vmatpush2.bf16.msra.mxu1 %v6678_v49  ;;  %4978 = vmatprep.subr.bf16.mxu0 %v6683_v20  ;;  %v6716_v49 = vld [vmem:[%s8991_s7 + $0x344] ss:$8 sps:$4 sm:$0xff]   ;;  %v6711_v20 = vld [vmem:[%s8991_s7 + $0x240] ss:$8 sps:$4 sm:$0xff]  }
 0x305   :  { %5021 = vmatprep.subr.bf16.mxu1 %v6686_v21  ;;  %v6714_v21 = vld [vmem:[%s8991_s7 + $0x340] ss:$8 sps:$4 sm:$0xff]  }
 0x307   :  { %4979 = vmatpush2.bf16.msra.mxu0 %v6681_v22  ;;  %v6719_v22 = vld [vmem:[%s8991_s7 + $0x234] ss:$8 sps:$4 sm:$0xff]  }
 0x308   :  { %5022 = vmatpush2.bf16.msra.mxu1 %v6684_v23  ;;  %4980 = vmatprep.subr.bf16.mxu0 %v6689_v26  ;;  %v6722_v23 = vld [vmem:[%s8991_s7 + $0x334] ss:$8 sps:$4 sm:$0xff]   ;;  %v6717_v26 = vld [vmem:[%s8991_s7 + $0x230] ss:$8 sps:$4 sm:$0xff]  }
 0x309   :  { %5023 = vmatprep.subr.bf16.mxu1 %v6692_v29  ;;  %v6720_v29 = vld [vmem:[%s8991_s7 + $0x330] ss:$8 sps:$4 sm:$0xff]  }
 0x30b   :  { %4981 = vmatpush2.bf16.msra.mxu0 %v6687_v30  ;;  %v6725_v30 = vld [vmem:[%s8991_s7 + $0x224] ss:$8 sps:$4 sm:$0xff]  }
 0x30c   :  { %5024 = vmatpush2.bf16.msra.mxu1 %v6690_v34  ;;  %5036 = vmatprep.subr.bf16.mxu0 %v6695_v31  ;;  %v6728_v34 = vld [vmem:[%s8991_s7 + $0x324] ss:$8 sps:$4 sm:$0xff]   ;;  %v6723_v31 = vld [vmem:[%s8991_s7 + $0x220] ss:$8 sps:$4 sm:$0xff]  }
 0x30d   :  { %5079 = vmatprep.subr.bf16.mxu1 %v6698_v32  ;;  %v6726_v32 = vld [vmem:[%s8991_s7 + $0x320] ss:$8 sps:$4 sm:$0xff]  }
 0x326   :  { %v3708_v36 = vpop.f32.mrf.mxu0  ;;  %v3751_v37 = vpop.f32.mrf.mxu1 }
 0x327   :  { %v3709_v48 = vadd.f32 %v3708_v36, %v2884_v40  ;;  %v3752_v50 = vadd.f32 %v3751_v37, %v2892_v41  ;;  %v6731_v36 = vld [vmem:[%s8991_s7 + $0x214] ss:$8 sps:$4 sm:$0xff]  }
 0x328   :  { %v3710_v42 = vpop.f32.mrf.mxu0  ;;  %v3753_v33 = vpop.f32.mrf.mxu1  ;;  %v6734_v37 = vld [vmem:[%s8991_s7 + $0x314] ss:$8 sps:$4 sm:$0xff]  }
 0x329   :  { %v3711_v45 = vadd.f32 %v3710_v42, %v2888_v38  ;;  %v3754_v62 = vadd.f32 %v3753_v33, %v2896_v39  ;;  %v3930_v2 = vmax.f32 %v3709_v48, 0.0  ;;  %v3932_v3 = vmax.f32 %v3752_v50, 0.0  ;;  %v6735_v42 = vld [vmem:[%s8991_s7 + $0x200] ss:$8 sps:$4 sm:$0xff]  }
 0x32a   :  { %v3712_v43 = vpop.f32.mrf.mxu0  ;;  %v3755_v44 = vpop.f32.mrf.mxu1  ;;  %v6738_v33 = vld [vmem:[%s8991_s7 + $0x300] ss:$8 sps:$4 sm:$0xff]  }
 0x32b   :  { %v3713_v46 = vadd.f32 %v3712_v43, %v2884_v40  ;;  %v3756_v47 = vadd.f32 %v3755_v44, %v2892_v41  ;;  %v3931_v56 = vmax.f32 %v3711_v45, 0.0  ;;  %v3933_v58 = vmax.f32 %v3754_v62, 0.0  ;;  %v6737_v40 = vld [vmem:[%s8991_s7 + $0x204] ss:$8 sps:$4 sm:$0xff]   ;;  %v6743_v43 = vld [vmem:[%s8991_s7 + $0x2f4] ss:$8 sps:$4 sm:$0xff]  }
 0x32c   :  { %v3714_v51 = vpop.f32.mrf.mxu0  ;;  %v3757_v52 = vpop.f32.mrf.mxu1  ;;  %v6740_v41 = vld [vmem:[%s8991_s7 + $0x304] ss:$8 sps:$4 sm:$0xff]   ;;  %v6746_v44 = vld [vmem:[%s8991_s7 + $0x3f4] ss:$8 sps:$4 sm:$0xff]   ;;  %v6741_v45 = vld [vmem:[%s8991_s7 + $0x2f0] ss:$8 sps:$4 sm:$0xff]  }
 0x32d   :  { %v3715_v53 = vadd.f32 %v3714_v51, %v2888_v38  ;;  %v3758_v63 = vadd.f32 %v3757_v52, %v2896_v39  ;;  %v3941_v54 = vmax.f32 %v3713_v46, 0.0  ;;  %v3943_v55 = vmax.f32 %v3756_v47, 0.0  ;;  %v6729_v38 = vld [vmem:[%s8991_s7 + $0x210] ss:$8 sps:$4 sm:$0xff]   ;;  %v6749_v46 = vld [vmem:[%s8991_s7 + $0x2e4] ss:$8 sps:$4 sm:$0xff]  }
 0x32e   :  { %v6732_v39 = vld [vmem:[%s8991_s7 + $0x310] ss:$8 sps:$4 sm:$0xff]   ;;  %v6752_v47 = vld [vmem:[%s8991_s7 + $0x3e4] ss:$8 sps:$4 sm:$0xff]   ;;  %v6747_v48 = vld [vmem:[%s8991_s7 + $0x2e0] ss:$8 sps:$4 sm:$0xff]  }
 0x32f   :  { %v3942_v59 = vmax.f32 %v3715_v53, 0.0  ;;  %v3944_v1 = vmax.f32 %v3758_v63, 0.0  ;;  %v3952_v9 = vpack.c.bf16 %v3941_v54, %v3930_v2  ;;  %v3954_v10 = vpack.c.bf16 %v3943_v55, %v3932_v3  ;;  %v6744_v62 = vld [vmem:[%s8991_s7 + $0x3f0] ss:$8 sps:$4 sm:$0xff]   ;;  %v6750_v50 = vld [vmem:[%s8991_s7 + $0x3e0] ss:$8 sps:$4 sm:$0xff]  }
 0x330   :  { %v6755_v51 = vld [vmem:[%s8991_s7 + $0x2d4] ss:$8 sps:$4 sm:$0xff]   ;;  %v6753_v53 = vld [vmem:[%s8991_s7 + $0x2d0] ss:$8 sps:$4 sm:$0xff]  }
 0x331   :  { %v3953_v4 = vpack.c.bf16 %v3942_v59, %v3931_v56  ;;  %v3955_v5 = vpack.c.bf16 %v3944_v1, %v3933_v58  ;;  %v6758_v52 = vld [vmem:[%s8991_s7 + $0x3d4] ss:$8 sps:$4 sm:$0xff]   ;;  %v6756_v63 = vld [vmem:[%s8991_s7 + $0x3d0] ss:$8 sps:$4 sm:$0xff]   ;;  %v6761_v56 = vld [vmem:[%s8991_s7 + $0x2c4] ss:$8 sps:$4 sm:$0xff]   ;;  %v2904_v59 = vrot.slane %v8649_v35, %v257_v24  ;;  %v2912_v1 = vrot.slane %v8649_v35, %v265_v27 }
 0x332   :  { %v6764_v58 = vld [vmem:[%s8991_s7 + $0x3c4] ss:$8 sps:$4 sm:$0xff]   ;;  %v6767_v24 = vld [vmem:[%s8991_s7 + $0x2b4] ss:$8 sps:$4 sm:$0xff]  }
 0x333   :  { %4982 = vmatprep.mubr.bf16.mxu0 %v3953_v4  ;;  %5025 = vmatprep.mubr.bf16.mxu1 %v3955_v5  ;;  %v6759_v4 = vld [vmem:[%s8991_s7 + $0x2c0] ss:$8 sps:$4 sm:$0xff]   ;;  %v6770_v27 = vld [vmem:[%s8991_s7 + $0x3b4] ss:$8 sps:$4 sm:$0xff]  }
 0x334   :  { %4983 = vmatmul.mubr.bf16.vlgmr.msra.gmra.mxu0 %v3952_v9  ;;  %5026 = vmatmul.mubr.bf16.vlgmr.msra.gmra.mxu1 %v3954_v10  ;;  %v6762_v5 = vld [vmem:[%s8991_s7 + $0x3c0] ss:$8 sps:$4 sm:$0xff]  }
 0x335   :  { %5037 = vmatpush1.bf16.msra.mxu0 %v6693_v7  ;;  %5080 = vmatpush1.bf16.msra.mxu1 %v6696_v8 }
 0x336   :  { %5038 = vmatprep.subr.bf16.mxu0 %v6701_v11  ;;  %5081 = vmatprep.subr.bf16.mxu1 %v6704_v12 }
 0x339   :  { %5039 = vmatpush1.bf16.msra.mxu0 %v6699_v13  ;;  %5082 = vmatpush1.bf16.msra.mxu1 %v6702_v14 }
 0x33a   :  { %5040 = vmatprep.subr.bf16.mxu0 %v6707_v15  ;;  %5083 = vmatprep.subr.bf16.mxu1 %v6710_v16  ;;  %v6765_v15 = vld [vmem:[%s8991_s7 + $0x2b0] ss:$8 sps:$4 sm:$0xff]  }
 0x33b   :  { %v6768_v16 = vld [vmem:[%s8991_s7 + $0x3b0] ss:$8 sps:$4 sm:$0xff]  }
 0x33d   :  { %5041 = vmatpush1.bf16.msra.mxu0 %v6705_v6  ;;  %5084 = vmatpush1.bf16.msra.mxu1 %v6708_v17  ;;  %v6773_v6 = vld [vmem:[%s8991_s7 + $0x2a4] ss:$8 sps:$4 sm:$0xff]  }
 0x33e   :  { %5042 = vmatprep.subr.bf16.mxu0 %v6713_v18  ;;  %5085 = vmatprep.subr.bf16.mxu1 %v6716_v49  ;;  %v6776_v17 = vld [vmem:[%s8991_s7 + $0x3a4] ss:$8 sps:$4 sm:$0xff]  }
 0x341   :  { %5043 = vmatpush1.bf16.msra.mxu0 %v6711_v20  ;;  %5086 = vmatpush1.bf16.msra.mxu1 %v6714_v21 }
 0x342   :  { %5044 = vmatprep.subr.bf16.mxu0 %v6719_v22  ;;  %5087 = vmatprep.subr.bf16.mxu1 %v6722_v23 }
 0x345   :  { %5045 = vmatpush1.bf16.msra.mxu0 %v6717_v26  ;;  %5088 = vmatpush1.bf16.msra.mxu1 %v6720_v29  ;;  %v6771_v26 = vld [vmem:[%s8991_s7 + $0x2a0] ss:$8 sps:$4 sm:$0xff]  }
 0x346   :  { %5046 = vmatprep.subr.bf16.mxu0 %v6725_v30  ;;  %5089 = vmatprep.subr.bf16.mxu1 %v6728_v34  ;;  %v6774_v29 = vld [vmem:[%s8991_s7 + $0x3a0] ss:$8 sps:$4 sm:$0xff]   ;;  %v6779_v30 = vld [vmem:[%s8991_s7 + $0x294] ss:$8 sps:$4 sm:$0xff]  }
 0x347   :  { %v6782_v34 = vld [vmem:[%s8991_s7 + $0x394] ss:$8 sps:$4 sm:$0xff]  }
 0x349   :  { %5047 = vmatpush1.bf16.msra.mxu0 %v6723_v31  ;;  %5090 = vmatpush1.bf16.msra.mxu1 %v6726_v32  ;;  %v2900_v31 = vrot.slane %v8649_v35, %v253_v28  ;;  %v2908_v32 = vrot.slane %v8649_v35, %v261_v25  ;;  %v6788_v25 = vld [vmem:[%s8991_s7 + $0x384] ss:$8 sps:$4 sm:$0xff]  }
 0x34a   :  { %5048 = vmatprep.subr.bf16.mxu0 %v6731_v36  ;;  %5091 = vmatprep.subr.bf16.mxu1 %v6734_v37  ;;  %v6777_v36 = vld [vmem:[%s8991_s7 + $0x290] ss:$8 sps:$4 sm:$0xff]  }
 0x34b   :  { %v6780_v37 = vld [vmem:[%s8991_s7 + $0x390] ss:$8 sps:$4 sm:$0xff]  }
 0x34d   :  { %5049 = vmatpush1.bf16.msra.mxu0 %v6729_v38  ;;  %5092 = vmatpush1.bf16.msra.mxu1 %v6732_v39 }
 0x34e   :  { %5050 = vmatprep.subr.bf16.mxu0 %v6737_v40  ;;  %5093 = vmatprep.subr.bf16.mxu1 %v6740_v41  ;;  %v6783_v40 = vld [vmem:[%s8991_s7 + $0x280] ss:$8 sps:$4 sm:$0xff]  }
 0x34f   :  { %v6786_v41 = vld [vmem:[%s8991_s7 + $0x380] ss:$8 sps:$4 sm:$0xff]  }
 0x351   :  { %5051 = vmatpush1.bf16.msra.mxu0 %v6735_v42  ;;  %5094 = vmatpush1.bf16.msra.mxu1 %v6738_v33 }
 0x352   :  { %5052 = vmatprep.subr.bf16.mxu0 %v6743_v43  ;;  %5095 = vmatprep.subr.bf16.mxu1 %v6746_v44  ;;  %v6791_v43 = vld [vmem:[%s8991_s7 + $0x474] ss:$8 sps:$4 sm:$0xff]   ;;  %v6818_v44 = vld [vmem:[%s8991_s7 + $0x504] ss:$8 sps:$4 sm:$0xff]  }
 0x355   :  { %5053 = vmatpush2.bf16.msra.mxu0 %v6741_v45  ;;  %5096 = vmatpush2.bf16.msra.mxu1 %v6744_v62 }
 0x356   :  { %5054 = vmatprep.subr.bf16.mxu0 %v6749_v46  ;;  %5097 = vmatprep.subr.bf16.mxu1 %v6752_v47  ;;  %v6789_v46 = vld [vmem:[%s8991_s7 + $0x470] ss:$8 sps:$4 sm:$0xff]   ;;  %v6816_v47 = vld [vmem:[%s8991_s7 + $0x500] ss:$8 sps:$4 sm:$0xff]  }
 0x359   :  { %5055 = vmatpush2.bf16.msra.mxu0 %v6747_v48  ;;  %5098 = vmatpush2.bf16.msra.mxu1 %v6750_v50 }
 0x35a   :  { %v3794_v54 = vpop.f32.mrf.mxu0  ;;  %v3837_v55 = vpop.f32.mrf.mxu1  ;;  %5056 = vmatprep.subr.bf16.mxu0 %v6755_v51  ;;  %5099 = vmatprep.subr.bf16.mxu1 %v6758_v52  ;;  %v6794_v51 = vld [vmem:[%s8991_s7 + $0x464] ss:$8 sps:$4 sm:$0xff]   ;;  %v6792_v52 = vld [vmem:[%s8991_s7 + $0x460] ss:$8 sps:$4 sm:$0xff]  }
 0x35b   :  { %v3795_v28 = vadd.f32 %v3794_v54, %v2900_v31  ;;  %v3838_v35 = vadd.f32 %v3837_v55, %v2908_v32  ;;  %v6800_v54 = vld [vmem:[%s8991_s7 + $0x444] ss:$8 sps:$4 sm:$0xff]   ;;  %v6798_v55 = vld [vmem:[%s8991_s7 + $0x440] ss:$8 sps:$4 sm:$0xff]  }
 0x35c   :  { %v3796_v2 = vpop.f32.mrf.mxu0  ;;  %v3839_v3 = vpop.f32.mrf.mxu1 }
 0x35d   :  { %5057 = vmatpush2.bf16.msra.mxu0 %v6753_v53  ;;  %5100 = vmatpush2.bf16.msra.mxu1 %v6756_v63  ;;  %v3797_v9 = vadd.f32 %v3796_v2, %v2904_v59  ;;  %v3840_v10 = vadd.f32 %v3839_v3, %v2912_v1  ;;  %v3934_v45 = vmax.f32 %v3795_v28, 0.0  ;;  %v3936_v62 = vmax.f32 %v3838_v35, 0.0  ;;  %v6797_v53 = vld [vmem:[%s8991_s7 + $0x454] ss:$8 sps:$4 sm:$0xff]   ;;  %v6795_v63 = vld [vmem:[%s8991_s7 + $0x450] ss:$8 sps:$4 sm:$0xff]  }
 0x35e   :  { %v3798_v7 = vpop.f32.mrf.mxu0  ;;  %v3841_v8 = vpop.f32.mrf.mxu1  ;;  %5058 = vmatprep.subr.bf16.mxu0 %v6761_v56  ;;  %5101 = vmatprep.subr.bf16.mxu1 %v6764_v58  ;;  %v6801_v56 = vld [vmem:[%s8991_s7 + $0x430] ss:$8 sps:$4 sm:$0xff]   ;;  %v6806_v58 = vld [vmem:[%s8991_s7 + $0x424] ss:$8 sps:$4 sm:$0xff]  }
 0x35f   :  { %v3935_v18 = vmax.f32 %v3797_v9, 0.0  ;;  %v3937_v49 = vmax.f32 %v3840_v10, 0.0  ;;  %v3799_v38 = vadd.f32 %v3798_v7, %v2900_v31  ;;  %v3842_v39 = vadd.f32 %v3841_v8, %v2908_v32  ;;  %v6807_v2 = vld [vmem:[%s8991_s7 + $0x410] ss:$8 sps:$4 sm:$0xff]   ;;  %v6812_v3 = vld [vmem:[%s8991_s7 + $0x404] ss:$8 sps:$4 sm:$0xff]  }
 0x360   :  { %v3800_v11 = vpop.f32.mrf.mxu0  ;;  %v3843_v12 = vpop.f32.mrf.mxu1  ;;  %v6822_v31 = vld [vmem:[%s8991_s7 + $0x4d0] ss:$8 sps:$4 sm:$0xff]   ;;  %v6827_v32 = vld [vmem:[%s8991_s7 + $0x4c4] ss:$8 sps:$4 sm:$0xff]  }
 0x361   :  { %v3801_v13 = vadd.f32 %v3800_v11, %v2904_v59  ;;  %v3844_v14 = vadd.f32 %v3843_v12, %v2912_v1  ;;  %5059 = vmatpush2.bf16.msra.mxu0 %v6759_v4  ;;  %5102 = vmatpush2.bf16.msra.mxu1 %v6762_v5  ;;  %v3945_v42 = vmax.f32 %v3799_v38, 0.0  ;;  %v3947_v33 = vmax.f32 %v3842_v39, 0.0  ;;  %v6804_v59 = vld [vmem:[%s8991_s7 + $0x420] ss:$8 sps:$4 sm:$0xff]   ;;  %v6809_v1 = vld [vmem:[%s8991_s7 + $0x414] ss:$8 sps:$4 sm:$0xff]  }
 0x362   :  { %5060 = vmatprep.subr.bf16.mxu0 %v6767_v24  ;;  %5103 = vmatprep.subr.bf16.mxu1 %v6770_v27  ;;  %v2878_v4 = vld [vmem:[%s8992_s6 + $0x8] sm:$0x7]  ;;  %v6815_v24 = vld [vmem:[%s8991_s7 + $0x4f4] ss:$8 sps:$4 sm:$0xff]   ;;  %v6813_v12 = vld [vmem:[%s8991_s7 + $0x4f0] ss:$8 sps:$4 sm:$0xff]  }
 0x363   :  { %v3946_v20 = vmax.f32 %v3801_v13, 0.0  ;;  %v3948_v21 = vmax.f32 %v3844_v14, 0.0  ;;  %v3956_v48 = vpack.c.bf16 %v3945_v42, %v3934_v45  ;;  %v3958_v50 = vpack.c.bf16 %v3947_v33, %v3936_v62  ;;  %v6810_v5 = vld [vmem:[%s8991_s7 + $0x400] ss:$8 sps:$4 sm:$0xff]   ;;  %v6828_v38 = vld [vmem:[%s8991_s7 + $0x4b0] ss:$8 sps:$4 sm:$0xff]  }
 0x364   :  { %v2924_v8 = vrot.slane %v2878_v4, %v7651_v61  ;;  %v2920_v9 = vrot.slane %v2878_v4, %v7648_v60  ;;  %v6821_v61 = vld [vmem:[%s8991_s7 + $0x4e4] ss:$8 sps:$4 sm:$0xff]   ;;  %v2916_v28 = vrot.slane %v2878_v4, %v7660_v0  ;;  %v6834_v35 = vld [vmem:[%s8991_s7 + $0x490] ss:$8 sps:$4 sm:$0xff]   ;;  %v6837_v33 = vld [vmem:[%s8991_s7 + $0x480] ss:$8 sps:$4 sm:$0xff]  }
 0x365   :  { %v3957_v22 = vpack.c.bf16 %v3946_v20, %v3935_v18  ;;  %v3959_v23 = vpack.c.bf16 %v3948_v21, %v3937_v49  ;;  %5061 = vmatpush2.bf16.msra.mxu0 %v6765_v15  ;;  %5104 = vmatpush2.bf16.msra.mxu1 %v6768_v16  ;;  %v6819_v20 = vld [vmem:[%s8991_s7 + $0x4e0] ss:$8 sps:$4 sm:$0xff]   ;;  %v6833_v39 = vld [vmem:[%s8991_s7 + $0x4a4] ss:$8 sps:$4 sm:$0xff]  }
 0x366   :  { %5062 = vmatprep.subr.bf16.mxu0 %v6773_v6  ;;  %5105 = vmatprep.subr.bf16.mxu1 %v6776_v17 }
 0x367   :  { %5068 = vmatprep.mubr.bf16.mxu0 %v3957_v22  ;;  %5111 = vmatprep.mubr.bf16.mxu1 %v3959_v23  ;;  %v6824_v23 = vld [vmem:[%s8991_s7 + $0x4d4] ss:$8 sps:$4 sm:$0xff]  }
 0x369   :  { %5063 = vmatpush2.bf16.msra.mxu0 %v6771_v26  ;;  %5106 = vmatpush2.bf16.msra.mxu1 %v6774_v29 }
 0x36a   :  { %5064 = vmatprep.subr.bf16.mxu0 %v6779_v30  ;;  %5107 = vmatprep.subr.bf16.mxu1 %v6782_v34 }
 0x36d   :  { %5065 = vmatpush2.bf16.msra.mxu0 %v6777_v36  ;;  %5108 = vmatpush2.bf16.msra.mxu1 %v6780_v37  ;;  %v6825_v36 = vld [vmem:[%s8991_s7 + $0x4c0] ss:$8 sps:$4 sm:$0xff]   ;;  %v6830_v37 = vld [vmem:[%s8991_s7 + $0x4b4] ss:$8 sps:$4 sm:$0xff]  }
 0x36e   :  { %5066 = vmatprep.subr.bf16.mxu0 %v6785_v57  ;;  %5109 = vmatprep.subr.bf16.mxu1 %v6788_v25  ;;  %v6831_v57 = vld [vmem:[%s8991_s7 + $0x4a0] ss:$8 sps:$4 sm:$0xff]   ;;  %v6836_v25 = vld [vmem:[%s8991_s7 + $0x494] ss:$8 sps:$4 sm:$0xff]  }
 0x371   :  { %5067 = vmatpush2.bf16.msra.mxu0 %v6783_v40  ;;  %5110 = vmatpush2.bf16.msra.mxu1 %v6786_v41  ;;  %v6839_v41 = vld [vmem:[%s8991_s7 + $0x484] ss:$8 sps:$4 sm:$0xff]  }
 0x372   :  { %5122 = vmatprep.subr.bf16.mxu0 %v6791_v43  ;;  %5179 = vmatprep.subr.bf16.mxu1 %v6818_v44 }
 0x374   :  { %5069 = vmatmul.mubr.bf16.vlgmr.msra.gmra.mxu0 %v3956_v48  ;;  %5112 = vmatmul.mubr.bf16.vlgmr.msra.gmra.mxu1 %v3958_v50 }
 0x375   :  { %5123 = vmatpush1.bf16.msra.mxu0 %v6789_v46  ;;  %5180 = vmatpush1.bf16.msra.mxu1 %v6816_v47 }
 0x376   :  { %5124 = vmatprep.subr.bf16.mxu0 %v6794_v51  ;;  %5197 = vmatprep.mubr.bf16.mxu1 %v6840_v19  ;;  %v6803_v19 = vld [vmem:[%s8991_s7 + $0x434] ss:$8 sps:$4 sm:$0xff]  }
 0x379   :  { %5125 = vmatpush1.bf16.msra.mxu0 %v6792_v52 }
 0x37a   :  { %5126 = vmatprep.subr.bf16.mxu0 %v6797_v53  ;;  %v4125_v53 = vld [vmem:[%s8993_s8] sm:$0x3] }
 0x37d   :  { %5127 = vmatpush1.bf16.msra.mxu0 %v6795_v63 }
 0x37e   :  { %5128 = vmatprep.subr.bf16.mxu0 %v6800_v54 }
 0x381   :  { %5129 = vmatpush1.bf16.msra.mxu0 %v6798_v55  ;;  %v4130_v55 = vrot.slane %v4125_v53, %v7660_v0 }
 0x382   :  { %5130 = vmatprep.subr.bf16.mxu0 %v6803_v19 }
 0x385   :  { %5131 = vmatpush1.bf16.msra.mxu0 %v6801_v56 }
 0x386   :  { %5132 = vmatprep.subr.bf16.mxu0 %v6806_v58  ;;  %v4134_v58 = vrot.slane %v4125_v53, %v7648_v60 }
 0x389   :  { %5133 = vmatpush1.bf16.msra.mxu0 %v6804_v59 }
 0x38a   :  { %5134 = vmatprep.subr.bf16.mxu0 %v6809_v1 }
 0x38d   :  { %5135 = vmatpush1.bf16.msra.mxu0 %v6807_v2 }
 0x38e   :  { %v3880_v7 = vpop.f32.mrf.mxu0  ;;  %5136 = vmatprep.subr.bf16.mxu0 %v6812_v3 }
 0x38f   :  { %v3923_v27 = vpop.f32.mrf.mxu1  ;;  %v3881_v42 = vadd.f32 %v3880_v7, %v2916_v28 }
 0x390   :  { %v3882_v10 = vpop.f32.mrf.mxu0  ;;  %v3924_v13 = vadd.f32 %v3923_v27, %v2924_v8 }
 0x391   :  { %v3925_v11 = vpop.f32.mrf.mxu1  ;;  %5137 = vmatpush1.bf16.msra.mxu0 %v6810_v5  ;;  %v3883_v15 = vadd.f32 %v3882_v10, %v2920_v9  ;;  %v3938_v44 = vmax.f32 %v3881_v42, 0.0 }
 0x392   :  { %v3884_v14 = vpop.f32.mrf.mxu0  ;;  %5138 = vmatprep.subr.bf16.mxu0 %v6815_v24  ;;  %v3940_v21 = vmax.f32 %v3924_v13, 0.0 }
 0x393   :  { %v3926_v16 = vpop.f32.mrf.mxu1  ;;  %v3939_v26 = vmax.f32 %v3883_v15, 0.0  ;;  %v3885_v40 = vadd.f32 %v3884_v14, %v2916_v28 }
 0x394   :  { %v3927_v6 = vadd.f32 %v3926_v16, %v2924_v8  ;;  %v3886_v17 = vpop.f32.mrf.mxu0 }
 0x395   :  { %v3887_v18 = vadd.f32 %v3886_v17, %v2920_v9  ;;  %v3928_v49 = vpop.f32.mrf.mxu1  ;;  %5139 = vmatpush2.bf16.msra.mxu0 %v6813_v12  ;;  %v3949_v43 = vmax.f32 %v3885_v40, 0.0 }
 0x396   :  { %v3951_v22 = vmax.f32 %v3927_v6, 0.0  ;;  %5140 = vmatprep.subr.bf16.mxu0 %v6821_v61 }
 0x397   :  { %v3950_v29 = vmax.f32 %v3887_v18, 0.0  ;;  %v3960_v45 = vpack.c.bf16 %v3949_v43, %v3938_v44 }
 0x398   :  { %v3962_v30 = vpack.c.bf16 %v3951_v22, %v3940_v21 }
 0x399   :  { %v3961_v34 = vpack.c.bf16 %v3950_v29, %v3939_v26  ;;  %5141 = vmatpush2.bf16.msra.mxu0 %v6819_v20 }
 0x39a   :  { %5871 = vmatmul.mubr.msk.bf16.vlgmr.msra.gmra.mxu1 %vm2459_vm0, %v3962_v30  ;;  %5142 = vmatprep.subr.bf16.mxu0 %v6824_v23 }
 0x39b   :  { %5154 = vmatprep.mubr.bf16.mxu0 %v3961_v34 }
 0x39d   :  { %5143 = vmatpush2.bf16.msra.mxu0 %v6822_v31 }
 0x39e   :  { %5144 = vmatprep.subr.bf16.mxu0 %v6827_v32 }
 0x3a1   :  { %5145 = vmatpush2.bf16.msra.mxu0 %v6825_v36 }
 0x3a2   :  { %5146 = vmatprep.subr.bf16.mxu0 %v6830_v37 }
 0x3a5   :  { %5147 = vmatpush2.bf16.msra.mxu0 %v6828_v38 }
 0x3a6   :  { %5148 = vmatprep.subr.bf16.mxu0 %v6833_v39 }
 0x3a9   :  { %5149 = vmatpush2.bf16.msra.mxu0 %v6831_v57 }
 0x3aa   :  { %5150 = vmatprep.subr.bf16.mxu0 %v6836_v25 }
 0x3ad   :  { %5151 = vmatpush2.bf16.msra.mxu0 %v6834_v35 }
 0x3ae   :  { %5152 = vmatprep.subr.bf16.mxu0 %v6839_v41 }
 0x3b1   :  { %5153 = vmatpush2.bf16.msra.mxu0 %v6837_v33 }
 0x3b4   :  { %5155 = vmatmul.mubr.bf16.vlgmr.msra.gmra.mxu0 %v3960_v45 }
 0x3f4   :  { %v5027_v62 = vpop.f32.mrf.mxu1  ;;  %v4984_v46 = vpop.f32.mrf.mxu0 }
 0x3f5   :  { %v4985_v59 = vadd.f32 %v4984_v46, %v4130_v55 }
 0x3f6   :  { %v5029_v47 = vpop.f32.mrf.mxu1  ;;  %v4986_v48 = vpop.f32.mrf.mxu0 }
 0x3f7   :  { %v4987_v3 = vadd.f32 %v4986_v48, %v4134_v58  ;;  %v5028_v4 = vadd.f32 %v5027_v62, %v4985_v59 }
 0x3f8   :  { %v5031_v50 = vpop.f32.mrf.mxu1  ;;  %v4988_v51 = vpop.f32.mrf.mxu0 }
 0x3f9   :  { %v4989_v5 = vadd.f32 %v4988_v51, %v4130_v55  ;;  %v5030_v24 = vadd.f32 %v5029_v47, %v4987_v3 }
 0x3fa   :  { %v5033_v52 = vpop.f32.mrf.mxu1  ;;  %v4990_v54 = vpop.f32.mrf.mxu0 }
 0x3fb   :  { %v4991_v27 = vadd.f32 %v4990_v54, %v4134_v58  ;;  %v5032_v11 = vadd.f32 %v5031_v50, %v4989_v5 }
 0x3fd   :  { %v5034_v0 = vadd.f32 %v5033_v52, %v4991_v27 }
 0x434   :  { %v5113_v63 = vpop.f32.mrf.mxu1  ;;  %v5070_v19 = vpop.f32.mrf.mxu0 }
 0x435   :  { %v5071_v9 = vadd.f32 %v5070_v19, %v5028_v4 }
 0x436   :  { %v5115_v56 = vpop.f32.mrf.mxu1  ;;  %v5072_v1 = vpop.f32.mrf.mxu0 }
 0x437   :  { %v5073_v12 = vadd.f32 %v5072_v1, %v5030_v24  ;;  %v5114_v14 = vadd.f32 %v5113_v63, %v5071_v9 }
 0x438   :  { %v5117_v2 = vpop.f32.mrf.mxu1  ;;  %v5074_v7 = vpop.f32.mrf.mxu0 }
 0x439   :  { %v5075_v61 = vadd.f32 %v5074_v7, %v5032_v11  ;;  %v5116_v16 = vadd.f32 %v5115_v56, %v5073_v12 }
 0x43a   :  { %v5119_v8 = vpop.f32.mrf.mxu1  ;;  %v5076_v13 = vpop.f32.mrf.mxu0 }
 0x43b   :  { %v5077_v6 = vadd.f32 %v5076_v13, %v5034_v0  ;;  %v5118_v49 = vadd.f32 %v5117_v2, %v5075_v61 }
 0x43d   :  { %v5120_v26 = vadd.f32 %v5119_v8, %v5077_v6 }
 0x45a   :  { %v5199_v10 = vpop.f32.mrf.mxu1 }
 0x45c   :  { %v5201_v15 = vpop.f32.mrf.mxu1 }
 0x45e   :  { %v5203_v22 = vpop.f32.mrf.mxu1 }
 0x460   :  { %v5205_v36 = vpop.f32.mrf.mxu1 }
 0x474   :  { %v5156_v60 = vpop.f32.mrf.mxu0 }
 0x475   :  { %v5157_v17 = vadd.f32 %v5156_v60, %v5114_v14 }
 0x476   :  { %v5158_v18 = vpop.f32.mrf.mxu0 }
 0x477   :  { %v5200_v20 = vadd.f32 %v5199_v10, %v5157_v17  ;;  %v5159_v21 = vadd.f32 %v5158_v18, %v5116_v16 }
 0x478   :  { %v5160_v23 = vpop.f32.mrf.mxu0 }
 0x479   :  { %5208 = vst [vmem:[%s8994_s9] sm:$0xff] %v5200_v20  ;;  %v5202_v29 = vadd.f32 %v5201_v15, %v5159_v21  ;;  %v5161_v30 = vadd.f32 %v5160_v23, %v5118_v49 }
 0x47a   :  { %v5162_v34 = vpop.f32.mrf.mxu0 }
 0x47b   :  { %5209 = vst [vmem:[%s8994_s9 + $0x8] sm:$0xff] %v5202_v29  ;;  %v5204_v31 = vadd.f32 %v5203_v22, %v5161_v30  ;;  %v5163_v32 = vadd.f32 %v5162_v34, %v5120_v26 }
 0x47d   :  { %5210 = vst [vmem:[%s8994_s9 + $0x10] sm:$0xff] %v5204_v31  ;;  %v5206_v37 = vadd.f32 %v5205_v36, %v5163_v32 }
 0x47f   :  { %5211 = vst [vmem:[%s8994_s9 + $0x18] sm:$0xff] %v5206_v37 }

</bundles_post_ra>
